<compile_context>
chip_gen: v6e
topology: v6e:2x2x1
jax: 0.10.0
libtpu: 0.0.40
codegen_flags: <defaults>
</compile_context>

<pallas_src>
import functools

import jax
import jax.numpy as jnp
from jax.experimental import pallas as pl
from jax.experimental.pallas import tpu as pltpu


def _round_up(x, m):
    return (x + m - 1) // m * m


def _textcnn_kernel(f_max, eps,
                    tok_ref, wv_ref, ln_w_ref, ln_b_ref,
                    conv_w_ref, pbias_mask_ref, lin_w_ref, lin_b_ref,
                    cls_mask_ref, out_ref):
    """Per batch-tile shapes:
       tok_ref        (bB*L_pad, 1)      i32   token ids (-1 == padding row)
       wv_ref         (V_pad, D)         bf16  embedding table (zero-padded rows)
       ln_w_ref       (1, D)             f32
       ln_b_ref       (1, D)             f32
       conv_w_ref     (K_pad, O_pad)     bf16  packed conv weights (K = f_max*D)
       pbias_mask_ref (1, L_pad, O_pad)  f32   conv bias + 0/-inf position mask
       lin_w_ref      (O_pad, C_pad)     bf16  pre-transposed FC weight
       lin_b_ref      (1, C_pad)         f32
       cls_mask_ref   (1, C_pad)         f32   0 for real classes, -inf for pads
       out_ref        (bB, C_pad)        f32   softmax probs (pad lanes -> 0)
    """
    bB, C_pad = out_ref.shape
    N = tok_ref.shape[0]                                    # bB * L_pad
    L_pad = N // bB
    Vp, D = wv_ref.shape
    K_pad, O_pad = conv_w_ref.shape

    # ---- Fused embedding gather: one-hot (N, Vp) @ table (Vp, D) on the MXU ----
    tok = tok_ref[...]                                      # (N, 1) i32
    vocab_iota = jax.lax.broadcasted_iota(jnp.int32, (N, Vp), 1)
    onehot = jnp.where(vocab_iota == tok, 1.0, 0.0).astype(jnp.bfloat16)
    x = jnp.dot(onehot, wv_ref[...],
                preferred_element_type=jnp.float32)         # (N, D) f32

    # ---- LayerNorm over the word dimension D (f32 statistics, affine) ----
    mean = jnp.mean(x, axis=-1, keepdims=True)
    var = jnp.mean(jnp.square(x - mean), axis=-1, keepdims=True)
    xn = (x - mean) * jax.lax.rsqrt(var + eps)
    xn = xn * ln_w_ref[...] + ln_b_ref[...]                 # (N, D) f32

    # ---- Unfold the f_max taps via XLU sublane rolls -> ONE fused-K matmul ----
    # u[:, t*D:(t+1)*D] = xn shifted up by t rows; wrapped / padded rows only
    # reach zero-weight taps or -inf-masked positions, so they never matter.
    taps = []
    for t in range(f_max):
        shifted = xn if t == 0 else pltpu.roll(xn, shift=N - t, axis=0)
        taps.append(shifted.astype(jnp.bfloat16))
    pad_cols = K_pad - f_max * D
    if pad_cols:
        taps.append(jnp.zeros((N, pad_cols), jnp.bfloat16))
    u = jnp.concatenate(taps, axis=-1)                      # (N, K_pad) bf16
    conv = jnp.dot(u, conv_w_ref[...],
                   preferred_element_type=jnp.float32)      # (N, O_pad) f32

    # ---- bias + (-inf) validity mask in one add, then max-pool over positions ----
    conv = conv.reshape(bB, L_pad, O_pad) + pbias_mask_ref[...]
    feat = jnp.max(conv, axis=1)                            # (bB, O_pad)

    # ---- Dropout (identity at inference) -> Linear -> ReLU -> masked Softmax ----
    logits = jnp.dot(feat.astype(jnp.bfloat16), lin_w_ref[...],
                     preferred_element_type=jnp.float32) + lin_b_ref[...]
    logits = jnp.maximum(logits, 0.0) + cls_mask_ref[...]   # pad classes -> -inf
    logits = logits - jnp.max(logits, axis=-1, keepdims=True)
    e = jnp.exp(logits)
    inv = pl.reciprocal(jnp.sum(e, axis=-1, keepdims=True), approx=True)
    out_ref[...] = e * inv


def textcnn_forward(x_tokens, params, *, kernels, num_class, block_b=32):
    """x_tokens: (B, L) int32 token ids. Returns softmax probs (B, num_class)."""
    word_vectors = params["word_vectors"]
    V, D = word_vectors.shape
    B, L = x_tokens.shape
    f_max = max(f for f, _ in kernels)
    O = sum(o for _, o in kernels)                    # linear_dim
    O_pad = _round_up(max(O, 128), 128)               # lane-dense conv channels
    C_pad = _round_up(max(num_class, 128), 128)       # lane-dense logits
    K_pad = _round_up(f_max * D, 128)                 # fused conv contraction dim
    Vp = _round_up(V, 128)                            # MXU-friendly gather K
    L_pad = _round_up(L, 8)
    bB = max(8, min(_round_up(block_b, 8), _round_up(B, 8)))
    B_pad = _round_up(B, bB)
    N = bB * L_pad

    # --- token ids: pad to (B_pad, L_pad) with -1 (matches no vocab row),
    #     lane-thin column layout so the in-kernel one-hot needs no relayout.
    tok = jnp.full((B_pad, L_pad), -1, jnp.int32)
    tok = tok.at[:B, :L].set(x_tokens.astype(jnp.int32))
    tok = tok.reshape(B_pad * L_pad, 1)

    # --- embedding table padded to (Vp, D), bf16 for the MXU gather ---
    wv = jnp.zeros((Vp, D), jnp.float32).at[:V].set(
        word_vectors.astype(jnp.float32)).astype(jnp.bfloat16)

    # --- pack all conv branches into one (K_pad, O_pad) weight; fold the
    #     per-branch bias and the per-position validity (-inf) mask together.
    w_pack = jnp.zeros((K_pad, O_pad), jnp.float32)
    pbias_mask = jnp.zeros((L_pad, O_pad), jnp.float32)   # pad channels: 0 (finite)
    pos = jnp.arange(L_pad)[:, None]
    off = 0
    for i, (f, o) in enumerate(kernels):
        w = params[f"conv_w_{i}"].reshape(o, f, D)          # drop in-channel dim
        w = jnp.transpose(w, (1, 2, 0)).reshape(f * D, o)   # rows = t*D + d
        w_pack = w_pack.at[:f * D, off:off + o].set(w)
        b = params[f"conv_b_{i}"].reshape(1, o).astype(jnp.float32)
        col = jnp.where(pos <= (L - f), jnp.broadcast_to(b, (L_pad, o)), -jnp.inf)
        pbias_mask = pbias_mask.at[:, off:off + o].set(col)
        off += o
    conv_w = w_pack.astype(jnp.bfloat16)
    pbias_mask = pbias_mask[None]                           # (1, L_pad, O_pad)

    # --- FC weights pre-transposed + padded; additive class-pad mask ---
    lin_w = jnp.zeros((O_pad, C_pad), jnp.float32).at[:O, :num_class].set(
        params["lin_w"].T).astype(jnp.bfloat16)
    lin_b = jnp.zeros((1, C_pad), jnp.float32).at[0, :num_class].set(
        params["lin_b"])
    cls_mask = jnp.where(jnp.arange(C_pad)[None, :] < num_class,
                         0.0, -jnp.inf).astype(jnp.float32)

    ln_w = params["ln_w"].reshape(1, D).astype(jnp.float32)
    ln_b = params["ln_b"].reshape(1, D).astype(jnp.float32)

    kernel_fn = functools.partial(_textcnn_kernel, f_max, 1e-5)

    out = pl.pallas_call(
        kernel_fn,
        out_shape=jax.ShapeDtypeStruct((B_pad, C_pad), jnp.float32),
        grid=(B_pad // bB,),
        in_specs=[
            pl.BlockSpec((N, 1), lambda i: (i, 0)),                # token ids
            pl.BlockSpec((Vp, D), lambda i: (0, 0)),               # embedding table
            pl.BlockSpec((1, D), lambda i: (0, 0)),                # ln_w
            pl.BlockSpec((1, D), lambda i: (0, 0)),                # ln_b
            pl.BlockSpec((K_pad, O_pad), lambda i: (0, 0)),        # packed conv W
            pl.BlockSpec((1, L_pad, O_pad), lambda i: (0, 0, 0)),  # bias + mask
            pl.BlockSpec((O_pad, C_pad), lambda i: (0, 0)),        # FC weight
            pl.BlockSpec((1, C_pad), lambda i: (0, 0)),            # FC bias
            pl.BlockSpec((1, C_pad), lambda i: (0, 0)),            # class mask
        ],
        out_specs=pl.BlockSpec((bB, C_pad), lambda i: (i, 0)),
        compiler_params=pltpu.CompilerParams(
            dimension_semantics=("parallel",),
            vmem_limit_bytes=32 * 1024 * 1024,
        ),
    )(tok, wv, ln_w, ln_b, conv_w, pbias_mask, lin_w, lin_b, cls_mask)

    return out[:B, :num_class]


def _reference_forward(x_tokens, params, kernels, num_class):
    """Pure-JAX f32 reference matching the PyTorch forward (inference mode)."""
    wv = params["word_vectors"]
    D = wv.shape[1]
    L = x_tokens.shape[1]
    x = wv[x_tokens]                                        # (B, L, D)
    mean = x.mean(-1, keepdims=True)
    var = ((x - mean) ** 2).mean(-1, keepdims=True)
    xn = (x - mean) / jnp.sqrt(var + 1e-5) * params["ln_w"] + params["ln_b"]
    feats = []
    for i, (f, o) in enumerate(kernels):
        w = params[f"conv_w_{i}"].reshape(o, f, D)
        b = params[f"conv_b_{i}"]
        conv = jnp.stack(
            [jnp.einsum("bfd,ofd->bo", xn[:, p:p + f, :], w)
             for p in range(L - f + 1)], axis=1) + b        # (B, L-f+1, o)
        feats.append(conv.max(axis=1))
    feat = jnp.concatenate(feats, axis=-1)
    logits = jnp.maximum(feat @ params["lin_w"].T + params["lin_b"], 0.0)
    return jax.nn.softmax(logits, axis=-1)


if __name__ == "__main__":
    # Configuration consistent with ConfigTextCNN:
    #   word_len = 16, word_dim = 32, kernels = [(3, 8), (4, 8), (5, 8)]
    #   linear_dim = 24 > num_class = 4, input_channel = 'single'
    # B = 64 -> two batch tiles of 32 so megacore sharding is exercised.
    B, L, D = 64, 16, 32
    vocab_size = 50
    kernels = [(3, 8), (4, 8), (5, 8)]
    linear_dim = sum(o for _, o in kernels)
    num_class = 4

    key = jax.random.PRNGKey(0)
    keys = jax.random.split(key, 4 + 2 * len(kernels))

    params = {
        "word_vectors": jax.random.normal(keys[0], (vocab_size, D),
                                          dtype=jnp.float32) * 0.1,
        "ln_w": jnp.ones((D,), jnp.float32),
        "ln_b": jnp.zeros((D,), jnp.float32),
        "lin_w": jax.random.normal(keys[1], (num_class, linear_dim),
                                   dtype=jnp.float32) * 0.1,
        "lin_b": jax.random.normal(keys[2], (num_class,),
                                   dtype=jnp.float32) * 0.1,
    }
    for i, (f, o) in enumerate(kernels):
        params[f"conv_w_{i}"] = jax.random.normal(
            keys[4 + 2 * i], (o, 1, f, D), dtype=jnp.float32) * 0.1
        params[f"conv_b_{i}"] = jax.random.normal(
            keys[5 + 2 * i], (o,), dtype=jnp.float32) * 0.1

    x_tokens = jax.random.randint(keys[3], (B, L), 0, vocab_size,
                                  dtype=jnp.int32)

    out = textcnn_forward(x_tokens, params, kernels=kernels,
                          num_class=num_class, block_b=32)
    jax.block_until_ready(out)

    ref = _reference_forward(x_tokens, params, kernels, num_class)

    assert out.shape == (B, num_class)
    assert bool(jnp.all(jnp.isfinite(out)))
    assert bool(jnp.allclose(jnp.sum(out, axis=-1), 1.0, atol=5e-2))
    assert bool(jnp.allclose(out, ref, atol=5e-2)), float(jnp.max(jnp.abs(out - ref)))
    print("KERNEL_OK")
</pallas_src>

<mosaic_0001>
module attributes {stable_mosaic.version = 11 : i64} {
  func.func @_textcnn_kernel(%arg0: i32, %arg1: memref<512x1xi32, #tpu.memory_space<vmem>>, %arg2: memref<128x32xbf16, #tpu.memory_space<vmem>>, %arg3: memref<1x32xf32, #tpu.memory_space<vmem>>, %arg4: memref<1x32xf32, #tpu.memory_space<vmem>>, %arg5: memref<256x128xbf16, #tpu.memory_space<vmem>>, %arg6: memref<1x16x128xf32, #tpu.memory_space<vmem>>, %arg7: memref<128x128xbf16, #tpu.memory_space<vmem>>, %arg8: memref<1x128xf32, #tpu.memory_space<vmem>>, %arg9: memref<1x128xf32, #tpu.memory_space<vmem>>, %arg10: memref<32x128xf32, #tpu.memory_space<vmem>>) attributes {dimension_semantics = [#tpu.dimension_semantics<parallel>], iteration_bounds = array<i64: 2>, scalar_prefetch = 0 : i64, scratch_operands = 0 : i64, tpu.core_type = #tpu.core_type<tc>, window_params = [{transform_indices = @transform_0, window_bounds = array<i64: 512, 1>}, {pipeline_mode = #tpu.pipeline_mode<synchronous>, transform_indices = @transform_1, window_bounds = array<i64: 128, 32>}, {pipeline_mode = #tpu.pipeline_mode<synchronous>, transform_indices = @transform_2, window_bounds = array<i64: 1, 32>}, {pipeline_mode = #tpu.pipeline_mode<synchronous>, transform_indices = @transform_3, window_bounds = array<i64: 1, 32>}, {pipeline_mode = #tpu.pipeline_mode<synchronous>, transform_indices = @transform_4, window_bounds = array<i64: 256, 128>}, {pipeline_mode = #tpu.pipeline_mode<synchronous>, transform_indices = @transform_5, window_bounds = array<i64: 1, 16, 128>}, {pipeline_mode = #tpu.pipeline_mode<synchronous>, transform_indices = @transform_6, window_bounds = array<i64: 128, 128>}, {pipeline_mode = #tpu.pipeline_mode<synchronous>, transform_indices = @transform_7, window_bounds = array<i64: 1, 128>}, {pipeline_mode = #tpu.pipeline_mode<synchronous>, transform_indices = @transform_8, window_bounds = array<i64: 1, 128>}, {transform_indices = @transform_9, window_bounds = array<i64: 32, 128>}]} {
    %c0 = arith.constant 0 : index
    %c0_0 = arith.constant 0 : index
    %0 = vector.load %arg1[%c0, %c0_0] : memref<512x1xi32, #tpu.memory_space<vmem>>, vector<512x1xi32>
    %1 = tpu.iota {dimensions = array<i32: 1>} : vector<512x128xi32>
    %2 = vector.broadcast %0 : vector<512x1xi32> to vector<512x128xi32>
    %3 = arith.cmpi eq, %1, %2 : vector<512x128xi32>
    %cst = arith.constant 1.000000e+00 : f32
    %cst_1 = arith.constant 0.000000e+00 : f32
    %4 = vector.broadcast %cst : f32 to vector<512x128xf32>
    %5 = vector.broadcast %cst_1 : f32 to vector<512x128xf32>
    %6 = arith.select %3, %4, %5 : vector<512x128xi1>, vector<512x128xf32>
    %7 = arith.truncf %6 : vector<512x128xf32> to vector<512x128xbf16>
    %c0_2 = arith.constant 0 : index
    %c0_3 = arith.constant 0 : index
    %8 = vector.load %arg2[%c0_2, %c0_3] : memref<128x32xbf16, #tpu.memory_space<vmem>>, vector<128x32xbf16>
    %cst_4 = arith.constant dense<0.000000e+00> : vector<512x32xf32>
    %9 = tpu.matmul %7, %8, %cst_4 {dimension_numbers = #tpu.dot_dimension_numbers<[1], [0], [0], [1], [0, 0, 1, 1], [], []>} : vector<512x128xbf16>, vector<128x32xbf16>, vector<512x32xf32> -> vector<512x32xf32>
    %cst_5 = arith.constant dense<0.000000e+00> : vector<512xf32>
    %10 = vector.multi_reduction <add>, %9, %cst_5 [1] : vector<512x32xf32> to vector<512xf32>
    %11 = vector.shape_cast %10 : vector<512xf32> to vector<512x1xf32>
    %cst_6 = arith.constant 3.200000e+01 : f32
    %12 = vector.broadcast %cst_6 : f32 to vector<512x1xf32>
    %13 = arith.divf %11, %12 : vector<512x1xf32>
    %14 = vector.broadcast %13 : vector<512x1xf32> to vector<512x32xf32>
    %15 = arith.subf %9, %14 : vector<512x32xf32>
    %16 = arith.mulf %15, %15 : vector<512x32xf32>
    %cst_7 = arith.constant dense<0.000000e+00> : vector<512xf32>
    %17 = vector.multi_reduction <add>, %16, %cst_7 [1] : vector<512x32xf32> to vector<512xf32>
    %18 = vector.shape_cast %17 : vector<512xf32> to vector<512x1xf32>
    %cst_8 = arith.constant 3.200000e+01 : f32
    %19 = vector.broadcast %cst_8 : f32 to vector<512x1xf32>
    %20 = arith.divf %18, %19 : vector<512x1xf32>
    %21 = vector.broadcast %13 : vector<512x1xf32> to vector<512x32xf32>
    %22 = arith.subf %9, %21 : vector<512x32xf32>
    %cst_9 = arith.constant 9.99999974E-6 : f32
    %23 = vector.broadcast %cst_9 : f32 to vector<512x1xf32>
    %24 = arith.addf %20, %23 : vector<512x1xf32>
    %25 = math.rsqrt %24 : vector<512x1xf32>
    %26 = vector.broadcast %25 : vector<512x1xf32> to vector<512x32xf32>
    %27 = arith.mulf %22, %26 : vector<512x32xf32>
    %c0_10 = arith.constant 0 : index
    %c0_11 = arith.constant 0 : index
    %28 = vector.load %arg3[%c0_10, %c0_11] : memref<1x32xf32, #tpu.memory_space<vmem>>, vector<1x32xf32>
    %29 = vector.broadcast %28 : vector<1x32xf32> to vector<512x32xf32>
    %30 = arith.mulf %27, %29 : vector<512x32xf32>
    %c0_12 = arith.constant 0 : index
    %c0_13 = arith.constant 0 : index
    %31 = vector.load %arg4[%c0_12, %c0_13] : memref<1x32xf32, #tpu.memory_space<vmem>>, vector<1x32xf32>
    %32 = vector.broadcast %31 : vector<1x32xf32> to vector<512x32xf32>
    %33 = arith.addf %30, %32 : vector<512x32xf32>
    %34 = arith.truncf %33 : vector<512x32xf32> to vector<512x32xbf16>
    %c511_i32 = arith.constant 511 : i32
    %35 = tpu.dynamic_rotate %33 by %c511_i32 dim 0 : vector<512x32xf32>, i32 -> vector<512x32xf32>
    %36 = arith.truncf %35 : vector<512x32xf32> to vector<512x32xbf16>
    %c510_i32 = arith.constant 510 : i32
    %37 = tpu.dynamic_rotate %33 by %c510_i32 dim 0 : vector<512x32xf32>, i32 -> vector<512x32xf32>
    %38 = arith.truncf %37 : vector<512x32xf32> to vector<512x32xbf16>
    %c509_i32 = arith.constant 509 : i32
    %39 = tpu.dynamic_rotate %33 by %c509_i32 dim 0 : vector<512x32xf32>, i32 -> vector<512x32xf32>
    %40 = arith.truncf %39 : vector<512x32xf32> to vector<512x32xbf16>
    %c508_i32 = arith.constant 508 : i32
    %41 = tpu.dynamic_rotate %33 by %c508_i32 dim 0 : vector<512x32xf32>, i32 -> vector<512x32xf32>
    %42 = arith.truncf %41 : vector<512x32xf32> to vector<512x32xbf16>
    %cst_14 = arith.constant 0.000000e+00 : bf16
    %43 = vector.broadcast %cst_14 : bf16 to vector<512x96xbf16>
    %44 = tpu.concatenate %34, %36, %38, %40, %42, %43 in 1 : vector<512x32xbf16>, vector<512x32xbf16>, vector<512x32xbf16>, vector<512x32xbf16>, vector<512x32xbf16>, vector<512x96xbf16> -> vector<512x256xbf16>
    %c0_15 = arith.constant 0 : index
    %c0_16 = arith.constant 0 : index
    %45 = vector.load %arg5[%c0_15, %c0_16] : memref<256x128xbf16, #tpu.memory_space<vmem>>, vector<256x128xbf16>
    %cst_17 = arith.constant dense<0.000000e+00> : vector<512x128xf32>
    %46 = tpu.matmul %44, %45, %cst_17 {dimension_numbers = #tpu.dot_dimension_numbers<[1], [0], [0], [1], [0, 0, 1, 1], [], []>} : vector<512x256xbf16>, vector<256x128xbf16>, vector<512x128xf32> -> vector<512x128xf32>
    %47 = vector.shape_cast %46 : vector<512x128xf32> to vector<32x16x128xf32>
    %c0_18 = arith.constant 0 : index
    %c0_19 = arith.constant 0 : index
    %c0_20 = arith.constant 0 : index
    %48 = vector.load %arg6[%c0_18, %c0_19, %c0_20] : memref<1x16x128xf32, #tpu.memory_space<vmem>>, vector<1x16x128xf32>
    %49 = vector.broadcast %48 : vector<1x16x128xf32> to vector<32x16x128xf32>
    %50 = arith.addf %47, %49 : vector<32x16x128xf32>
    %cst_21 = arith.constant dense<0xFF800000> : vector<32x128xf32>
    %51 = vector.multi_reduction <maximumf>, %50, %cst_21 [1] : vector<32x16x128xf32> to vector<32x128xf32>
    %52 = arith.truncf %51 : vector<32x128xf32> to vector<32x128xbf16>
    %c0_22 = arith.constant 0 : index
    %c0_23 = arith.constant 0 : index
    %53 = vector.load %arg7[%c0_22, %c0_23] : memref<128x128xbf16, #tpu.memory_space<vmem>>, vector<128x128xbf16>
    %cst_24 = arith.constant dense<0.000000e+00> : vector<32x128xf32>
    %54 = tpu.matmul %52, %53, %cst_24 {dimension_numbers = #tpu.dot_dimension_numbers<[1], [0], [0], [1], [0, 0, 1, 1], [], []>} : vector<32x128xbf16>, vector<128x128xbf16>, vector<32x128xf32> -> vector<32x128xf32>
    %c0_25 = arith.constant 0 : index
    %c0_26 = arith.constant 0 : index
    %55 = vector.load %arg8[%c0_25, %c0_26] : memref<1x128xf32, #tpu.memory_space<vmem>>, vector<1x128xf32>
    %56 = vector.broadcast %55 : vector<1x128xf32> to vector<32x128xf32>
    %57 = arith.addf %54, %56 : vector<32x128xf32>
    %cst_27 = arith.constant 0.000000e+00 : f32
    %58 = vector.broadcast %cst_27 : f32 to vector<32x128xf32>
    %59 = arith.maximumf %57, %58 : vector<32x128xf32>
    %c0_28 = arith.constant 0 : index
    %c0_29 = arith.constant 0 : index
    %60 = vector.load %arg9[%c0_28, %c0_29] : memref<1x128xf32, #tpu.memory_space<vmem>>, vector<1x128xf32>
    %61 = vector.broadcast %60 : vector<1x128xf32> to vector<32x128xf32>
    %62 = arith.addf %59, %61 : vector<32x128xf32>
    %cst_30 = arith.constant dense<0xFF800000> : vector<32xf32>
    %63 = vector.multi_reduction <maximumf>, %62, %cst_30 [1] : vector<32x128xf32> to vector<32xf32>
    %64 = vector.shape_cast %63 : vector<32xf32> to vector<32x1xf32>
    %65 = vector.broadcast %64 : vector<32x1xf32> to vector<32x128xf32>
    %66 = arith.subf %62, %65 : vector<32x128xf32>
    %67 = math.exp %66 : vector<32x128xf32>
    %cst_31 = arith.constant dense<0.000000e+00> : vector<32xf32>
    %68 = vector.multi_reduction <add>, %67, %cst_31 [1] : vector<32x128xf32> to vector<32xf32>
    %69 = vector.shape_cast %68 : vector<32xf32> to vector<32x1xf32>
    %70 = tpu.reciprocal %69 {approx = true} : vector<32x1xf32> -> vector<32x1xf32>
    %71 = vector.broadcast %70 : vector<32x1xf32> to vector<32x128xf32>
    %72 = arith.mulf %67, %71 : vector<32x128xf32>
    %c0_32 = arith.constant 0 : index
    %c0_33 = arith.constant 0 : index
    %73 = vector.load %arg10[%c0_32, %c0_33] : memref<32x128xf32, #tpu.memory_space<vmem>>, vector<32x128xf32>
    tpu.vector_store %arg10[%c0_32, %c0_33], %72 {strides = array<i32>} : memref<32x128xf32, #tpu.memory_space<vmem>>, vector<32x128xf32>,
    return
  }
  func.func @transform_0(%arg0: i32) -> (i32, i32) {
    %c0_i32 = arith.constant 0 : i32
    %c0_i32_0 = arith.constant 0 : i32
    return %arg0, %c0_i32 : i32, i32
  }
  func.func @transform_1(%arg0: i32) -> (i32, i32) {
    %c0_i32 = arith.constant 0 : i32
    %c0_i32_0 = arith.constant 0 : i32
    %c0_i32_1 = arith.constant 0 : i32
    return %c0_i32, %c0_i32_0 : i32, i32
  }
  func.func @transform_2(%arg0: i32) -> (i32, i32) {
    %c0_i32 = arith.constant 0 : i32
    %c0_i32_0 = arith.constant 0 : i32
    %c0_i32_1 = arith.constant 0 : i32
    return %c0_i32, %c0_i32_0 : i32, i32
  }
  func.func @transform_3(%arg0: i32) -> (i32, i32) {
    %c0_i32 = arith.constant 0 : i32
    %c0_i32_0 = arith.constant 0 : i32
    %c0_i32_1 = arith.constant 0 : i32
    return %c0_i32, %c0_i32_0 : i32, i32
  }
  func.func @transform_4(%arg0: i32) -> (i32, i32) {
    %c0_i32 = arith.constant 0 : i32
    %c0_i32_0 = arith.constant 0 : i32
    %c0_i32_1 = arith.constant 0 : i32
    return %c0_i32, %c0_i32_0 : i32, i32
  }
  func.func @transform_5(%arg0: i32) -> (i32, i32, i32) {
    %c0_i32 = arith.constant 0 : i32
    %c0_i32_0 = arith.constant 0 : i32
    %c0_i32_1 = arith.constant 0 : i32
    %c0_i32_2 = arith.constant 0 : i32
    return %c0_i32, %c0_i32_0, %c0_i32_1 : i32, i32, i32
  }
  func.func @transform_6(%arg0: i32) -> (i32, i32) {
    %c0_i32 = arith.constant 0 : i32
    %c0_i32_0 = arith.constant 0 : i32
    %c0_i32_1 = arith.constant 0 : i32
    return %c0_i32, %c0_i32_0 : i32, i32
  }
  func.func @transform_7(%arg0: i32) -> (i32, i32) {
    %c0_i32 = arith.constant 0 : i32
    %c0_i32_0 = arith.constant 0 : i32
    %c0_i32_1 = arith.constant 0 : i32
    return %c0_i32, %c0_i32_0 : i32, i32
  }
  func.func @transform_8(%arg0: i32) -> (i32, i32) {
    %c0_i32 = arith.constant 0 : i32
    %c0_i32_0 = arith.constant 0 : i32
    %c0_i32_1 = arith.constant 0 : i32
    return %c0_i32, %c0_i32_0 : i32, i32
  }
  func.func @transform_9(%arg0: i32) -> (i32, i32) {
    %c0_i32 = arith.constant 0 : i32
    %c0_i32_0 = arith.constant 0 : i32
    return %arg0, %c0_i32 : i32, i32
  }
}

</mosaic_0001>

<bundles_post_ra>
// kernel: tpu_custom_call.1
= control target key start
LH: loop header
LB: loop body
LE: loop exit
PB: predicated region body
PF: predicated region fallthrough
CT: control target
= control target key end

     0   :  { %14 = vsyncpa [#allocation3], 0  ;;  %s8522_s0 = inlined_call_operand.vmem [shape: s32[1024,1], index: 0, kind: input, shape index: {}]   ;;  %s8523_s1 = inlined_call_operand.vmem [shape: bf16[128,32], index: 1, kind: input, shape index: {}]   ;;  %s8524_s2 = inlined_call_operand.vmem [shape: f32[1,32], index: 2, kind: input, shape index: {}]   ;;  %s8525_s3 = inlined_call_operand.vmem [shape: f32[1,32], index: 3, kind: input, shape index: {}]   ;;  %s8526_s4 = inlined_call_operand.vmem [shape: bf16[256,128], index: 4, kind: input, shape index: {}]   ;;  %s8527_s5 = inlined_call_operand.vmem [shape: f32[1,16,128], index: 5, kind: input, shape index: {}]   ;;  %s8528_s6 = inlined_call_operand.vmem [shape: bf16[128,128], index: 6, kind: input, shape index: {}]   ;;  %s8529_s7 = inlined_call_operand.vmem [shape: f32[1,128], index: 7, kind: input, shape index: {}]   ;;  %s8530_s8 = inlined_call_operand.vmem [shape: f32[1,128], index: 8, kind: input, shape index: {}]   ;;  %s8531_s9 = inlined_call_operand.hbm [shape: f32[64,128], index: 9, kind: output, shape index: {}]  }
   0x1   :  { %16 = vsyncpa [#allocation3 + $0x1], 0  ;;  %s5173_s30 = smov 0   ;;  %s5175_s10 = smov 0  }
   0x2   :  { %s5177_s11 = smov 0   ;;  %s5179_s12 = smov 0  }
   0x3 LB: > { %s5194_s13 = sadd.s32 4294967295, %s5113_s12   ;;  %s4496_s14 = sadd.s32 4294967294, %s5113_s12   ;;  %s5113_s12 = sphi %s5179_s12, %s9034_s12   ;;  %s5109_s11 = sphi %s5177_s11, %s9033_s11   ;;  %s5105_s10 = sphi %s5175_s10, %s9032_s10   ;;  %s5101_s30 = sphi %s5173_s30, %s9031_s30  }
   0x4   : > { %s5198_s15 = sadd.s32 1, %s5113_s12   ;;  %s223_s16 = sadd.s32 1, %s5109_s11 }
   0x5   : > { %s220_s17 = ssub.s32 %s5113_s12, %s5198_s15  ;;  %p233_p0 = scmp.ne.s32.totalorder %s5109_s11, %s5105_s10 }
   0x6   : > { %p221_p1 = scmp.eq.s32.totalorder %s220_s17, 0  ;;  %p234_p2 = scmp.eq.s32.totalorder %s5194_s13, 1 }
   0x7   : > { %p239_p3 = scmp.ne.s32.totalorder %s5105_s10, %s5101_s30  ;;  %p240_p4 = scmp.eq.s32.totalorder %s4496_s14, 1 }
   0x8   : > { %s5209_s18 = scalar_select %p221_p1, %s5109_s11, %s223_s16  }
   0x9   : > { %p5211_p5 = por %p234_p2, %p233_p0  ;;  %p5215_p6 = por %p240_p4, %p239_p3 }
   0xa   : > { %p4499_p7 = scmp.ge.s32.totalorder %s5113_s12, 1  ;;  %p291_p8 = scmp.lt.s32.totalorder %s5113_s12, 3 }
   0xc   : > { %p292_p9 = pnand %p4499_p7, %p291_p8 }
   0xe   : > { %295 = sbr.rel (%p292_p9) target bundleno = 2031 (0x7ef), region = 56 }
  0x13   : > { %s4501_s21 = sshll.u32 %s5194_s13, 6  ;;  %v8533_v0 = vmov 0   ;;  %v4871_v1 = vld [vmem:[%s8523_s1 + $0x38] sm:$0xff]   ;;  %v4872_v2 = vld [vmem:[%s8523_s1 + $0x30] sm:$0xff]   ;;  %v4873_v3 = vld [vmem:[%s8523_s1 + $0x28] sm:$0xff]   ;;  %s5118_s14 = smov 32  }
  0x14   : > { %4870 = vset.pattern.permute.xlu1 %v8533_v0  ;;  %4869 = vset.pattern.permute.xlu0 %v8533_v0  ;;  %p328_p10 = scmp.lt.s32.totalorder %s4501_s21, 127  ;;  %v4874_v8 = vld [vmem:[%s8523_s1 + $0x20] sm:$0xff]   ;;  %v4875_v11 = vld [vmem:[%s8523_s1 + $0x18] sm:$0xff]   ;;  %v4876_v14 = vld [vmem:[%s8523_s1 + $0x10] sm:$0xff]   ;;  %s5119_s17 = smov 96  }
  0x15   : > { %4791 = vmatprep.subr.bf16.mxu1 %v8533_v0  ;;  %4691 = vmatprep.subr.bf16.mxu0 %v4871_v1  ;;  %v4877_v19 = vld [vmem:[%s8523_s1 + $0x8] sm:$0xff]   ;;  %v4878_v22 = vld [vmem:[%s8523_s1] sm:$0xff]   ;;  %s4640_s24 = sshll.u32 %s5194_s13, 9 }
  0x16   : > { %s9036_s21 = smov (!%p328_p10, %s4501_s21), 127  ;;  %4692 = vmatpush3.bf16.msra.mxu0 %v4871_v1 }
  0x17   : > { %s4502_s26 = sshll.u32 %s9036_s21, 3  ;;  %4693 = vmatprep.subr.bf16.mxu0 %v4872_v2  ;;  %s5120_s21 = smov [#allocation2]  }
  0x18   : > { %s5234_s29 = scalar_lea.vmem %s8522_s0, %s4502_s26  ;;  %s5117_s26 = smov 64  }
  0x19   : > { %v337_v4 = vld [vmem:[%s5234_s29 + $0x10] sm:$0xff]  ;;  %v335_v5 = vld [vmem:[%s5234_s29] sm:$0xff]  ;;  %v338_v6 = vld [vmem:[%s5234_s29 + $0x18] sm:$0xff]  ;;  %s5057_s22 = sshll.u32 %s5120_s21, 4  ;;  %s5058_s22 = int_to_ptr.vmem [resolvable:$false] %s5057_s22 }
  0x1a   : > { %408 = vperm.xlu1 %4870, %v337_v4   ;;  %402 = vperm.xlu0 %4869, %v335_v5   ;;  %v336_v7 = vld [vmem:[%s5234_s29 + $0x8] sm:$0xff]  ;;  %v339_v10 = vld [vmem:[%s5234_s29 + $0x20] sm:$0xff]  ;;  %v342_v12 = vld [vmem:[%s5234_s29 + $0x38] sm:$0xff]  ;;  %s5059_s23 = scalar_lea.vmem %s5058_s22, 1024 }
  0x1b   : > { %4694 = vmatpush3.bf16.msra.mxu0 %v4872_v2  ;;  %v340_v9 = vld [vmem:[%s5234_s29 + $0x28] sm:$0xff]  ;;  %v341_v13 = vld [vmem:[%s5234_s29 + $0x30] sm:$0xff]  ;;  %v343_v16 = vld [vmem:[%s5234_s29 + $0x40] sm:$0xff] }
  0x1c   : > { %4695 = vmatprep.subr.bf16.mxu0 %v4873_v3  ;;  %v344_v15 = vld [vmem:[%s5234_s29 + $0x48] sm:$0xff]  ;;  %v346_v17 = vld [vmem:[%s5234_s29 + $0x58] sm:$0xff]  ;;  %v345_v18 = vld [vmem:[%s5234_s29 + $0x50] sm:$0xff] }
  0x1d   : > { %v348_v20 = vld [vmem:[%s5234_s29 + $0x68] sm:$0xff]  ;;  %v347_v21 = vld [vmem:[%s5234_s29 + $0x60] sm:$0xff]  ;;  %v350_v23 = vld [vmem:[%s5234_s29 + $0x78] sm:$0xff] }
  0x1e   : > { %411 = vperm.xlu1 %4870, %v338_v6   ;;  %405 = vperm.xlu0 %4869, %v336_v7   ;;  %v349_v24 = vld [vmem:[%s5234_s29 + $0x70] sm:$0xff]  ;;  %v352_v25 = vld [vmem:[%s5234_s29 + $0x88] sm:$0xff]  ;;  %v351_v26 = vld [vmem:[%s5234_s29 + $0x80] sm:$0xff] }
  0x1f   : > { %4696 = vmatpush3.bf16.msra.mxu0 %v4873_v3  ;;  %v354_v27 = vld [vmem:[%s5234_s29 + $0x98] sm:$0xff]  ;;  %v353_v28 = vld [vmem:[%s5234_s29 + $0x90] sm:$0xff]  ;;  %v356_v29 = vld [vmem:[%s5234_s29 + $0xa8] sm:$0xff] }
  0x20   : > { %4697 = vmatprep.subr.bf16.mxu0 %v4874_v8  ;;  %v355_v30 = vld [vmem:[%s5234_s29 + $0xa0] sm:$0xff]  ;;  %v358_v31 = vld [vmem:[%s5234_s29 + $0xb8] sm:$0xff]  ;;  %v357_v32 = vld [vmem:[%s5234_s29 + $0xb0] sm:$0xff] }
  0x21   : > { %v360_v33 = vld [vmem:[%s5234_s29 + $0xc8] sm:$0xff]  ;;  %v359_v34 = vld [vmem:[%s5234_s29 + $0xc0] sm:$0xff]  ;;  %v362_v35 = vld [vmem:[%s5234_s29 + $0xd8] sm:$0xff] }
  0x22   : > { %417 = vperm.xlu1 %4870, %v340_v9   ;;  %414 = vperm.xlu0 %4869, %v339_v10   ;;  %v361_v36 = vld [vmem:[%s5234_s29 + $0xd0] sm:$0xff]  ;;  %v364_v37 = vld [vmem:[%s5234_s29 + $0xe8] sm:$0xff]  ;;  %v363_v38 = vld [vmem:[%s5234_s29 + $0xe0] sm:$0xff] }
  0x23   : > { %4698 = vmatpush3.bf16.msra.mxu0 %v4874_v8  ;;  %v366_v39 = vld [vmem:[%s5234_s29 + $0xf8] sm:$0xff]  ;;  %v365_v40 = vld [vmem:[%s5234_s29 + $0xf0] sm:$0xff]  ;;  %v368_v41 = vld [vmem:[%s5234_s29 + $0x108] sm:$0xff]  ;;  %v8532_v8 = vlaneseq }
  0x24   : > { %4699 = vmatprep.subr.bf16.mxu0 %v4875_v11  ;;  %v367_v42 = vld [vmem:[%s5234_s29 + $0x100] sm:$0xff]  ;;  %v370_v43 = vld [vmem:[%s5234_s29 + $0x118] sm:$0xff]  ;;  %v369_v44 = vld [vmem:[%s5234_s29 + $0x110] sm:$0xff] }
  0x25   : > { %v372_v45 = vld [vmem:[%s5234_s29 + $0x128] sm:$0xff]  ;;  %v371_v46 = vld [vmem:[%s5234_s29 + $0x120] sm:$0xff]  ;;  %v374_v47 = vld [vmem:[%s5234_s29 + $0x138] sm:$0xff] }
  0x26   : > { %423 = vperm.xlu1 %4870, %v342_v12   ;;  %420 = vperm.xlu0 %4869, %v341_v13   ;;  %v373_v48 = vld [vmem:[%s5234_s29 + $0x130] sm:$0xff]  ;;  %v376_v49 = vld [vmem:[%s5234_s29 + $0x148] sm:$0xff]  ;;  %v375_v50 = vld [vmem:[%s5234_s29 + $0x140] sm:$0xff]  ;;  %v5320_v13 = vand.u32 127, %v8532_v8 }
  0x27   : > { %4700 = vmatpush3.bf16.msra.mxu0 %v4875_v11  ;;  %v378_v51 = vld [vmem:[%s5234_s29 + $0x158] sm:$0xff]  ;;  %v377_v52 = vld [vmem:[%s5234_s29 + $0x150] sm:$0xff]  ;;  %v380_v53 = vld [vmem:[%s5234_s29 + $0x168] sm:$0xff] }
  0x28   : > { %4701 = vmatprep.subr.bf16.mxu0 %v4876_v14  ;;  %v379_v54 = vld [vmem:[%s5234_s29 + $0x160] sm:$0xff]  ;;  %v382_v55 = vld [vmem:[%s5234_s29 + $0x178] sm:$0xff]  ;;  %v381_v56 = vld [vmem:[%s5234_s29 + $0x170] sm:$0xff] }
  0x29   : > { %v384_v57 = vld [vmem:[%s5234_s29 + $0x188] sm:$0xff]  ;;  %v383_v58 = vld [vmem:[%s5234_s29 + $0x180] sm:$0xff]  ;;  %v386_v59 = vld [vmem:[%s5234_s29 + $0x198] sm:$0xff] }
  0x2a   : > { %429 = vperm.xlu1 %4870, %v344_v15   ;;  %426 = vperm.xlu0 %4869, %v343_v16   ;;  %v385_v60 = vld [vmem:[%s5234_s29 + $0x190] sm:$0xff]  ;;  %v388_v61 = vld [vmem:[%s5234_s29 + $0x1a8] sm:$0xff]  ;;  %v387_v62 = vld [vmem:[%s5234_s29 + $0x1a0] sm:$0xff]  ;;  %v5116_v16 = vmov 1.0|1.0  }
  0x2b   : > { %4702 = vmatpush3.bf16.msra.mxu0 %v4876_v14  ;;  %v390_v63 = vld [vmem:[%s5234_s29 + $0x1b8] sm:$0xff]  ;;  %v389_v1 = vld [vmem:[%s5234_s29 + $0x1b0] sm:$0xff]  ;;  %v392_v2 = vld [vmem:[%s5234_s29 + $0x1c8] sm:$0xff] }
  0x2c   : > { %4703 = vmatprep.subr.bf16.mxu0 %v4877_v19  ;;  %v391_v3 = vld [vmem:[%s5234_s29 + $0x1c0] sm:$0xff]  ;;  %v394_v4 = vld [vmem:[%s5234_s29 + $0x1d8] sm:$0xff]  ;;  %v393_v5 = vld [vmem:[%s5234_s29 + $0x1d0] sm:$0xff] }
  0x2d   : > { %v396_v6 = vld [vmem:[%s5234_s29 + $0x1e8] sm:$0xff]  ;;  %v395_v7 = vld [vmem:[%s5234_s29 + $0x1e0] sm:$0xff]  ;;  %v398_v9 = vld [vmem:[%s5234_s29 + $0x1f8] sm:$0xff] }
  0x2e   : > { %435 = vperm.xlu1 %4870, %v346_v17   ;;  %432 = vperm.xlu0 %4869, %v345_v18   ;;  %v397_v10 = vld [vmem:[%s5234_s29 + $0x1f0] sm:$0xff]  ;;  %s8478_s29 = scalar_lea.hbm %s8531_s9, %s4640_s24 }
  0x2f   : > { %4704 = vmatpush3.bf16.msra.mxu0 %v4877_v19 }
  0x30   : > { %4705 = vmatprep.subr.bf16.mxu0 %v4878_v22 }
  0x32   : > { %441 = vperm.xlu1 %4870, %v348_v20   ;;  %438 = vperm.xlu0 %4869, %v347_v21  }
  0x33   : > { %4706 = vmatpush3.bf16.msra.mxu0 %v4878_v22 }
  0x34   : > { %3531 = vmatprep.subr.bf16.mxu0 %v8533_v0 }
  0x36   : > { %447 = vperm.xlu1 %4870, %v350_v23   ;;  %444 = vperm.xlu0 %4869, %v349_v24  }
  0x3a   : > { %453 = vperm.xlu1 %4870, %v352_v25   ;;  %450 = vperm.xlu0 %4869, %v351_v26  }
  0x3e   : > { %459 = vperm.xlu1 %4870, %v354_v27   ;;  %456 = vperm.xlu0 %4869, %v353_v28  }
  0x42   : > { %465 = vperm.xlu1 %4870, %v356_v29   ;;  %462 = vperm.xlu0 %4869, %v355_v30  }
  0x46   : > { %471 = vperm.xlu1 %4870, %v358_v31   ;;  %468 = vperm.xlu0 %4869, %v357_v32  }
  0x4a   : > { %477 = vperm.xlu1 %4870, %v360_v33   ;;  %474 = vperm.xlu0 %4869, %v359_v34  }
  0x4e   : > { %483 = vperm.xlu1 %4870, %v362_v35   ;;  %480 = vperm.xlu0 %4869, %v361_v36  }
  0x52   : > { %489 = vperm.xlu1 %4870, %v364_v37   ;;  %486 = vperm.xlu0 %4869, %v363_v38  }
  0x56   : > { %495 = vperm.xlu1 %4870, %v366_v39   ;;  %492 = vperm.xlu0 %4869, %v365_v40  }
  0x5a   : > { %501 = vperm.xlu1 %4870, %v368_v41   ;;  %498 = vperm.xlu0 %4869, %v367_v42  }
  0x5e   : > { %507 = vperm.xlu1 %4870, %v370_v43   ;;  %504 = vperm.xlu0 %4869, %v369_v44  }
  0x62   : > { %513 = vperm.xlu1 %4870, %v372_v45   ;;  %510 = vperm.xlu0 %4869, %v371_v46  }
  0x66   : > { %519 = vperm.xlu1 %4870, %v374_v47   ;;  %516 = vperm.xlu0 %4869, %v373_v48  }
  0x6a   : > { %525 = vperm.xlu1 %4870, %v376_v49   ;;  %522 = vperm.xlu0 %4869, %v375_v50  }
  0x6e   : > { %531 = vperm.xlu1 %4870, %v378_v51   ;;  %528 = vperm.xlu0 %4869, %v377_v52  }
  0x72   : > { %537 = vperm.xlu1 %4870, %v380_v53   ;;  %534 = vperm.xlu0 %4869, %v379_v54  }
  0x76   : > { %543 = vperm.xlu1 %4870, %v382_v55   ;;  %540 = vperm.xlu0 %4869, %v381_v56  }
  0x7a   : > { %549 = vperm.xlu1 %4870, %v384_v57   ;;  %546 = vperm.xlu0 %4869, %v383_v58  }
  0x7e   : > { %555 = vperm.xlu1 %4870, %v386_v59   ;;  %552 = vperm.xlu0 %4869, %v385_v60  }
  0x82   : > { %561 = vperm.xlu1 %4870, %v388_v61   ;;  %558 = vperm.xlu0 %4869, %v387_v62  }
  0x86   : > { %567 = vperm.xlu1 %4870, %v390_v63   ;;  %564 = vperm.xlu0 %4869, %v389_v1  }
  0x8a   : > { %573 = vperm.xlu1 %4870, %v392_v2   ;;  %570 = vperm.xlu0 %4869, %v391_v3  }
  0x8e   : > { %579 = vperm.xlu1 %4870, %v394_v4   ;;  %576 = vperm.xlu0 %4869, %v393_v5  }
  0x92   : > { %585 = vperm.xlu1 %4870, %v396_v6   ;;  %582 = vperm.xlu0 %4869, %v395_v7  }
  0x95   : > { %v409_v11 = vpop.permute.xlu1 %408  ;;  %v403_v12 = vpop.permute.xlu0 %402 }
  0x96   : > { %591 = vperm.xlu1 %4870, %v398_v9   ;;  %588 = vperm.xlu0 %4869, %v397_v10   ;;  %vm595_vm0 = vcmp.eq.s32.totalorder %v5320_v13, %v409_v11  ;;  %vm593_vm4 = vcmp.eq.s32.totalorder %v5320_v13, %v403_v12 }
  0x99   : > { %v412_v14 = vpop.permute.xlu1 %411  ;;  %v406_v15 = vpop.permute.xlu0 %405 }
  0x9a   : > { %vm596_vm1 = vcmp.eq.s32.totalorder %v5320_v13, %v412_v14  ;;  %vm594_vm2 = vcmp.eq.s32.totalorder %v5320_v13, %v406_v15 }
  0x9b   : > { %vm4513_vm3 = vmpackc.low %vm596_vm1, %vm595_vm0 }
  0x9c   : > { %vm4511_vm5 = vmpackc.low %vm594_vm2, %vm593_vm4 }
  0x9d   : > { %4707 = vmatprep.mubr.msk.bf16.mxu0 %vm4511_vm5, %v5116_v16  ;;  %v418_v17 = vpop.permute.xlu1 %417  ;;  %v415_v18 = vpop.permute.xlu0 %414 }
  0x9e   : > { %vm598_vm6 = vcmp.eq.s32.totalorder %v5320_v13, %v418_v17  ;;  %4708 = vmatmul.mubr.msk.bf16.vlgmr.msra.gmra.mxu0 %vm4513_vm3, %v5116_v16  ;;  %vm597_vm7 = vcmp.eq.s32.totalorder %v5320_v13, %v415_v18 }
  0x9f   : > { %vm4515_vm8 = vmpackc.low %vm598_vm6, %vm597_vm7 }
  0xa0   : > { %4711 = vmatprep.mubr.msk.bf16.mxu0 %vm4515_vm8, %v5116_v16 }
  0xa1   : > { %v424_v19 = vpop.permute.xlu1 %423  ;;  %v421_v20 = vpop.permute.xlu0 %420 }
  0xa2   : > { %vm600_vm9 = vcmp.eq.s32.totalorder %v5320_v13, %v424_v19  ;;  %vm599_vm10 = vcmp.eq.s32.totalorder %v5320_v13, %v421_v20 }
  0xa3   : > { %vm4517_vm11 = vmpackc.low %vm600_vm9, %vm599_vm10 }
  0xa5   : > { %v430_v21 = vpop.permute.xlu1 %429  ;;  %v427_v22 = vpop.permute.xlu0 %426 }
  0xa6   : > { %vm602_vm12 = vcmp.eq.s32.totalorder %v5320_v13, %v430_v21  ;;  %4712 = vmatmul.mubr.msk.bf16.gmra.mxu0 %vm4517_vm11, %v5116_v16  ;;  %vm601_vm13 = vcmp.eq.s32.totalorder %v5320_v13, %v427_v22 }
  0xa7   : > { %vm4519_vm14 = vmpackc.low %vm602_vm12, %vm601_vm13 }
  0xa8   : > { %4715 = vmatprep.mubr.msk.bf16.mxu0 %vm4519_vm14, %v5116_v16 }
  0xa9   : > { %v436_v23 = vpop.permute.xlu1 %435  ;;  %v433_v24 = vpop.permute.xlu0 %432 }
  0xaa   : > { %vm604_vm15 = vcmp.eq.s32.totalorder %v5320_v13, %v436_v23  ;;  %vm603_vm0 = vcmp.eq.s32.totalorder %v5320_v13, %v433_v24 }
  0xab   : > { %vm4521_vm1 = vmpackc.low %vm604_vm15, %vm603_vm0 }
  0xad   : > { %v442_v25 = vpop.permute.xlu1 %441  ;;  %v439_v26 = vpop.permute.xlu0 %438 }
  0xae   : > { %vm606_vm2 = vcmp.eq.s32.totalorder %v5320_v13, %v442_v25  ;;  %4716 = vmatmul.mubr.msk.bf16.gmra.mxu0 %vm4521_vm1, %v5116_v16  ;;  %vm605_vm3 = vcmp.eq.s32.totalorder %v5320_v13, %v439_v26 }
  0xaf   : > { %vm4523_vm4 = vmpackc.low %vm606_vm2, %vm605_vm3 }
  0xb0   : > { %4719 = vmatprep.mubr.msk.bf16.mxu0 %vm4523_vm4, %v5116_v16 }
  0xb1   : > { %v448_v27 = vpop.permute.xlu1 %447  ;;  %v445_v28 = vpop.permute.xlu0 %444 }
  0xb2   : > { %vm608_vm5 = vcmp.eq.s32.totalorder %v5320_v13, %v448_v27  ;;  %vm607_vm6 = vcmp.eq.s32.totalorder %v5320_v13, %v445_v28 }
  0xb3   : > { %vm4525_vm7 = vmpackc.low %vm608_vm5, %vm607_vm6 }
  0xb5   : > { %v454_v29 = vpop.permute.xlu1 %453  ;;  %v451_v30 = vpop.permute.xlu0 %450 }
  0xb6   : > { %vm610_vm8 = vcmp.eq.s32.totalorder %v5320_v13, %v454_v29  ;;  %4720 = vmatmul.mubr.msk.bf16.gmra.mxu0 %vm4525_vm7, %v5116_v16  ;;  %vm609_vm9 = vcmp.eq.s32.totalorder %v5320_v13, %v451_v30 }
  0xb7   : > { %vm4527_vm10 = vmpackc.low %vm610_vm8, %vm609_vm9 }
  0xb8   : > { %4723 = vmatprep.mubr.msk.bf16.mxu0 %vm4527_vm10, %v5116_v16 }
  0xb9   : > { %v460_v31 = vpop.permute.xlu1 %459  ;;  %v457_v32 = vpop.permute.xlu0 %456 }
  0xba   : > { %vm612_vm11 = vcmp.eq.s32.totalorder %v5320_v13, %v460_v31  ;;  %vm611_vm12 = vcmp.eq.s32.totalorder %v5320_v13, %v457_v32 }
  0xbb   : > { %vm4529_vm13 = vmpackc.low %vm612_vm11, %vm611_vm12 }
  0xbd   : > { %v466_v33 = vpop.permute.xlu1 %465  ;;  %v463_v34 = vpop.permute.xlu0 %462 }
  0xbe   : > { %vm614_vm14 = vcmp.eq.s32.totalorder %v5320_v13, %v466_v33  ;;  %4724 = vmatmul.mubr.msk.bf16.gmra.mxu0 %vm4529_vm13, %v5116_v16  ;;  %vm613_vm15 = vcmp.eq.s32.totalorder %v5320_v13, %v463_v34 }
  0xbf   : > { %vm4531_vm0 = vmpackc.low %vm614_vm14, %vm613_vm15 }
  0xc0   : > { %4727 = vmatprep.mubr.msk.bf16.mxu0 %vm4531_vm0, %v5116_v16 }
  0xc1   : > { %v472_v35 = vpop.permute.xlu1 %471  ;;  %v469_v36 = vpop.permute.xlu0 %468 }
  0xc2   : > { %vm616_vm1 = vcmp.eq.s32.totalorder %v5320_v13, %v472_v35  ;;  %vm615_vm2 = vcmp.eq.s32.totalorder %v5320_v13, %v469_v36 }
  0xc3   : > { %vm4533_vm3 = vmpackc.low %vm616_vm1, %vm615_vm2 }
  0xc5   : > { %v478_v37 = vpop.permute.xlu1 %477  ;;  %v475_v38 = vpop.permute.xlu0 %474 }
  0xc6   : > { %vm618_vm4 = vcmp.eq.s32.totalorder %v5320_v13, %v478_v37  ;;  %4728 = vmatmul.mubr.msk.bf16.gmra.mxu0 %vm4533_vm3, %v5116_v16  ;;  %vm617_vm5 = vcmp.eq.s32.totalorder %v5320_v13, %v475_v38 }
  0xc7   : > { %vm4535_vm6 = vmpackc.low %vm618_vm4, %vm617_vm5 }
  0xc8   : > { %4731 = vmatprep.mubr.msk.bf16.mxu0 %vm4535_vm6, %v5116_v16 }
  0xc9   : > { %v484_v39 = vpop.permute.xlu1 %483  ;;  %v481_v40 = vpop.permute.xlu0 %480 }
  0xca   : > { %vm620_vm7 = vcmp.eq.s32.totalorder %v5320_v13, %v484_v39  ;;  %vm619_vm8 = vcmp.eq.s32.totalorder %v5320_v13, %v481_v40 }
  0xcb   : > { %vm4537_vm9 = vmpackc.low %vm620_vm7, %vm619_vm8 }
  0xcd   : > { %v490_v41 = vpop.permute.xlu1 %489  ;;  %v487_v42 = vpop.permute.xlu0 %486 }
  0xce   : > { %vm622_vm10 = vcmp.eq.s32.totalorder %v5320_v13, %v490_v41  ;;  %4732 = vmatmul.mubr.msk.bf16.gmra.mxu0 %vm4537_vm9, %v5116_v16  ;;  %vm621_vm11 = vcmp.eq.s32.totalorder %v5320_v13, %v487_v42 }
  0xcf   : > { %vm4539_vm12 = vmpackc.low %vm622_vm10, %vm621_vm11 }
  0xd0   : > { %4735 = vmatprep.mubr.msk.bf16.mxu0 %vm4539_vm12, %v5116_v16 }
  0xd1   : > { %v496_v43 = vpop.permute.xlu1 %495  ;;  %v493_v44 = vpop.permute.xlu0 %492 }
  0xd2   : > { %vm624_vm13 = vcmp.eq.s32.totalorder %v5320_v13, %v496_v43  ;;  %vm623_vm14 = vcmp.eq.s32.totalorder %v5320_v13, %v493_v44 }
  0xd3   : > { %vm4541_vm15 = vmpackc.low %vm624_vm13, %vm623_vm14 }
  0xd5   : > { %v502_v45 = vpop.permute.xlu1 %501  ;;  %v499_v46 = vpop.permute.xlu0 %498 }
  0xd6   : > { %vm626_vm0 = vcmp.eq.s32.totalorder %v5320_v13, %v502_v45  ;;  %4736 = vmatmul.mubr.msk.bf16.gmra.mxu0 %vm4541_vm15, %v5116_v16  ;;  %vm625_vm1 = vcmp.eq.s32.totalorder %v5320_v13, %v499_v46 }
  0xd7   : > { %vm4543_vm2 = vmpackc.low %vm626_vm0, %vm625_vm1 }
  0xd8   : > { %4739 = vmatprep.mubr.msk.bf16.mxu0 %vm4543_vm2, %v5116_v16 }
  0xd9   : > { %v508_v47 = vpop.permute.xlu1 %507  ;;  %v505_v48 = vpop.permute.xlu0 %504 }
  0xda   : > { %vm628_vm3 = vcmp.eq.s32.totalorder %v5320_v13, %v508_v47  ;;  %vm627_vm4 = vcmp.eq.s32.totalorder %v5320_v13, %v505_v48 }
  0xdb   : > { %vm4545_vm5 = vmpackc.low %vm628_vm3, %vm627_vm4 }
  0xdd   : > { %v514_v49 = vpop.permute.xlu1 %513  ;;  %v511_v50 = vpop.permute.xlu0 %510 }
  0xde   : > { %vm630_vm6 = vcmp.eq.s32.totalorder %v5320_v13, %v514_v49  ;;  %4740 = vmatmul.mubr.msk.bf16.gmra.mxu0 %vm4545_vm5, %v5116_v16  ;;  %vm629_vm7 = vcmp.eq.s32.totalorder %v5320_v13, %v511_v50 }
  0xdf   : > { %vm4547_vm8 = vmpackc.low %vm630_vm6, %vm629_vm7 }
  0xe0   : > { %4743 = vmatprep.mubr.msk.bf16.mxu0 %vm4547_vm8, %v5116_v16 }
  0xe1   : > { %v520_v51 = vpop.permute.xlu1 %519  ;;  %v517_v52 = vpop.permute.xlu0 %516 }
  0xe2   : > { %vm632_vm9 = vcmp.eq.s32.totalorder %v5320_v13, %v520_v51  ;;  %vm631_vm10 = vcmp.eq.s32.totalorder %v5320_v13, %v517_v52 }
  0xe3   : > { %vm4549_vm11 = vmpackc.low %vm632_vm9, %vm631_vm10 }
  0xe5   : > { %v526_v53 = vpop.permute.xlu1 %525  ;;  %v523_v54 = vpop.permute.xlu0 %522 }
  0xe6   : > { %vm634_vm12 = vcmp.eq.s32.totalorder %v5320_v13, %v526_v53  ;;  %4744 = vmatmul.mubr.msk.bf16.gmra.mxu0 %vm4549_vm11, %v5116_v16  ;;  %vm633_vm13 = vcmp.eq.s32.totalorder %v5320_v13, %v523_v54 }
  0xe7   : > { %vm4551_vm14 = vmpackc.low %vm634_vm12, %vm633_vm13 }
  0xe8   : > { %4747 = vmatprep.mubr.msk.bf16.mxu0 %vm4551_vm14, %v5116_v16 }
  0xe9   : > { %v532_v55 = vpop.permute.xlu1 %531  ;;  %v529_v56 = vpop.permute.xlu0 %528 }
  0xea   : > { %vm636_vm15 = vcmp.eq.s32.totalorder %v5320_v13, %v532_v55  ;;  %vm635_vm0 = vcmp.eq.s32.totalorder %v5320_v13, %v529_v56 }
  0xeb   : > { %vm4553_vm1 = vmpackc.low %vm636_vm15, %vm635_vm0 }
  0xed   : > { %v538_v57 = vpop.permute.xlu1 %537  ;;  %v535_v58 = vpop.permute.xlu0 %534 }
  0xee   : > { %vm638_vm2 = vcmp.eq.s32.totalorder %v5320_v13, %v538_v57  ;;  %4748 = vmatmul.mubr.msk.bf16.gmra.mxu0 %vm4553_vm1, %v5116_v16  ;;  %vm637_vm3 = vcmp.eq.s32.totalorder %v5320_v13, %v535_v58 }
  0xef   : > { %vm4555_vm4 = vmpackc.low %vm638_vm2, %vm637_vm3 }
  0xf0   : > { %4751 = vmatprep.mubr.msk.bf16.mxu0 %vm4555_vm4, %v5116_v16 }
  0xf1   : > { %v544_v59 = vpop.permute.xlu1 %543  ;;  %v541_v60 = vpop.permute.xlu0 %540 }
  0xf2   : > { %vm640_vm5 = vcmp.eq.s32.totalorder %v5320_v13, %v544_v59  ;;  %vm639_vm6 = vcmp.eq.s32.totalorder %v5320_v13, %v541_v60 }
  0xf3   : > { %vm4557_vm7 = vmpackc.low %vm640_vm5, %vm639_vm6 }
  0xf5   : > { %v550_v61 = vpop.permute.xlu1 %549  ;;  %v547_v62 = vpop.permute.xlu0 %546 }
  0xf6   : > { %vm642_vm8 = vcmp.eq.s32.totalorder %v5320_v13, %v550_v61  ;;  %4752 = vmatmul.mubr.msk.bf16.gmra.mxu0 %vm4557_vm7, %v5116_v16  ;;  %vm641_vm9 = vcmp.eq.s32.totalorder %v5320_v13, %v547_v62 }
  0xf7   : > { %vm4559_vm10 = vmpackc.low %vm642_vm8, %vm641_vm9 }
  0xf8   : > { %4755 = vmatprep.mubr.msk.bf16.mxu0 %vm4559_vm10, %v5116_v16 }
  0xf9   : > { %v556_v63 = vpop.permute.xlu1 %555  ;;  %v553_v1 = vpop.permute.xlu0 %552 }
  0xfa   : > { %vm644_vm11 = vcmp.eq.s32.totalorder %v5320_v13, %v556_v63  ;;  %vm643_vm12 = vcmp.eq.s32.totalorder %v5320_v13, %v553_v1 }
  0xfb   : > { %vm4561_vm13 = vmpackc.low %vm644_vm11, %vm643_vm12 }
  0xfd   : > { %v562_v2 = vpop.permute.xlu1 %561  ;;  %v559_v3 = vpop.permute.xlu0 %558 }
  0xfe   : > { %vm646_vm14 = vcmp.eq.s32.totalorder %v5320_v13, %v562_v2  ;;  %4756 = vmatmul.mubr.msk.bf16.gmra.mxu0 %vm4561_vm13, %v5116_v16  ;;  %vm645_vm15 = vcmp.eq.s32.totalorder %v5320_v13, %v559_v3 }
  0xff   : > { %vm4563_vm0 = vmpackc.low %vm646_vm14, %vm645_vm15 }
 0x100   : > { %4759 = vmatprep.mubr.msk.bf16.mxu0 %vm4563_vm0, %v5116_v16  ;;  %vm1106_vm0 = vcmask 261120  }
 0x101   : > { %v568_v4 = vpop.permute.xlu1 %567  ;;  %v565_v5 = vpop.permute.xlu0 %564 }
 0x102   : > { %vm648_vm1 = vcmp.eq.s32.totalorder %v5320_v13, %v568_v4  ;;  %vm647_vm2 = vcmp.eq.s32.totalorder %v5320_v13, %v565_v5 }
 0x103   : > { %vm4565_vm3 = vmpackc.low %vm648_vm1, %vm647_vm2 }
 0x105   : > { %v574_v6 = vpop.permute.xlu1 %573  ;;  %v571_v7 = vpop.permute.xlu0 %570 }
 0x106   : > { %vm650_vm4 = vcmp.eq.s32.totalorder %v5320_v13, %v574_v6  ;;  %4760 = vmatmul.mubr.msk.bf16.gmra.mxu0 %vm4565_vm3, %v5116_v16  ;;  %vm649_vm5 = vcmp.eq.s32.totalorder %v5320_v13, %v571_v7 }
 0x107   : > { %vm4567_vm6 = vmpackc.low %vm650_vm4, %vm649_vm5  ;;  %vm3144_vm5 = vcmask 523264  }
 0x108   : > { %4763 = vmatprep.mubr.msk.bf16.mxu0 %vm4567_vm6, %v5116_v16  ;;  %vm3209_vm6 = vcmask 785408  }
 0x109   : > { %v580_v9 = vpop.permute.xlu1 %579  ;;  %v577_v10 = vpop.permute.xlu0 %576 }
 0x10a   : > { %vm652_vm7 = vcmp.eq.s32.totalorder %v5320_v13, %v580_v9  ;;  %vm651_vm8 = vcmp.eq.s32.totalorder %v5320_v13, %v577_v10 }
 0x10b   : > { %vm4569_vm9 = vmpackc.low %vm652_vm7, %vm651_vm8  ;;  %vm4229_vm7 = vcmask 1041409   ;;  %vm4231_vm8 = vcmask 1042434  }
 0x10d   : > { %v586_v11 = vpop.permute.xlu1 %585  ;;  %v583_v12 = vpop.permute.xlu0 %582 }
 0x10e   : > { %vm654_vm10 = vcmp.eq.s32.totalorder %v5320_v13, %v586_v11  ;;  %4764 = vmatmul.mubr.msk.bf16.gmra.mxu0 %vm4569_vm9, %v5116_v16  ;;  %vm653_vm11 = vcmp.eq.s32.totalorder %v5320_v13, %v583_v12  ;;  %vm4233_vm9 = vcmask 1043459  }
 0x10f   : > { %vm4571_vm12 = vmpackc.low %vm654_vm10, %vm653_vm11  ;;  %vm4235_vm10 = vcmask 1044484   ;;  %vm4237_vm11 = vcmask 1045509  }
 0x110   : > { %4767 = vmatprep.mubr.msk.bf16.mxu0 %vm4571_vm12, %v5116_v16  ;;  %vm4239_vm12 = vcmask 1046534  }
 0x111   : > { %v592_v14 = vpop.permute.xlu1 %591  ;;  %v589_v15 = vpop.permute.xlu0 %588 }
 0x112   : > { %vm656_vm13 = vcmp.eq.s32.totalorder %v5320_v13, %v592_v14  ;;  %vm655_vm14 = vcmp.eq.s32.totalorder %v5320_v13, %v589_v15 }
 0x113   : > { %vm4573_vm15 = vmpackc.low %vm656_vm13, %vm655_vm14  ;;  %vm4241_vm13 = vcmask 1047559  }
 0x116   : > { %4768 = vmatmul.mubr.msk.bf16.gmra.mxu0 %vm4573_vm15, %v5116_v16 }
 0x15e   : > { %v5418_v17 = vpop.f32.mrf.mxu0 }
 0x15f   : > { %v1113_v18 = vsel %vm1106_vm0, %v5418_v17, 0.0 }
 0x160   : > { %1114 = vadd.xlane.f32.xlu1 %v1113_v18  ;;  %v5422_v19 = vpop.f32.mrf.mxu0 }
 0x161   : > { %v1107_v21 = vsel %vm1106_vm0, %v5422_v19, 0.0 }
 0x162   : > { %v5424_v20 = vpop.f32.mrf.mxu0 }
 0x163   : > { %v1116_v13 = vsel %vm1106_vm0, %v5424_v20, 0.0 }
 0x164   : > { %1108 = vadd.xlane.f32.xlu1 %v1107_v21  ;;  %1117 = vadd.xlane.f32.xlu0 %v1116_v13  ;;  %v5430_v16 = vpop.f32.mrf.mxu0 }
 0x165   : > { %v1110_v23 = vsel %vm1106_vm0, %v5430_v16, 0.0 }
 0x166   : > { %v5432_v22 = vpop.f32.mrf.mxu0 }
 0x167   : > { %v1125_v24 = vsel %vm1106_vm0, %v5432_v22, 0.0 }
 0x168   : > { %1111 = vadd.xlane.f32.xlu0 %v1110_v23  ;;  %1126 = vadd.xlane.f32.xlu1 %v1125_v24  ;;  %v5438_v25 = vpop.f32.mrf.mxu0 }
 0x169   : > { %v1119_v27 = vsel %vm1106_vm0, %v5438_v25, 0.0 }
 0x16a   : > { %v5440_v26 = vpop.f32.mrf.mxu0 }
 0x16b   : > { %v1128_v28 = vsel %vm1106_vm0, %v5440_v26, 0.0 }
 0x16c   : > { %1120 = vadd.xlane.f32.xlu1 %v1119_v27  ;;  %1129 = vadd.xlane.f32.xlu0 %v1128_v28  ;;  %v5446_v29 = vpop.f32.mrf.mxu0 }
 0x16d   : > { %v1122_v31 = vsel %vm1106_vm0, %v5446_v29, 0.0 }
 0x16e   : > { %v5448_v30 = vpop.f32.mrf.mxu0 }
 0x16f   : > { %v1137_v32 = vsel %vm1106_vm0, %v5448_v30, 0.0 }
 0x170   : > { %1123 = vadd.xlane.f32.xlu0 %v1122_v31  ;;  %1138 = vadd.xlane.f32.xlu1 %v1137_v32  ;;  %v5454_v33 = vpop.f32.mrf.mxu0 }
 0x171   : > { %v1131_v35 = vsel %vm1106_vm0, %v5454_v33, 0.0 }
 0x172   : > { %v5456_v34 = vpop.f32.mrf.mxu0 }
 0x173   : > { %v1140_v36 = vsel %vm1106_vm0, %v5456_v34, 0.0 }
 0x174   : > { %1132 = vadd.xlane.f32.xlu1 %v1131_v35  ;;  %1141 = vadd.xlane.f32.xlu0 %v1140_v36  ;;  %v5462_v37 = vpop.f32.mrf.mxu0 }
 0x175   : > { %v1134_v39 = vsel %vm1106_vm0, %v5462_v37, 0.0 }
 0x176   : > { %v5464_v38 = vpop.f32.mrf.mxu0 }
 0x177   : > { %8685 = vst [vmem:[#allocation5_spill] sm:$0xff] %v5464_v38  ;;  %v1149_v40 = vsel %vm1106_vm0, %v5464_v38, 0.0 }
 0x178   : > { %1135 = vadd.xlane.f32.xlu0 %v1134_v39  ;;  %1150 = vadd.xlane.f32.xlu1 %v1149_v40  ;;  %v5470_v41 = vpop.f32.mrf.mxu0 }
 0x179   : > { %v1143_v43 = vsel %vm1106_vm0, %v5470_v41, 0.0 }
 0x17a   : > { %v5472_v42 = vpop.f32.mrf.mxu0 }
 0x17b   : > { %8686 = vst [vmem:[#allocation6_spill] sm:$0xff] %v5472_v42  ;;  %v1152_v44 = vsel %vm1106_vm0, %v5472_v42, 0.0 }
 0x17c   : > { %1144 = vadd.xlane.f32.xlu1 %v1143_v43  ;;  %1153 = vadd.xlane.f32.xlu0 %v1152_v44  ;;  %v5478_v45 = vpop.f32.mrf.mxu0 }
 0x17d   : > { %8687 = vst [vmem:[#allocation7_spill] sm:$0xff] %v5478_v45  ;;  %v1146_v47 = vsel %vm1106_vm0, %v5478_v45, 0.0 }
 0x17e   : > { %v5480_v46 = vpop.f32.mrf.mxu0 }
 0x17f   : > { %v1161_v51 = vsel %vm1106_vm0, %v5480_v46, 0.0 }
 0x180   : > { %1147 = vadd.xlane.f32.xlu0 %v1146_v47  ;;  %v5484_v48 = vpop.f32.mrf.mxu0 }
 0x181   : > { %8688 = vst [vmem:[#allocation8_spill] sm:$0xff] %v5484_v48  ;;  %v1155_v49 = vsel %vm1106_vm0, %v5484_v48, 0.0 }
 0x182   : > { %1156 = vadd.xlane.f32.xlu1 %v1155_v49  ;;  %v5488_v50 = vpop.f32.mrf.mxu0 }
 0x183   : > { %v1164_v53 = vsel %vm1106_vm0, %v5488_v50, 0.0 }
 0x184   : > { %1162 = vadd.xlane.f32.xlu0 %v1161_v51  ;;  %v5492_v52 = vpop.f32.mrf.mxu0 }
 0x185   : > { %8689 = vst [vmem:[#allocation9_spill] sm:$0xff] %v5492_v52  ;;  %v1158_v55 = vsel %vm1106_vm0, %v5492_v52, 0.0 }
 0x186   : > { %1165 = vadd.xlane.f32.xlu1 %v1164_v53  ;;  %v5496_v54 = vpop.f32.mrf.mxu0 }
 0x187   : > { %v1173_v57 = vsel %vm1106_vm0, %v5496_v54, 0.0 }
 0x188   : > { %1159 = vadd.xlane.f32.xlu0 %v1158_v55  ;;  %v5500_v56 = vpop.f32.mrf.mxu0 }
 0x189   : > { %v1167_v59 = vsel %vm1106_vm0, %v5500_v56, 0.0 }
 0x18a   : > { %1174 = vadd.xlane.f32.xlu1 %v1173_v57  ;;  %v5504_v58 = vpop.f32.mrf.mxu0 }
 0x18b   : > { %v1176_v62 = vsel %vm1106_vm0, %v5504_v58, 0.0 }
 0x18c   : > { %1168 = vadd.xlane.f32.xlu0 %v1167_v59  ;;  %v5508_v60 = vpop.f32.mrf.mxu0 }
 0x18d   : > { %v1170_v3 = vsel %vm1106_vm0, %v5508_v60, 0.0 }
 0x18e   : > { %v5510_v61 = vpop.f32.mrf.mxu0 }
 0x18f   : > { %v1185_v63 = vsel %vm1106_vm0, %v5510_v61, 0.0 }
 0x190   : > { %1177 = vadd.xlane.f32.xlu0 %v1176_v62  ;;  %1186 = vadd.xlane.f32.xlu1 %v1185_v63  ;;  %v5516_v1 = vpop.f32.mrf.mxu0 }
 0x191   : > { %v1179_v4 = vsel %vm1106_vm0, %v5516_v1, 0.0 }
 0x192   : > { %v5518_v2 = vpop.f32.mrf.mxu0 }
 0x193   : > { %v1188_v7 = vsel %vm1106_vm0, %v5518_v2, 0.0 }
 0x194   : > { %1171 = vadd.xlane.f32.xlu0 %v1170_v3  ;;  %1180 = vadd.xlane.f32.xlu1 %v1179_v4  ;;  %v5524_v5 = vpop.f32.mrf.mxu0 }
 0x195   : > { %v1182_v12 = vsel %vm1106_vm0, %v5524_v5, 0.0 }
 0x196   : > { %v5526_v6 = vpop.f32.mrf.mxu0 }
 0x197   : > { %v1197_v9 = vsel %vm1106_vm0, %v5526_v6, 0.0 }
 0x198   : > { %1189 = vadd.xlane.f32.xlu0 %v1188_v7  ;;  %1198 = vadd.xlane.f32.xlu1 %v1197_v9  ;;  %v5532_v10 = vpop.f32.mrf.mxu0 }
 0x199   : > { %v1191_v14 = vsel %vm1106_vm0, %v5532_v10, 0.0 }
 0x19a   : > { %v5534_v11 = vpop.f32.mrf.mxu0 }
 0x19b   : > { %v1200_v21 = vsel %vm1106_vm0, %v5534_v11, 0.0 }
 0x19c   : > { %1183 = vadd.xlane.f32.xlu0 %v1182_v12  ;;  %1192 = vadd.xlane.f32.xlu1 %v1191_v14  ;;  %v5540_v15 = vpop.f32.mrf.mxu0 }
 0x19d   : > { %v1194_v27 = vsel %vm1106_vm0, %v5540_v15, 0.0 }
 0x19e   : > { %v5542_v18 = vpop.f32.mrf.mxu0 }
 0x19f   : > { %v1209_v13 = vsel %vm1106_vm0, %v5542_v18, 0.0 }
 0x1a0   : > { %1201 = vadd.xlane.f32.xlu0 %v1200_v21  ;;  %1210 = vadd.xlane.f32.xlu1 %v1209_v13  ;;  %v5548_v23 = vpop.f32.mrf.mxu0 }
 0x1a1   : > { %v1203_v28 = vsel %vm1106_vm0, %v5548_v23, 0.0 }
 0x1a2   : > { %v5550_v24 = vpop.f32.mrf.mxu0 }
 0x1a3   : > { %v1212_v35 = vsel %vm1106_vm0, %v5550_v24, 0.0 }
 0x1a4   : > { %1195 = vadd.xlane.f32.xlu0 %v1194_v27  ;;  %1204 = vadd.xlane.f32.xlu1 %v1203_v28  ;;  %v5556_v31 = vpop.f32.mrf.mxu0 }
 0x1a5   : > { %v1206_v43 = vsel %vm1106_vm0, %v5556_v31, 0.0 }
 0x1a6   : > { %v5558_v32 = vpop.f32.mrf.mxu0 }
 0x1a7   : > { %v1221_v36 = vsel %vm1106_vm0, %v5558_v32, 0.0 }
 0x1a8   : > { %1213 = vadd.xlane.f32.xlu0 %v1212_v35  ;;  %1222 = vadd.xlane.f32.xlu1 %v1221_v36  ;;  %v5564_v39 = vpop.f32.mrf.mxu0 }
 0x1a9   : > { %v1215_v44 = vsel %vm1106_vm0, %v5564_v39, 0.0 }
 0x1aa   : > { %v5566_v40 = vpop.f32.mrf.mxu0 }
 0x1ab   : > { %v1224_v51 = vsel %vm1106_vm0, %v5566_v40, 0.0 }
 0x1ac   : > { %1207 = vadd.xlane.f32.xlu0 %v1206_v43  ;;  %1216 = vadd.xlane.f32.xlu1 %v1215_v44  ;;  %v5572_v47 = vpop.f32.mrf.mxu0 }
 0x1ad   : > { %v1218_v53 = vsel %vm1106_vm0, %v5572_v47, 0.0 }
 0x1ae   : > { %v5574_v49 = vpop.f32.mrf.mxu0 }
 0x1af   : > { %v1233_v59 = vsel %vm1106_vm0, %v5574_v49, 0.0 }
 0x1b0   : > { %1225 = vadd.xlane.f32.xlu1 %v1224_v51  ;;  %1219 = vadd.xlane.f32.xlu0 %v1218_v53  ;;  %v5580_v55 = vpop.f32.mrf.mxu0 }
 0x1b1   : > { %v1227_v4 = vsel %vm1106_vm0, %v5580_v55, 0.0 }
 0x1b2   : > { %v5582_v57 = vpop.f32.mrf.mxu0 }
 0x1b3   : > { %v1236_v62 = vsel %vm1106_vm0, %v5582_v57, 0.0 }
 0x1b4   : > { %1234 = vadd.xlane.f32.xlu0 %v1233_v59  ;;  %1237 = vadd.xlane.f32.xlu1 %v1236_v62  ;;  %v5588_v63 = vpop.f32.mrf.mxu0 }
 0x1b5   : > { %v1230_v7 = vsel %vm1106_vm0, %v5588_v63, 0.0 }
 0x1b6   : > { %v5590_v3 = vpop.f32.mrf.mxu0 }
 0x1b7   : > { %v1245_v14 = vsel %vm1106_vm0, %v5590_v3, 0.0 }
 0x1b8   : > { %1228 = vadd.xlane.f32.xlu0 %v1227_v4  ;;  %1231 = vadd.xlane.f32.xlu1 %v1230_v7  ;;  %v5596_v9 = vpop.f32.mrf.mxu0 }
 0x1b9   : > { %v1239_v28 = vsel %vm1106_vm0, %v5596_v9, 0.0 }
 0x1ba   : > { %v5598_v12 = vpop.f32.mrf.mxu0 }
 0x1bb   : > { %v1248_v44 = vsel %vm1106_vm0, %v5598_v12, 0.0 }
 0x1bc   : > { %1246 = vadd.xlane.f32.xlu0 %v1245_v14  ;;  %v5602_v21 = vpop.f32.mrf.mxu0 }
 0x1bd   : > { %v1242_v13 = vsel %vm1106_vm0, %v5602_v21, 0.0 }
 0x1be   : > { %1243 = vadd.xlane.f32.xlu1 %v1242_v13  ;;  %v5606_v27 = vpop.f32.mrf.mxu0 }
 0x1bf   : > { %v1257_v36 = vsel %vm1106_vm0, %v5606_v27, 0.0 }
 0x1c0   : > { %1240 = vadd.xlane.f32.xlu0 %v1239_v28  ;;  %v5610_v35 = vpop.f32.mrf.mxu0 }
 0x1c1   : > { %v1251_v53 = vsel %vm1106_vm0, %v5610_v35, 0.0 }
 0x1c2   : > { %1258 = vadd.xlane.f32.xlu1 %v1257_v36  ;;  %v5614_v43 = vpop.f32.mrf.mxu0 }
 0x1c3   : > { %v1260_v62 = vsel %vm1106_vm0, %v5614_v43, 0.0 }
 0x1c4   : > { %1249 = vadd.xlane.f32.xlu0 %v1248_v44  ;;  %v5618_v51 = vpop.f32.mrf.mxu0 }
 0x1c5   : > { %v1254_v13 = vsel %vm1106_vm0, %v5618_v51, 0.0 }
 0x1c6   : > { %1252 = vadd.xlane.f32.xlu1 %v1251_v53  ;;  %v5622_v59 = vpop.f32.mrf.mxu0 }
 0x1c7   : > { %v1269_v7 = vsel %vm1106_vm0, %v5622_v59, 0.0 }
 0x1c8   : > { %1261 = vadd.xlane.f32.xlu0 %v1260_v62  ;;  %v5626_v4 = vpop.f32.mrf.mxu0 }
 0x1c9   : > { %v1263_v36 = vsel %vm1106_vm0, %v5626_v4, 0.0 }
 0x1ca   : > { %1270 = vadd.xlane.f32.xlu1 %v1269_v7  ;;  %v5630_v14 = vpop.f32.mrf.mxu0 }
 0x1cb   : > { %v1272_v53 = vsel %vm1106_vm0, %v5630_v14, 0.0 }
 0x1cc   : > { %1255 = vadd.xlane.f32.xlu0 %v1254_v13  ;;  %v5634_v28 = vpop.f32.mrf.mxu0 }
 0x1cd   : > { %v1266_v13 = vsel %vm1106_vm0, %v5634_v28, 0.0 }
 0x1ce   : > { %1264 = vadd.xlane.f32.xlu1 %v1263_v36  ;;  %v5638_v44 = vpop.f32.mrf.mxu0 }
 0x1cf   : > { %8690 = vst [vmem:[#allocation10_spill] sm:$0xff] %v5638_v44  ;;  %v1281_v7 = vsel %vm1106_vm0, %v5638_v44, 0.0 }
 0x1d0   : > { %1273 = vadd.xlane.f32.xlu0 %v1272_v53  ;;  %v5642_v62 = vpop.f32.mrf.mxu0 }
 0x1d1   : > { %8691 = vst [vmem:[#allocation11_spill] sm:$0xff] %v5642_v62  ;;  %v1275_v36 = vsel %vm1106_vm0, %v5642_v62, 0.0 }
 0x1d2   : > { %1282 = vadd.xlane.f32.xlu1 %v1281_v7  ;;  %v5646_v8 = vpop.f32.mrf.mxu0 }
 0x1d3   : > { %8692 = vst [vmem:[#allocation12_spill] sm:$0xff] %v5646_v8  ;;  %v1284_v53 = vsel %vm1106_vm0, %v5646_v8, 0.0 }
 0x1d4   : > { %1267 = vadd.xlane.f32.xlu0 %v1266_v13  ;;  %v5650_v0 = vpop.f32.mrf.mxu0 }
 0x1d5   : > { %8693 = vst [vmem:[#allocation13_spill] sm:$0xff] %v5650_v0  ;;  %v1278_v13 = vsel %vm1106_vm0, %v5650_v0, 0.0 }
 0x1d6   : > { %1276 = vadd.xlane.f32.xlu1 %v1275_v36  ;;  %v5654_v52 = vpop.f32.mrf.mxu0 }
 0x1d7   : > { %8694 = vst [vmem:[#allocation14_spill] sm:$0xff] %v5654_v52  ;;  %v1293_v7 = vsel %vm1106_vm0, %v5654_v52, 0.0 }
 0x1d8   : > { %1285 = vadd.xlane.f32.xlu0 %v1284_v53  ;;  %v5658_v48 = vpop.f32.mrf.mxu0 }
 0x1d9   : > { %8695 = vst [vmem:[#allocation15_spill] sm:$0xff] %v5658_v48  ;;  %v1287_v36 = vsel %vm1106_vm0, %v5658_v48, 0.0 }
 0x1da   : > { %1294 = vadd.xlane.f32.xlu1 %v1293_v7  ;;  %v5662_v42 = vpop.f32.mrf.mxu0 }
 0x1db   : > { %8696 = vst [vmem:[#allocation16_spill] sm:$0xff] %v5662_v42  ;;  %v1296_v52 = vsel %vm1106_vm0, %v5662_v42, 0.0 }
 0x1dc   : > { %1279 = vadd.xlane.f32.xlu0 %v1278_v13  ;;  %v5666_v38 = vpop.f32.mrf.mxu0 }
 0x1dd   : > { %8697 = vst [vmem:[#allocation17_spill] sm:$0xff] %v5666_v38  ;;  %v1290_v53 = vsel %vm1106_vm0, %v5666_v38, 0.0 }
 0x1de   : > { %1288 = vadd.xlane.f32.xlu1 %v1287_v36 }
 0x1e0   : > { %1291 = vadd.xlane.f32.xlu0 %v1290_v53 }
 0x1e2   : > { %1297 = vadd.xlane.f32.xlu1 %v1296_v52 }
 0x1e9   : > { %v1115_v7 = vpop.xlane.xlu1 %1114 }
 0x1ea   : > { %v1302_v8 = vmul.f32 0.03125, %v1115_v7 }
 0x1ec   : > { %v5675_v45 = vsub.f32 %v5418_v17, %v1302_v8 }
 0x1ed   : > { %v1109_v13 = vpop.xlane.xlu1 %1108  ;;  %v1118_v0 = vpop.xlane.xlu0 %1117 }
 0x1ee   : > { %v1300_v44 = vmul.f32 0.03125, %v1109_v13  ;;  %v1303_v62 = vmul.f32 0.03125, %v1118_v0  ;;  %v1430_v36 = vmul.f32 %v5675_v45, %v5675_v45 }
 0x1f0   : > { %v5680_v48 = vsub.f32 %v5422_v19, %v1300_v44  ;;  %v5683_v53 = vsub.f32 %v5424_v20, %v1303_v62  ;;  %v1498_v52 = vsel %vm1106_vm0, %v1430_v36, 0.0 }
 0x1f1   : > { %v1127_v42 = vpop.xlane.xlu1 %1126  ;;  %1499 = vadd.xlane.f32.xlu1 %v1498_v52  ;;  %v1112_v7 = vpop.xlane.xlu0 %1111 }
 0x1f2   : > { %8698 = vst [vmem:[#allocation18_spill] sm:$0xff] %v5683_v53  ;;  %v1306_v8 = vmul.f32 0.03125, %v1127_v42  ;;  %v1301_v17 = vmul.f32 0.03125, %v1112_v7  ;;  %v1428_v13 = vmul.f32 %v5680_v48, %v5680_v48  ;;  %v1431_v20 = vmul.f32 %v5683_v53, %v5683_v53 }
 0x1f4   : > { %v5689_v0 = vsub.f32 %v5432_v22, %v1306_v8  ;;  %v5692_v38 = vsub.f32 %v5430_v16, %v1301_v17  ;;  %v1492_v19 = vsel %vm1106_vm0, %v1428_v13, 0.0  ;;  %v1501_v16 = vsel %vm1106_vm0, %v1431_v20, 0.0 }
 0x1f5   : > { %v1121_v44 = vpop.xlane.xlu1 %1120  ;;  %1493 = vadd.xlane.f32.xlu0 %v1492_v19  ;;  %v1130_v62 = vpop.xlane.xlu0 %1129 }
 0x1f6   : > { %8699 = vst [vmem:[#allocation19_spill] sm:$0xff] %v5689_v0  ;;  %v1304_v36 = vmul.f32 0.03125, %v1121_v44  ;;  %v1434_v42 = vmul.f32 %v5689_v0, %v5689_v0  ;;  %v1307_v52 = vmul.f32 0.03125, %v1130_v62  ;;  %v1429_v8 = vmul.f32 %v5692_v38, %v5692_v38 }
 0x1f8   : > { %v5700_v7 = vsub.f32 %v5438_v25, %v1304_v36  ;;  %v1510_v22 = vsel %vm1106_vm0, %v1434_v42, 0.0  ;;  %v5707_v44 = vsub.f32 %v5440_v26, %v1307_v52  ;;  %v1495_v36 = vsel %vm1106_vm0, %v1429_v8, 0.0 }
 0x1f9   : > { %v1139_v17 = vpop.xlane.xlu1 %1138  ;;  %1511 = vadd.xlane.f32.xlu1 %v1510_v22  ;;  %1502 = vadd.xlane.f32.xlu0 %v1501_v16  ;;  %v1124_v13 = vpop.xlane.xlu0 %1123 }
 0x1fa   : > { %8700 = vst [vmem:[#allocation20_spill] sm:$0xff] %v5700_v7  ;;  %v1310_v19 = vmul.f32 0.03125, %v1139_v17  ;;  %8701 = vst [vmem:[#allocation21_spill] sm:$0xff] %v5707_v44  ;;  %v1305_v25 = vmul.f32 0.03125, %v1124_v13  ;;  %v1432_v20 = vmul.f32 %v5700_v7, %v5700_v7  ;;  %v1435_v16 = vmul.f32 %v5707_v44, %v5707_v44 }
 0x1fc   : > { %v5710_v62 = vsub.f32 %v5448_v30, %v1310_v19  ;;  %v5720_v26 = vsub.f32 %v5446_v29, %v1305_v25  ;;  %v1504_v8 = vsel %vm1106_vm0, %v1432_v20, 0.0 }
 0x1fd   : > { %v1133_v42 = vpop.xlane.xlu1 %1132  ;;  %1496 = vadd.xlane.f32.xlu0 %v1495_v36  ;;  %v1142_v53 = vpop.xlane.xlu0 %1141 }
 0x1fe   : > { %8702 = vst [vmem:[#allocation22_spill] sm:$0xff] %v5710_v62  ;;  %v1438_v22 = vmul.f32 %v5710_v62, %v5710_v62  ;;  %8703 = vst [vmem:[#allocation23_spill] sm:$0xff] %v5720_v26  ;;  %v1308_v30 = vmul.f32 0.03125, %v1133_v42  ;;  %v1311_v36 = vmul.f32 0.03125, %v1142_v53  ;;  %v1513_v62 = vsel %vm1106_vm0, %v1435_v16, 0.0 }
 0x1ff   : > { %v1433_v29 = vmul.f32 %v5720_v26, %v5720_v26 }
 0x200   : > { %v1522_v52 = vsel %vm1106_vm0, %v1438_v22, 0.0  ;;  %v5727_v19 = vsub.f32 %v5454_v33, %v1308_v30  ;;  %v5735_v20 = vsub.f32 %v5456_v34, %v1311_v36 }
 0x201   : > { %v5724_v17 = vpop.xlane.xlu1 %1150  ;;  %1523 = vadd.xlane.f32.xlu1 %v1522_v52  ;;  %1505 = vadd.xlane.f32.xlu0 %v1504_v8  ;;  %v1136_v13 = vpop.xlane.xlu0 %1135  ;;  %v1507_v52 = vsel %vm1106_vm0, %v1433_v29, 0.0 }
 0x202   : > { %8704 = vst [vmem:[#allocation24_spill] sm:$0xff] %v5727_v19  ;;  %v1309_v42 = vmul.f32 0.03125, %v1136_v13  ;;  %8705 = vst [vmem:[#allocation25_spill] sm:$0xff] %v5735_v20  ;;  %v1436_v33 = vmul.f32 %v5727_v19, %v5727_v19  ;;  %v1439_v34 = vmul.f32 %v5735_v20, %v5735_v20 }
 0x204   : > { %v5743_v16 = vsub.f32 %v5462_v37, %v1309_v42  ;;  %v1516_v8 = vsel %vm1106_vm0, %v1436_v33, 0.0  ;;  %v1525_v42 = vsel %vm1106_vm0, %v1439_v34, 0.0 }
 0x205   : > { %1514 = vadd.xlane.f32.xlu0 %v1513_v62  ;;  %v5732_v25 = vpop.xlane.xlu0 %1153  ;;  %v1145_v22 = vpop.xlane.xlu1 %1144 }
 0x206   : > { %8706 = vst [vmem:[#allocation26_spill] sm:$0xff] %v5743_v16  ;;  %v1312_v62 = vmul.f32 0.03125, %v1145_v22  ;;  %v1437_v29 = vmul.f32 %v5743_v16, %v5743_v16 }
 0x209   : > { %1508 = vadd.xlane.f32.xlu0 %v1507_v52  ;;  %v5740_v53 = vpop.xlane.xlu0 %1147  ;;  %v5753_v52 = vsub.f32 %v5470_v41, %v1312_v62 }
 0x20b   : > { %v5745_v30 = vpop.xlane.xlu1 %1156  ;;  %8707 = vst [vmem:[#allocation27_spill] sm:$0xff] %v5753_v52  ;;  %v1440_v62 = vmul.f32 %v5753_v52, %v5753_v52 }
 0x20d   : > { %1517 = vadd.xlane.f32.xlu0 %v1516_v8  ;;  %v1163_v13 = vpop.xlane.xlu0 %1162  ;;  %v1519_v8 = vsel %vm1106_vm0, %v1437_v29, 0.0  ;;  %v1528_v29 = vsel %vm1106_vm0, %v1440_v62, 0.0 }
 0x20e   : > { %v1318_v19 = vmul.f32 0.03125, %v1163_v13 }
 0x20f   : > { %v1166_v36 = vpop.xlane.xlu1 %1165 }
 0x210   : > { %v1319_v37 = vmul.f32 0.03125, %v1166_v36  ;;  %v5763_v44 = vsub.f32 %v5480_v46, %v1318_v19 }
 0x211   : > { %1526 = vadd.xlane.f32.xlu0 %v1525_v42  ;;  %v5756_v22 = vpop.xlane.xlu0 %1159 }
 0x212   : > { %8708 = vst [vmem:[#allocation28_spill] sm:$0xff] %v5756_v22  ;;  %v5759_v33 = vsub.f32 %v5488_v50, %v1319_v37  ;;  %v1446_v46 = vmul.f32 %v5763_v44, %v5763_v44 }
 0x213   : > { %v1175_v20 = vpop.xlane.xlu1 %1174 }
 0x214   : > { %v1322_v16 = vmul.f32 0.03125, %v1175_v20  ;;  %v1447_v41 = vmul.f32 %v5759_v33, %v5759_v33 }
 0x215   : > { %1520 = vadd.xlane.f32.xlu0 %v1519_v8  ;;  %v1169_v34 = vpop.xlane.xlu0 %1168 }
 0x216   : > { %v1549_v13 = vsel %vm1106_vm0, %v1447_v41, 0.0  ;;  %v1320_v36 = vmul.f32 0.03125, %v1169_v34  ;;  %v5771_v50 = vsub.f32 %v5496_v54, %v1322_v16  ;;  %v1546_v34 = vsel %vm1106_vm0, %v1446_v46, 0.0 }
 0x217   : > { %1550 = vadd.xlane.f32.xlu1 %v1549_v13 }
 0x218   : > { %v5777_v42 = vsub.f32 %v5500_v56, %v1320_v36  ;;  %v1450_v54 = vmul.f32 %v5771_v50, %v5771_v50 }
 0x219   : > { %v1187_v19 = vpop.xlane.xlu1 %1186  ;;  %1529 = vadd.xlane.f32.xlu0 %v1528_v29  ;;  %v1178_v20 = vpop.xlane.xlu0 %1177 }
 0x21a   : > { %v1323_v37 = vmul.f32 0.03125, %v1178_v20  ;;  %v1326_v8 = vmul.f32 0.03125, %v1187_v19  ;;  %v1448_v56 = vmul.f32 %v5777_v42, %v5777_v42  ;;  %v1558_v46 = vsel %vm1106_vm0, %v1450_v54, 0.0 }
 0x21c   : > { %v5780_v41 = vsub.f32 %v5504_v58, %v1323_v37  ;;  %v5790_v36 = vsub.f32 %v5510_v61, %v1326_v8  ;;  %v1552_v61 = vsel %vm1106_vm0, %v1448_v56, 0.0 }
 0x21d   : > { %v1181_v16 = vpop.xlane.xlu1 %1180  ;;  %1547 = vadd.xlane.f32.xlu0 %v1546_v34  ;;  %v1172_v62 = vpop.xlane.xlu0 %1171 }
 0x21e   : > { %v1321_v13 = vmul.f32 0.03125, %v1172_v62  ;;  %v1451_v29 = vmul.f32 %v5780_v41, %v5780_v41  ;;  %v1324_v20 = vmul.f32 0.03125, %v1181_v16  ;;  %v1454_v54 = vmul.f32 %v5790_v36, %v5790_v36 }
 0x220   : > { %v5793_v58 = vsub.f32 %v5508_v60, %v1321_v13  ;;  %v1561_v19 = vsel %vm1106_vm0, %v1451_v29, 0.0  ;;  %v5800_v62 = vsub.f32 %v5516_v1, %v1324_v20 }
 0x221   : > { %v1199_v37 = vpop.xlane.xlu1 %1198  ;;  %1559 = vadd.xlane.f32.xlu0 %v1558_v46  ;;  %1562 = vadd.xlane.f32.xlu1 %v1561_v19  ;;  %v1190_v34 = vpop.xlane.xlu0 %1189 }
 0x222   : > { %v1449_v16 = vmul.f32 %v5793_v58, %v5793_v58  ;;  %v1330_v8 = vmul.f32 0.03125, %v1199_v37  ;;  %v1327_v52 = vmul.f32 0.03125, %v1190_v34  ;;  %v1452_v26 = vmul.f32 %v5800_v62, %v5800_v62 }
 0x223   : > { %v1570_v37 = vsel %vm1106_vm0, %v1454_v54, 0.0 }
 0x224   : > { %v1555_v60 = vsel %vm1106_vm0, %v1449_v16, 0.0  ;;  %v5809_v1 = vsub.f32 %v5526_v6, %v1330_v8  ;;  %v5812_v20 = vsub.f32 %v5518_v2, %v1327_v52  ;;  %v1564_v8 = vsel %vm1106_vm0, %v1452_v26, 0.0 }
 0x225   : > { %v1193_v13 = vpop.xlane.xlu1 %1192  ;;  %1553 = vadd.xlane.f32.xlu0 %v1552_v61  ;;  %1556 = vadd.xlane.f32.xlu1 %v1555_v60  ;;  %v1184_v29 = vpop.xlane.xlu0 %1183 }
 0x226   : > { %v1325_v46 = vmul.f32 0.03125, %v1184_v29  ;;  %v1328_v19 = vmul.f32 0.03125, %v1193_v13  ;;  %v1455_v52 = vmul.f32 %v5812_v20, %v5812_v20  ;;  %v1458_v54 = vmul.f32 %v5809_v1, %v5809_v1 }
 0x228   : > { %v5815_v56 = vsub.f32 %v5524_v5, %v1325_v46  ;;  %v5821_v13 = vsub.f32 %v5532_v10, %v1328_v19 }
 0x229   : > { %v1211_v34 = vpop.xlane.xlu1 %1210  ;;  %1571 = vadd.xlane.f32.xlu0 %v1570_v37  ;;  %v1202_v16 = vpop.xlane.xlu0 %1201 }
 0x22a   : > { %v1331_v61 = vmul.f32 0.03125, %v1202_v16  ;;  %v1453_v60 = vmul.f32 %v5815_v56, %v5815_v56  ;;  %v1334_v6 = vmul.f32 0.03125, %v1211_v34  ;;  %v1573_v34 = vsel %vm1106_vm0, %v1455_v52, 0.0 }
 0x22b   : > { %v1582_v16 = vsel %vm1106_vm0, %v1458_v54, 0.0 }
 0x22c   : > { %v5825_v2 = vsub.f32 %v5534_v11, %v1331_v61  ;;  %v1567_v5 = vsel %vm1106_vm0, %v1453_v60, 0.0  ;;  %v5833_v19 = vsub.f32 %v5542_v18, %v1334_v6  ;;  %v1456_v11 = vmul.f32 %v5821_v13, %v5821_v13 }
 0x22d   : > { %v1205_v29 = vpop.xlane.xlu1 %1204  ;;  %1565 = vadd.xlane.f32.xlu0 %v1564_v8  ;;  %1568 = vadd.xlane.f32.xlu1 %v1567_v5  ;;  %v1196_v46 = vpop.xlane.xlu0 %1195 }
 0x22e   : > { %v1329_v10 = vmul.f32 0.03125, %v1196_v46  ;;  %v1332_v26 = vmul.f32 0.03125, %v1205_v29  ;;  %v1459_v61 = vmul.f32 %v5825_v2, %v5825_v2  ;;  %v1576_v5 = vsel %vm1106_vm0, %v1456_v11, 0.0 }
 0x230   : > { %v5838_v37 = vsub.f32 %v5540_v15, %v1329_v10  ;;  %v5845_v6 = vsub.f32 %v5548_v23, %v1332_v26  ;;  %v1462_v15 = vmul.f32 %v5833_v19, %v5833_v19  ;;  %v1585_v54 = vsel %vm1106_vm0, %v1459_v61, 0.0 }
 0x231   : > { %v1223_v60 = vpop.xlane.xlu1 %1222  ;;  %1574 = vadd.xlane.f32.xlu0 %v1573_v34  ;;  %1583 = vadd.xlane.f32.xlu1 %v1582_v16  ;;  %v1214_v8 = vpop.xlane.xlu0 %1213 }
 0x232   : > { %v1335_v18 = vmul.f32 0.03125, %v1214_v8  ;;  %v1338_v29 = vmul.f32 0.03125, %v1223_v60  ;;  %v1457_v46 = vmul.f32 %v5838_v37, %v5838_v37  ;;  %v1594_v11 = vsel %vm1106_vm0, %v1462_v15, 0.0 }
 0x233   : > { %v1460_v16 = vmul.f32 %v5845_v6, %v5845_v6 }
 0x234   : > { %v5851_v52 = vsub.f32 %v5550_v24, %v1335_v18  ;;  %v5860_v60 = vsub.f32 %v5558_v32, %v1338_v29  ;;  %v1579_v61 = vsel %vm1106_vm0, %v1457_v46, 0.0 }
 0x235   : > { %v1217_v10 = vpop.xlane.xlu1 %1216  ;;  %1577 = vadd.xlane.f32.xlu1 %v1576_v5  ;;  %1586 = vadd.xlane.f32.xlu0 %v1585_v54  ;;  %v1208_v34 = vpop.xlane.xlu0 %1207  ;;  %v1588_v32 = vsel %vm1106_vm0, %v1460_v16, 0.0 }
 0x236   : > { %v1333_v23 = vmul.f32 0.03125, %v1208_v34  ;;  %v1336_v26 = vmul.f32 0.03125, %v1217_v10  ;;  %v1463_v8 = vmul.f32 %v5851_v52, %v5851_v52  ;;  %v1466_v46 = vmul.f32 %v5860_v60, %v5860_v60 }
 0x238   : > { %v5863_v24 = vsub.f32 %v5556_v31, %v1333_v23  ;;  %v5869_v15 = vsub.f32 %v5564_v39, %v1336_v26  ;;  %v1597_v31 = vsel %vm1106_vm0, %v1463_v8, 0.0 }
 0x239   : > { %v1226_v18 = vpop.xlane.xlu1 %1225  ;;  %1595 = vadd.xlane.f32.xlu1 %v1594_v11  ;;  %1580 = vadd.xlane.f32.xlu0 %v1579_v61  ;;  %v1220_v5 = vpop.xlane.xlu0 %1219  ;;  %v1606_v61 = vsel %vm1106_vm0, %v1466_v46, 0.0 }
 0x23a   : > { %v1339_v54 = vmul.f32 0.03125, %v1226_v18  ;;  %v1337_v10 = vmul.f32 0.03125, %v1220_v5  ;;  %v1461_v34 = vmul.f32 %v5863_v24, %v5863_v24 }
 0x23c   : > { %v5873_v29 = vsub.f32 %v5566_v40, %v1339_v54  ;;  %v5881_v26 = vsub.f32 %v5572_v47, %v1337_v10  ;;  %v1464_v40 = vmul.f32 %v5869_v15, %v5869_v15  ;;  %v1591_v8 = vsel %vm1106_vm0, %v1461_v34, 0.0 }
 0x23d   : > { %v1238_v23 = vpop.xlane.xlu1 %1237  ;;  %1589 = vadd.xlane.f32.xlu1 %v1588_v32  ;;  %1598 = vadd.xlane.f32.xlu0 %v1597_v31  ;;  %v1235_v11 = vpop.xlane.xlu0 %1234 }
 0x23e   : > { %v1342_v39 = vmul.f32 0.03125, %v1235_v11  ;;  %v1467_v18 = vmul.f32 %v5873_v29, %v5873_v29  ;;  %v1343_v10 = vmul.f32 0.03125, %v1238_v23  ;;  %v1600_v31 = vsel %vm1106_vm0, %v1464_v40, 0.0 }
 0x240   : > { %v5886_v16 = vsub.f32 %v5574_v49, %v1342_v39  ;;  %v1465_v49 = vmul.f32 %v5881_v26, %v5881_v26  ;;  %v1609_v34 = vsel %vm1106_vm0, %v1467_v18, 0.0  ;;  %v5905_v23 = vsub.f32 %v5582_v57, %v1343_v10 }
 0x241   : > { %v1232_v5 = vpop.xlane.xlu1 %1231  ;;  %1607 = vadd.xlane.f32.xlu1 %v1606_v61  ;;  %1592 = vadd.xlane.f32.xlu0 %v1591_v8  ;;  %v1229_v54 = vpop.xlane.xlu0 %1228 }
 0x242   : > { %v1341_v32 = vmul.f32 0.03125, %v1232_v5  ;;  %v1340_v47 = vmul.f32 0.03125, %v1229_v54  ;;  %v1470_v39 = vmul.f32 %v5886_v16, %v5886_v16  ;;  %v1603_v5 = vsel %vm1106_vm0, %v1465_v49, 0.0 }
 0x244   : > { %v5896_v11 = vsub.f32 %v5588_v63, %v1341_v32  ;;  %v5899_v46 = vsub.f32 %v5580_v55, %v1340_v47  ;;  %v1618_v63 = vsel %vm1106_vm0, %v1470_v39, 0.0 }
 0x245   : > { %1601 = vadd.xlane.f32.xlu1 %v1600_v31  ;;  %1610 = vadd.xlane.f32.xlu0 %v1609_v34  ;;  %v1247_v61 = vpop.xlane.xlu0 %1246  ;;  %v1471_v31 = vmul.f32 %v5905_v23, %v5905_v23 }
 0x246   : > { %v1346_v40 = vmul.f32 0.03125, %v1247_v61  ;;  %v1469_v55 = vmul.f32 %v5896_v11, %v5896_v11  ;;  %v1468_v18 = vmul.f32 %v5899_v46, %v5899_v46 }
 0x247   : > { %v1244_v8 = vpop.xlane.xlu1 %1243 }
 0x248   : > { %v5914_v47 = vsub.f32 %v5590_v3, %v1346_v40  ;;  %v1345_v57 = vmul.f32 0.03125, %v1244_v8  ;;  %v1615_v34 = vsel %vm1106_vm0, %v1469_v55, 0.0  ;;  %v1612_v39 = vsel %vm1106_vm0, %v1468_v18, 0.0 }
 0x249   : > { %1604 = vadd.xlane.f32.xlu0 %v1603_v5  ;;  %1619 = vadd.xlane.f32.xlu1 %v1618_v63  ;;  %v1241_v54 = vpop.xlane.xlu0 %1240  ;;  %v1621_v63 = vsel %vm1106_vm0, %v1471_v31, 0.0 }
 0x24a   : > { %v1344_v32 = vmul.f32 0.03125, %v1241_v54  ;;  %v5926_v40 = vsub.f32 %v5602_v21, %v1345_v57 }
 0x24b   : > { %v1259_v10 = vpop.xlane.xlu1 %1258 }
 0x24c   : > { %v5919_v49 = vsub.f32 %v5596_v9, %v1344_v32  ;;  %v1474_v9 = vmul.f32 %v5914_v47, %v5914_v47  ;;  %v1350_v54 = vmul.f32 0.03125, %v1259_v10  ;;  %v1473_v10 = vmul.f32 %v5926_v40, %v5926_v40 }
 0x24d   : > { %1616 = vadd.xlane.f32.xlu0 %v1615_v34  ;;  %1613 = vadd.xlane.f32.xlu1 %v1612_v39  ;;  %v1250_v61 = vpop.xlane.xlu0 %1249 }
 0x24e   : > { %v1347_v5 = vmul.f32 0.03125, %v1250_v61  ;;  %v1472_v3 = vmul.f32 %v5919_v49, %v5919_v49  ;;  %v1630_v61 = vsel %vm1106_vm0, %v1474_v9, 0.0 }
 0x24f   : > { %v1253_v8 = vpop.xlane.xlu1 %1252 }
 0x250   : > { %v5932_v55 = vsub.f32 %v5598_v12, %v1347_v5  ;;  %v1348_v18 = vmul.f32 0.03125, %v1253_v8  ;;  %v1624_v32 = vsel %vm1106_vm0, %v1472_v3, 0.0  ;;  %v5943_v12 = vsub.f32 %v5606_v27, %v1350_v54 }
 0x251   : > { %1622 = vadd.xlane.f32.xlu1 %v1621_v63  ;;  %1625 = vadd.xlane.f32.xlu0 %v1624_v32  ;;  %v1262_v34 = vpop.xlane.xlu0 %1261 }
 0x252   : > { %v5936_v39 = vsub.f32 %v5610_v35, %v1348_v18  ;;  %v1475_v21 = vmul.f32 %v5932_v55, %v5932_v55  ;;  %v1351_v57 = vmul.f32 0.03125, %v1262_v34  ;;  %8709 = vst [vmem:[#allocation29_spill] sm:$0xff] %v5943_v12  ;;  %v1627_v34 = vsel %vm1106_vm0, %v1473_v10, 0.0 }
 0x253   : > { %v1271_v31 = vpop.xlane.xlu1 %1270 }
 0x254   : > { %v1633_v5 = vsel %vm1106_vm0, %v1475_v21, 0.0  ;;  %v1476_v3 = vmul.f32 %v5936_v39, %v5936_v39  ;;  %v5950_v63 = vsub.f32 %v5614_v43, %v1351_v57  ;;  %v1354_v18 = vmul.f32 0.03125, %v1271_v31 }
 0x255   : > { %1631 = vadd.xlane.f32.xlu1 %v1630_v61  ;;  %1634 = vadd.xlane.f32.xlu0 %v1633_v5  ;;  %v1256_v35 = vpop.xlane.xlu0 %1255  ;;  %v1478_v21 = vmul.f32 %v5943_v12, %v5943_v12 }
 0x256   : > { %v1349_v8 = vmul.f32 0.03125, %v1256_v35  ;;  %8710 = vst [vmem:[#allocation30_spill] sm:$0xff] %v5950_v63  ;;  %v1636_v54 = vsel %vm1106_vm0, %v1476_v3, 0.0  ;;  %v5965_v57 = vsub.f32 %v5622_v59, %v1354_v18  ;;  %v1479_v31 = vmul.f32 %v5950_v63, %v5950_v63 }
 0x257   : > { %v1265_v32 = vpop.xlane.xlu1 %1264  ;;  %v1642_v3 = vsel %vm1106_vm0, %v1478_v21, 0.0 }
 0x258   : > { %v5954_v27 = vsub.f32 %v5618_v51, %v1349_v8  ;;  %v1352_v9 = vmul.f32 0.03125, %v1265_v32  ;;  %8713 = vst [vmem:[#allocation33_spill] sm:$0xff] %v5965_v57  ;;  %v1645_v59 = vsel %vm1106_vm0, %v1479_v31, 0.0  ;;  %v1482_v18 = vmul.f32 %v5965_v57, %v5965_v57 }
 0x259   : > { %1637 = vadd.xlane.f32.xlu1 %v1636_v54  ;;  %1628 = vadd.xlane.f32.xlu0 %v1627_v34  ;;  %v1274_v61 = vpop.xlane.xlu0 %1273 }
 0x25a   : > { %8711 = vst [vmem:[#allocation31_spill] sm:$0xff] %v5954_v27  ;;  %v5960_v5 = vsub.f32 %v5626_v4, %v1352_v9  ;;  %v1477_v43 = vmul.f32 %v5954_v27, %v5954_v27  ;;  %v1355_v10 = vmul.f32 0.03125, %v1274_v61 }
 0x25b   : > { %v5967_v51 = vpop.xlane.xlu1 %1282 }
 0x25c   : > { %8712 = vst [vmem:[#allocation32_spill] sm:$0xff] %v5960_v5  ;;  %v1639_v35 = vsel %vm1106_vm0, %v1477_v43, 0.0  ;;  %v1480_v4 = vmul.f32 %v5960_v5, %v5960_v5  ;;  %v5979_v9 = vsub.f32 %v5630_v14, %v1355_v10  ;;  %v8716_v43 = vld [vmem:[#allocation11_spill] sm:$0xff] }
 0x25d   : > { %1643 = vadd.xlane.f32.xlu0 %v1642_v3  ;;  %1640 = vadd.xlane.f32.xlu1 %v1639_v35  ;;  %v1268_v8 = vpop.xlane.xlu0 %1267  ;;  %v1654_v35 = vsel %vm1106_vm0, %v1482_v18, 0.0 }
 0x25e   : > { %v1353_v32 = vmul.f32 0.03125, %v1268_v8  ;;  %8714 = vst [vmem:[#allocation34_spill] sm:$0xff] %v5979_v9  ;;  %v1648_v61 = vsel %vm1106_vm0, %v1480_v4, 0.0  ;;  %v1483_v14 = vmul.f32 %v5979_v9, %v5979_v9 }
 0x25f   : > { %v1277_v34 = vpop.xlane.xlu1 %1276 }
 0x260   : > { %v5982_v54 = vsub.f32 %v5634_v28, %v1353_v32  ;;  %v1356_v21 = vmul.f32 0.03125, %v1277_v34  ;;  %v1657_v10 = vsel %vm1106_vm0, %v1483_v14, 0.0 }
 0x261   : > { %1646 = vadd.xlane.f32.xlu0 %v1645_v59  ;;  %1649 = vadd.xlane.f32.xlu1 %v1648_v61  ;;  %v6000_v34 = vpop.xlane.xlu0 %1285 }
 0x262   : > { %8715 = vst [vmem:[#allocation35_spill] sm:$0xff] %v5982_v54  ;;  %v5986_v3 = vsub.f32 %v8716_v43, %v1356_v21  ;;  %v1481_v31 = vmul.f32 %v5982_v54, %v5982_v54 }
 0x263   : > { %v5998_v32 = vpop.xlane.xlu1 %1294 }
 0x264   : > { %8717 = vst [vmem:[#allocation11_spill] sm:$0xff] %v5986_v3  ;;  %v1651_v8 = vsel %vm1106_vm0, %v1481_v31, 0.0  ;;  %v1484_v28 = vmul.f32 %v5986_v3, %v5986_v3  ;;  %8718 = vst [vmem:[#allocation36_spill] sm:$0xff] %v5998_v32  ;;  %v4890_v3 = vld [vmem:[%s8526_s4 + $0x60] sm:$0xff]  }
 0x265   : > { %1655 = vadd.xlane.f32.xlu0 %v1654_v35  ;;  %1652 = vadd.xlane.f32.xlu1 %v1651_v8  ;;  %v6004_v18 = vpop.xlane.xlu0 %1279 }
 0x266   : > { %v1660_v4 = vsel %vm1106_vm0, %v1484_v28, 0.0 }
 0x267   : > { %v6002_v59 = vpop.xlane.xlu1 %1288 }
 0x268   : > { %8719 = vst [vmem:[#allocation37_spill] sm:$0xff] %v6002_v59 }
 0x269   : > { %1658 = vadd.xlane.f32.xlu0 %v1657_v10  ;;  %1661 = vadd.xlane.f32.xlu1 %v1660_v4  ;;  %v6008_v61 = vpop.xlane.xlu0 %1291 }
 0x26a   : > { %8721 = vst [vmem:[#allocation39_spill] sm:$0xff] %v6008_v61 }
 0x26b   : > { %v6006_v21 = vpop.xlane.xlu1 %1297 }
 0x26c   : > { %8720 = vst [vmem:[#allocation38_spill] sm:$0xff] %v6006_v21 }
 0x27a   : > { %v1500_v43 = vpop.xlane.xlu1 %1499 }
 0x27b   : > { %v1686_v31 = vmul.f32 0.03125, %v1500_v43 }
 0x27d   : > { %v1750_v8 = vadd.f32 1e-05, %v1686_v31 }
 0x27e   : > { %v1494_v35 = vpop.xlane.xlu0 %1493 }
 0x27f   : > { %v1684_v14 = vmul.f32 0.03125, %v1494_v35  ;;  %4903 = vrsqrt.f32 %v1750_v8  ;;  %v6023_v35 = vld [vmem:[%s8524_s2] ss:$0 sm:$0xff] }
 0x281   : > { %v1748_v28 = vadd.f32 1e-05, %v1684_v14 }
 0x282   : > { %v6010_v10 = vpop.xlane.xlu0 %1502 }
 0x283   : > { %8722 = vst [vmem:[#allocation40_spill] sm:$0xff] %v6010_v10  ;;  %4905 = vrsqrt.f32 %v1748_v28  ;;  %v4883_v10 = vld [vmem:[%s8526_s4 + $0x18] sm:$0xff]  }
 0x286   : > { %v1497_v4 = vpop.xlane.xlu0 %1496 }
 0x287   : > { %v1685_v7 = vmul.f32 0.03125, %v1497_v4  ;;  %v4880_v4 = vld [vmem:[%s8526_s4 + $0x30] sm:$0xff]  }
 0x289   : > { %v1749_v0 = vadd.f32 1e-05, %v1685_v7  ;;  %v4879_v7 = vld [vmem:[%s8526_s4 + $0x38] sm:$0xff]  }
 0x28a   : > { %v6012_v22 = vpop.xlane.xlu0 %1505  ;;  %4807 = vmatpush1.bf16.msra.mxu1 %v4879_v7  ;;  %3532 = vmatpush1.bf16.msra.mxu0 %v4879_v7  ;;  %v4881_v7 = vld [vmem:[%s8526_s4 + $0x28] sm:$0xff]  }
 0x28b   : > { %8723 = vst [vmem:[#allocation41_spill] sm:$0xff] %v6012_v22  ;;  %4907 = vrsqrt.f32 %v1749_v0 }
 0x28c   : > { %v4904_v21 = vpop.eup %4903 }
 0x28d   : > { %v1878_v43 = vmul.f32 %v4904_v21, %v5675_v45  ;;  %v6032_v21 = vpop.xlane.xlu1 %1511 }
 0x28e   : > { %v6014_v32 = vpop.xlane.xlu0 %1514  ;;  %8727 = vst [vmem:[#allocation45_spill] sm:$0xff] %v6032_v21 }
 0x28f   : > { %8724 = vst [vmem:[#allocation42_spill] sm:$0xff] %v6014_v32  ;;  %v1949_v14 = vmul.f32 %v6023_v35, %v1878_v43 }
 0x290   : > { %v4906_v61 = vpop.eup %4905 }
 0x291   : > { %v1876_v31 = vmul.f32 %v4906_v61, %v5680_v48  ;;  %v8728_v48 = vmov 0   ;;  %v6039_v61 = vld [vmem:[%s8525_s3] ss:$0 sm:$0xff] }
 0x292   : > { %v6016_v59 = vpop.xlane.xlu0 %1508  ;;  %4792 = vmatprep.subr.bf16.mxu1 %v8728_v48  ;;  %3533 = vmatprep.subr.bf16.mxu0 %v8728_v48 }
 0x293   : > { %8725 = vst [vmem:[#allocation43_spill] sm:$0xff] %v6016_v59  ;;  %v1947_v45 = vmul.f32 %v6023_v35, %v1876_v31  ;;  %4808 = vmatpush1.bf16.msra.mxu1 %v4880_v4  ;;  %3534 = vmatpush1.bf16.msra.mxu0 %v4880_v4 }
 0x294   : > { %4793 = vmatprep.subr.bf16.mxu1 %v8728_v48  ;;  %3535 = vmatprep.subr.bf16.mxu0 %v8728_v48 }
 0x295   : > { %v6055_v32 = vadd.f32 %v6039_v61, %v1947_v45  ;;  %v4882_v45 = vld [vmem:[%s8526_s4 + $0x20] sm:$0xff]  }
 0x296   : > { %v6028_v0 = vpop.xlane.xlu0 %1517 }
 0x297   : > { %8726 = vst [vmem:[#allocation44_spill] sm:$0xff] %v6028_v0  ;;  %v6052_v0 = vadd.f32 %v6039_v61, %v1949_v14  ;;  %8731 = vst [vmem:[#allocation48_spill] sm:$0xff] %v6055_v32  ;;  %4809 = vmatpush1.bf16.msra.mxu1 %v4881_v7  ;;  %3536 = vmatpush1.bf16.msra.mxu0 %v4881_v7 }
 0x298   : > { %v4908_v8 = vpop.eup %4907  ;;  %4794 = vmatprep.subr.bf16.mxu1 %v8728_v48  ;;  %3537 = vmatprep.subr.bf16.mxu0 %v8728_v48 }
 0x299   : > { %v1877_v28 = vmul.f32 %v4908_v8, %v5692_v38  ;;  %8730 = vst [vmem:[#allocation47_spill] sm:$0xff] %v6052_v0  ;;  %v6057_v38 = vpop.xlane.xlu1 %1523  ;;  %v8558_v22 = vrot.slane %v6052_v0, 4 }
 0x29a   : > { %v6045_v43 = vpop.xlane.xlu0 %1526  ;;  %8732 = vst [vmem:[#allocation49_spill] sm:$0xff] %v6057_v38  ;;  %v8559_v38 = vrot.slane %v6055_v32, 4 }
 0x29b   : > { %8729 = vst [vmem:[#allocation46_spill] sm:$0xff] %v6045_v43  ;;  %v1948_v31 = vmul.f32 %v6023_v35, %v1877_v28  ;;  %v8734_v28 = vlaneseq  ;;  %4810 = vmatpush1.bf16.msra.mxu1 %v4882_v45  ;;  %3538 = vmatpush1.bf16.msra.mxu0 %v4882_v45 }
 0x29c   : > { %4795 = vmatprep.subr.bf16.mxu1 %v8728_v48  ;;  %3539 = vmatprep.subr.bf16.mxu0 %v8728_v48 }
 0x29d   : > { %v6062_v8 = vadd.f32 %v6039_v61, %v1948_v31  ;;  %v6065_v43 = vshrl.u32 %v8734_v28, 7 }
 0x29e   : > { %v6067_v59 = vpop.xlane.xlu0 %1520 }
 0x29f   : > { %8733 = vst [vmem:[#allocation50_spill] sm:$0xff] %v6062_v8  ;;  %8735 = vst [vmem:[#allocation51_spill] sm:$0xff] %v6067_v59  ;;  %v2600_v14 = vrot.slane %v6062_v8, 4  ;;  %vm2663_vm1 = vcmp.lt.s32.totalorder %v6065_v43, 4  ;;  %4811 = vmatpush1.bf16.msra.mxu1 %v4883_v10  ;;  %3540 = vmatpush1.bf16.msra.mxu0 %v4883_v10  ;;  %vm2341_vm2 = vcmp.lt.s32.totalorder %v6065_v43, 6  ;;  %vm2180_vm3 = vcmp.lt.s32.totalorder %v6065_v43, 7 }
 0x2a0   : > { %v1551_v4 = vpop.xlane.xlu1 %1550  ;;  %4796 = vmatprep.subr.bf16.mxu1 %v8728_v48  ;;  %3541 = vmatprep.subr.bf16.mxu0 %v8728_v48  ;;  %vm2502_vm4 = vcmp.lt.s32.totalorder %v6065_v43, 5 }
 0x2a1   : > { %v1703_v31 = vmul.f32 0.03125, %v1551_v4  ;;  %v2725_v59 = vsel %vm2663_vm1, %v2600_v14, %v8558_v22  ;;  %v2726_v7 = vsel %vm2663_vm1, %v8559_v38, %v2600_v14  ;;  %v4884_v14 = vld [vmem:[%s8526_s4 + $0x10] sm:$0xff]  }
 0x2a2   : > { %v6078_v28 = vpop.xlane.xlu0 %1529  ;;  %v2728_v4 = vpack.c.bf16 %v2725_v59, %v2726_v7 }
 0x2a3   : > { %8736 = vst [vmem:[#allocation52_spill] sm:$0xff] %v6078_v28  ;;  %v1767_v28 = vadd.f32 1e-05, %v1703_v31  ;;  %4812 = vmatpush1.bf16.msra.mxu1 %v4884_v14  ;;  %3542 = vmatpush1.bf16.msra.mxu0 %v4884_v14 }
 0x2a4   : > { %4593 = vmatprep.mubr.msk.bf16.mxu0 %vm1106_vm0, %v2728_v4  ;;  %4797 = vmatprep.subr.bf16.mxu1 %v8728_v48 }
 0x2a5   : > { %4909 = vrsqrt.f32 %v1767_v28  ;;  %3543 = vmatprep.subr.bf16.mxu0 %v8728_v48 }
 0x2a6   : > { %v1548_v22 = vpop.xlane.xlu0 %1547 }
 0x2a7   : > { %v1702_v21 = vmul.f32 0.03125, %v1548_v22  ;;  %v4885_v22 = vld [vmem:[%s8526_s4 + $0x8] sm:$0xff]  }
 0x2a8   : > { %4813 = vmatpush1.bf16.msra.mxu1 %v4885_v22  ;;  %3544 = vmatpush1.bf16.msra.mxu0 %v4885_v22 }
 0x2a9   : > { %v1766_v59 = vadd.f32 1e-05, %v1702_v21  ;;  %4798 = vmatprep.subr.bf16.mxu1 %v8728_v48  ;;  %3545 = vmatprep.subr.bf16.mxu0 %v8728_v48 }
 0x2aa   : > { %v1563_v45 = vpop.xlane.xlu1 %1562  ;;  %v1560_v31 = vpop.xlane.xlu0 %1559 }
 0x2ab   : > { %4911 = vrsqrt.f32 %v1766_v59  ;;  %v1706_v7 = vmul.f32 0.03125, %v1560_v31  ;;  %v1707_v0 = vmul.f32 0.03125, %v1563_v45  ;;  %v4886_v59 = vld [vmem:[%s8526_s4] sm:$0xff]  }
 0x2ac   : > { %4814 = vmatpush1.bf16.msra.mxu1 %v4886_v59  ;;  %3546 = vmatpush1.bf16.msra.mxu0 %v4886_v59 }
 0x2ad   : > { %v1770_v10 = vadd.f32 1e-05, %v1706_v7  ;;  %v1771_v7 = vadd.f32 1e-05, %v1707_v0  ;;  %4799 = vmatprep.subr.bf16.mxu1 %v8728_v48  ;;  %3547 = vmatprep.subr.bf16.mxu0 %v8728_v48 }
 0x2ae   : > { %v1557_v4 = vpop.xlane.xlu1 %1556  ;;  %v1554_v38 = vpop.xlane.xlu0 %1553 }
 0x2af   : > { %v1705_v28 = vmul.f32 0.03125, %v1557_v4  ;;  %v1704_v21 = vmul.f32 0.03125, %v1554_v38  ;;  %4913 = vrsqrt.f32 %v1770_v10  ;;  %v4887_v38 = vld [vmem:[%s8526_s4 + $0x78] sm:$0xff]  }
 0x2b0   : > { %4815 = vmatpush2.bf16.msra.mxu1 %v4887_v38  ;;  %3548 = vmatpush2.bf16.msra.mxu0 %v4887_v38  ;;  %v4889_v38 = vld [vmem:[%s8526_s4 + $0x68] sm:$0xff]  }
 0x2b1   : > { %v1769_v14 = vadd.f32 1e-05, %v1705_v28  ;;  %v1768_v31 = vadd.f32 1e-05, %v1704_v21  ;;  %4800 = vmatprep.subr.bf16.mxu1 %v8728_v48  ;;  %v4888_v28 = vld [vmem:[%s8526_s4 + $0x70] sm:$0xff]   ;;  %3549 = vmatprep.subr.bf16.mxu0 %v8728_v48 }
 0x2b2   : > { %v1572_v32 = vpop.xlane.xlu0 %1571  ;;  %v4910_v45 = vpop.eup %4909 }
 0x2b3   : > { %4915 = vrsqrt.f32 %v1769_v14  ;;  %v1895_v21 = vmul.f32 %v4910_v45, %v5759_v33 }
 0x2b4   : > { %4917 = vrsqrt.f32 %v1768_v31  ;;  %4816 = vmatpush2.bf16.msra.mxu1 %v4888_v28  ;;  %3550 = vmatpush2.bf16.msra.mxu0 %v4888_v28 }
 0x2b5   : > { %4919 = vrsqrt.f32 %v1771_v7  ;;  %4801 = vmatprep.subr.bf16.mxu1 %v8728_v48  ;;  %3551 = vmatprep.subr.bf16.mxu0 %v8728_v48  ;;  %v1966_v33 = vmul.f32 %v6023_v35, %v1895_v21 }
 0x2b6   : > { %v1569_v22 = vpop.xlane.xlu1 %1568  ;;  %v1566_v4 = vpop.xlane.xlu0 %1565 }
 0x2b7   : > { %v1708_v10 = vmul.f32 0.03125, %v1566_v4  ;;  %v1709_v7 = vmul.f32 0.03125, %v1569_v22  ;;  %v1710_v4 = vmul.f32 0.03125, %v1572_v32 }
 0x2b8   : > { %v4912_v0 = vpop.eup %4911  ;;  %4817 = vmatpush2.bf16.msra.mxu1 %v4889_v38  ;;  %3552 = vmatpush2.bf16.msra.mxu0 %v4889_v38 }
 0x2b9   : > { %v1772_v59 = vadd.f32 1e-05, %v1708_v10  ;;  %v1894_v14 = vmul.f32 %v4912_v0, %v5763_v44  ;;  %v1773_v22 = vadd.f32 1e-05, %v1709_v7  ;;  %v1774_v28 = vadd.f32 1e-05, %v1710_v4  ;;  %4802 = vmatprep.subr.bf16.mxu1 %v8728_v48  ;;  %3553 = vmatprep.subr.bf16.mxu0 %v8728_v48 }
 0x2ba   : > { %v1584_v31 = vpop.xlane.xlu1 %1583  ;;  %v1575_v8 = vpop.xlane.xlu0 %1574 }
 0x2bb   : > { %4921 = vrsqrt.f32 %v1772_v59  ;;  %v1965_v44 = vmul.f32 %v6023_v35, %v1894_v14  ;;  %v1711_v57 = vmul.f32 0.03125, %v1575_v8  ;;  %v6135_v14 = vadd.f32 %v6039_v61, %v1966_v33 }
 0x2bc   : > { %v4914_v45 = vpop.eup %4913  ;;  %4923 = vrsqrt.f32 %v1773_v22  ;;  %4818 = vmatpush2.bf16.msra.mxu1 %v4890_v3  ;;  %3554 = vmatpush2.bf16.msra.mxu0 %v4890_v3 }
 0x2bd   : > { %v1898_v21 = vmul.f32 %v4914_v45, %v5771_v50  ;;  %8737 = vst [vmem:[#allocation53_spill] sm:$0xff] %v6135_v14  ;;  %v6139_v54 = vadd.f32 %v6039_v61, %v1965_v44  ;;  %v4891_v50 = vld [vmem:[%s8526_s4 + $0x58] sm:$0xff]   ;;  %4925 = vrsqrt.f32 %v1774_v28  ;;  %4803 = vmatprep.subr.bf16.mxu1 %v8728_v48  ;;  %3555 = vmatprep.subr.bf16.mxu0 %v8728_v48  ;;  %v1775_v44 = vadd.f32 1e-05, %v1711_v57  ;;  %v4892_v57 = vld [vmem:[%s8526_s4 + $0x50] sm:$0xff]  }
 0x2be   : > { %v1578_v10 = vpop.xlane.xlu1 %1577  ;;  %v1587_v0 = vpop.xlane.xlu0 %1586  ;;  %v2296_v3 = vrot.slane %v6135_v14, 2  ;;  %v2133_v28 = vrot.slane %v6135_v14, 1 }
 0x2bf   : > { %v1712_v9 = vmul.f32 0.03125, %v1578_v10  ;;  %8738 = vst [vmem:[#allocation54_spill] sm:$0xff] %v6139_v54  ;;  %v2618_v10 = vrot.slane %v6135_v14, 4  ;;  %4927 = vrsqrt.f32 %v1775_v44 }
 0x2c0   : > { %v4916_v32 = vpop.eup %4915  ;;  %4819 = vmatpush2.bf16.msra.mxu1 %v4891_v50  ;;  %3556 = vmatpush2.bf16.msra.mxu0 %v4891_v50 }
 0x2c1   : > { %v4918_v59 = vpop.eup %4917  ;;  %v1897_v38 = vmul.f32 %v4916_v32, %v5793_v58  ;;  %v1969_v58 = vmul.f32 %v6023_v35, %v1898_v21  ;;  %v1776_v22 = vadd.f32 1e-05, %v1712_v9  ;;  %4804 = vmatprep.subr.bf16.mxu1 %v8728_v48  ;;  %3557 = vmatprep.subr.bf16.mxu0 %v8728_v48  ;;  %v8740_v21 = vrot.slane %v6139_v54, 4 }
 0x2c2   : > { %v1896_v7 = vmul.f32 %v4918_v59, %v5777_v42  ;;  %v4920_v8 = vpop.eup %4919  ;;  %v1714_v42 = vmul.f32 0.03125, %v1584_v31  ;;  %v6147_v33 = vpop.xlane.xlu1 %1595 }
 0x2c3   : > { %v1581_v45 = vpop.xlane.xlu0 %1580  ;;  %v1899_v59 = vmul.f32 %v4920_v8, %v5780_v41  ;;  %v1715_v8 = vmul.f32 0.03125, %v1587_v0  ;;  %4929 = vrsqrt.f32 %v1776_v22  ;;  %v2708_v31 = vsel %vm2663_vm1, %v8740_v21, %v2618_v10 }
 0x2c4   : > { %v1967_v4 = vmul.f32 %v6023_v35, %v1896_v7  ;;  %v1968_v7 = vmul.f32 %v6023_v35, %v1897_v38  ;;  %v1713_v63 = vmul.f32 0.03125, %v1581_v45  ;;  %v1778_v9 = vadd.f32 1e-05, %v1714_v42  ;;  %4820 = vmatpush2.bf16.msra.mxu1 %v4892_v57  ;;  %3558 = vmatpush2.bf16.msra.mxu0 %v4892_v57 }
 0x2c5   : > { %v6172_v38 = vadd.f32 %v6039_v61, %v1969_v58  ;;  %v8742_v22 = vrot.slane %v6139_v54, 2  ;;  %4805 = vmatprep.subr.bf16.mxu1 %v8728_v48  ;;  %3559 = vmatprep.subr.bf16.mxu0 %v8728_v48 }
 0x2c6   : > { %v6156_v32 = vadd.f32 %v6039_v61, %v1967_v4  ;;  %v1590_v50 = vpop.xlane.xlu1 %1589  ;;  %v6188_v0 = vadd.f32 %v6039_v61, %v1968_v7  ;;  %v1777_v44 = vadd.f32 1e-05, %v1713_v63  ;;  %v8743_v63 = vrot.slane %v6139_v54, 1 }
 0x2c7   : > { %v2386_v45 = vsel %vm2341_vm2, %v8742_v22, %v2296_v3  ;;  %4931 = vrsqrt.f32 %v1778_v9 }
 0x2c8   : > { %8739 = vst [vmem:[#allocation55_spill] sm:$0xff] %v6156_v32  ;;  %v8573_v4 = vrot.slane %v6156_v32, 4  ;;  %v2134_v5 = vrot.slane %v6156_v32, 1  ;;  %v4922_v41 = vpop.eup %4921  ;;  %v8741_v12 = vrot.slane %v6156_v32, 2  ;;  %v2225_v7 = vsel %vm2180_vm3, %v8743_v63, %v2133_v28 }
 0x2c9   : > { %v2458_v57 = vrot.slane %v6156_v32, 3  ;;  %4933 = vrsqrt.f32 %v1777_v44  ;;  %v4924_v9 = vpop.eup %4923 }
 0x2ca   : > { %v2707_v42 = vsel %vm2663_vm1, %v2618_v10, %v8573_v4  ;;  %v2385_v58 = vsel %vm2341_vm2, %v2296_v3, %v8741_v12  ;;  %v2224_v4 = vsel %vm2180_vm3, %v2133_v28, %v2134_v5  ;;  %v1900_v10 = vmul.f32 %v4922_v41, %v5800_v62  ;;  %v4893_v41 = vld [vmem:[%s8526_s4 + $0x48] sm:$0xff]  }
 0x2cb   : > { %v2737_v21 = vpack.c.bf16 %v2707_v42, %v2708_v31  ;;  %v2415_v27 = vpack.c.bf16 %v2385_v58, %v2386_v45  ;;  %v1716_v12 = vmul.f32 0.03125, %v1590_v50  ;;  %v8575_v3 = vrot.slane %v6139_v54, 3  ;;  %4821 = vmatpush2.bf16.msra.mxu1 %v4893_v41  ;;  %v4926_v58 = vpop.eup %4925  ;;  %3560 = vmatpush2.bf16.msra.mxu0 %v4893_v41 }
 0x2cc   : > { %v2254_v62 = vpack.c.bf16 %v2224_v4, %v2225_v7  ;;  %v2457_v31 = vrot.slane %v6135_v14, 3  ;;  %v1970_v45 = vmul.f32 %v6023_v35, %v1899_v59  ;;  %v1779_v28 = vadd.f32 1e-05, %v1715_v8  ;;  %4806 = vmatprep.subr.bf16.mxu1 %v8728_v48  ;;  %3561 = vmatprep.subr.bf16.mxu0 %v8728_v48  ;;  %v4928_v41 = vpop.eup %4927 }
 0x2cd   : > { %4602 = vmatprep.mubr.msk.bf16.mxu1 %vm1106_vm0, %v2737_v21  ;;  %2906 = vrot.lane.b32.xlu1 %v2415_v27, %s5117_s26  ;;  %v1971_v50 = vmul.f32 %v6023_v35, %v1900_v10  ;;  %v2135_v4 = vrot.slane %v6188_v0, 1  ;;  %v2136_v42 = vrot.slane %v6172_v38, 1  ;;  %v1780_v59 = vadd.f32 1e-05, %v1716_v12  ;;  %v4894_v10 = vld [vmem:[%s8526_s4 + $0x40] sm:$0xff]  }
 0x2ce   : > { %2810 = vrot.lane.b32.xlu0 %v2254_v62, %s5118_s14  ;;  %v2546_v27 = vsel %vm2502_vm4, %v2457_v31, %v2458_v57  ;;  %v2547_v8 = vsel %vm2502_vm4, %v8575_v3, %v2457_v31  ;;  %v6233_v21 = vadd.f32 %v6039_v61, %v1970_v45  ;;  %v1901_v12 = vmul.f32 %v4924_v9, %v5815_v56 }
 0x2cf   : > { %v2576_v44 = vpack.c.bf16 %v2546_v27, %v2547_v8  ;;  %v2222_v22 = vsel %vm2180_vm3, %v2135_v4, %v2136_v42  ;;  %v2223_v63 = vsel %vm2180_vm3, %v2134_v5, %v2135_v4  ;;  %v1902_v7 = vmul.f32 %v4926_v58, %v5790_v36  ;;  %4822 = vmatpush2.bf16.msra.mxu1 %v4894_v10 }
 0x2d0   : > { %v6240_v62 = vadd.f32 %v6039_v61, %v1971_v50  ;;  %4935 = vrsqrt.f32 %v1779_v28  ;;  %v2255_v31 = vpack.c.bf16 %v2222_v22, %v2223_v63  ;;  %v2298_v48 = vrot.slane %v6188_v0, 2  ;;  %3562 = vmatpush2.bf16.msra.mxu0 %v4894_v10  ;;  %v4930_v5 = vpop.eup %4929 }
 0x2d1   : > { %3002 = vrot.lane.b32.xlu1 %v2576_v44, %s5119_s17  ;;  %4937 = vrsqrt.f32 %v1780_v59  ;;  %v2299_v56 = vrot.slane %v6172_v38, 2  ;;  %v1972_v36 = vmul.f32 %v6023_v35, %v1901_v12  ;;  %v8744_v45 = vrot.slane %v6156_v32, 2 }
 0x2d2   : > { %2812 = vrot.lane.b32.xlu0 %v2255_v31, %s5118_s14  ;;  %v2300_v9 = vrot.slane %v6233_v21, 2  ;;  %v1973_v50 = vmul.f32 %v6023_v35, %v1902_v7  ;;  %v2301_v4 = vrot.slane %v6240_v62, 2  ;;  %v1903_v59 = vmul.f32 %v4928_v41, %v5812_v20 }
 0x2d3   : > { %v2384_v28 = vsel %vm2341_vm2, %v8744_v45, %v2298_v48  ;;  %v2383_v27 = vsel %vm2341_vm2, %v2298_v48, %v2299_v56  ;;  %v1904_v8 = vmul.f32 %v4930_v5, %v5821_v13  ;;  %v6265_v12 = vadd.f32 %v6039_v61, %v1972_v36 }
 0x2d4   : > { %v2416_v58 = vpack.c.bf16 %v2383_v27, %v2384_v28  ;;  %v2381_v44 = vsel %vm2341_vm2, %v2300_v9, %v2301_v4  ;;  %v2382_v22 = vsel %vm2341_vm2, %v2299_v56, %v2300_v9  ;;  %v4932_v10 = vpop.eup %4931  ;;  %v2459_v7 = vrot.slane %v6188_v0, 3 }
 0x2d5   : > { %v2417_v63 = vpack.c.bf16 %v2381_v44, %v2382_v22  ;;  %v6270_v13 = vadd.f32 %v6039_v61, %v1973_v50  ;;  %v2460_v31 = vrot.slane %v6172_v38, 3  ;;  %v2138_v41 = vrot.slane %v6240_v62, 1 }
 0x2d6   : > { %2908 = vrot.lane.b32.xlu1 %v2416_v58, %s5117_s26  ;;  %v4934_v20 = vpop.eup %4933  ;;  %v2545_v48 = vsel %vm2502_vm4, %v2458_v57, %v2459_v7  ;;  %v1974_v56 = vmul.f32 %v6023_v35, %v1903_v59  ;;  %v1975_v5 = vmul.f32 %v6023_v35, %v1904_v8  ;;  %v1906_v45 = vmul.f32 %v4932_v10, %v5809_v1 }
 0x2d7   : > { %8745 = vst [vmem:[#allocation56_spill] sm:$0xff] %v6270_v13  ;;  %2910 = vrot.lane.b32.xlu0 %v2417_v63, %s5117_s26  ;;  %v2544_v36 = vsel %vm2502_vm4, %v2459_v7, %v2460_v31  ;;  %v1905_v28 = vmul.f32 %v4934_v20, %v5838_v37  ;;  %v2139_v50 = vrot.slane %v6265_v12, 1  ;;  %v2140_v27 = vrot.slane %v6270_v13, 1 }
 0x2d8   : > { %v2577_v9 = vpack.c.bf16 %v2544_v36, %v2545_v48  ;;  %v2137_v59 = vrot.slane %v6233_v21, 1  ;;  %v6290_v44 = vadd.f32 %v6039_v61, %v1974_v56  ;;  %v6293_v1 = vadd.f32 %v6039_v61, %v1975_v5 }
 0x2d9   : > { %v2219_v57 = vsel %vm2180_vm3, %v2138_v41, %v2139_v50  ;;  %v2218_v37 = vsel %vm2180_vm3, %v2139_v50, %v2140_v27  ;;  %v1977_v22 = vmul.f32 %v6023_v35, %v1906_v45  ;;  %v1976_v10 = vmul.f32 %v6023_v35, %v1905_v28 }
 0x2da   : > { %3004 = vrot.lane.b32.xlu1 %v2577_v9, %s5119_s17  ;;  %8746 = vst [vmem:[#allocation57_spill] sm:$0xff] %v6290_v44  ;;  %8747 = vst [vmem:[#allocation58_spill] sm:$0xff] %v6293_v1  ;;  %v2257_v63 = vpack.c.bf16 %v2218_v37, %v2219_v57  ;;  %v2220_v7 = vsel %vm2180_vm3, %v2137_v59, %v2138_v41  ;;  %v2221_v48 = vsel %vm2180_vm3, %v2136_v42, %v2137_v59 }
 0x2db   : > { %v2256_v5 = vpack.c.bf16 %v2220_v7, %v2221_v48  ;;  %v2303_v36 = vrot.slane %v6270_v13, 2  ;;  %v2304_v45 = vrot.slane %v6290_v44, 2  ;;  %v2305_v28 = vrot.slane %v6293_v1, 2 }
 0x2dc   : > { %2816 = vrot.lane.b32.xlu0 %v2257_v63, %s5118_s14  ;;  %v6314_v41 = vadd.f32 %v6039_v61, %v1977_v22  ;;  %v2461_v42 = vrot.slane %v6233_v21, 3  ;;  %v2142_v63 = vrot.slane %v6293_v1, 1 }
 0x2dd   : > { %v4936_v58 = vpop.eup %4935  ;;  %v2377_v9 = vsel %vm2341_vm2, %v2304_v45, %v2305_v28  ;;  %v2378_v50 = vsel %vm2341_vm2, %v2303_v36, %v2304_v45  ;;  %v2302_v45 = vrot.slane %v6265_v12, 2 }
 0x2de   : > { %v4938_v8 = vpop.eup %4937  ;;  %v1907_v20 = vmul.f32 %v4936_v58, %v5825_v2  ;;  %8748 = vst [vmem:[#allocation59_spill] sm:$0xff] %v6314_v41  ;;  %v6317_v2 = vadd.f32 %v6039_v61, %v1976_v10  ;;  %2814 = vrot.lane.b32.xlu1 %v2256_v5, %s5118_s14  ;;  %v2462_v58 = vrot.slane %v6240_v62, 3  ;;  %v2419_v59 = vpack.c.bf16 %v2377_v9, %v2378_v50 }
 0x2df   : > { %v1908_v56 = vmul.f32 %v4938_v8, %v5845_v6  ;;  %v6330_v8 = vpop.xlane.xlu0 %1598  ;;  %v2543_v22 = vsel %vm2502_vm4, %v2460_v31, %v2461_v42  ;;  %v2380_v9 = vsel %vm2341_vm2, %v2301_v4, %v2302_v45 }
 0x2e0   : > { %8749 = vst [vmem:[#allocation60_spill] sm:$0xff] %v6317_v2  ;;  %v1978_v6 = vmul.f32 %v6023_v35, %v1907_v20  ;;  %v2542_v37 = vsel %vm2502_vm4, %v2461_v42, %v2462_v58  ;;  %2914 = vrot.lane.b32.xlu0 %v2419_v59, %s5117_s26  ;;  %v2143_v7 = vrot.slane %v6317_v2, 1  ;;  %v2144_v20 = vrot.slane %v6314_v41, 1 }
 0x2e1   : > { %v1979_v57 = vmul.f32 %v6023_v35, %v1908_v56  ;;  %v2578_v10 = vpack.c.bf16 %v2542_v37, %v2543_v22  ;;  %v2307_v37 = vrot.slane %v6314_v41, 2 }
 0x2e2   : > { %v6341_v48 = vadd.f32 %v6039_v61, %v1978_v6  ;;  %v2214_v31 = vsel %vm2180_vm3, %v2143_v7, %v2144_v20  ;;  %v2215_v5 = vsel %vm2180_vm3, %v2142_v63, %v2143_v7  ;;  %v2379_v6 = vsel %vm2341_vm2, %v2302_v45, %v2303_v36 }
 0x2e3   : > { %v6344_v56 = vadd.f32 %v6039_v61, %v1979_v57  ;;  %3006 = vrot.lane.b32.xlu1 %v2578_v10, %s5119_s17  ;;  %v2259_v42 = vpack.c.bf16 %v2214_v31, %v2215_v5  ;;  %v1593_v50 = vpop.xlane.xlu0 %1592  ;;  %v2418_v57 = vpack.c.bf16 %v2379_v6, %v2380_v9  ;;  %v2463_v10 = vrot.slane %v6265_v12, 3 }
 0x2e4   : > { %8750 = vst [vmem:[#allocation61_spill] sm:$0xff] %v6341_v48  ;;  %v2308_v59 = vrot.slane %v6341_v48, 2  ;;  %v2464_v7 = vrot.slane %v6270_v13, 3  ;;  %v1718_v31 = vmul.f32 0.03125, %v6147_v33  ;;  %v1717_v6 = vmul.f32 0.03125, %v1593_v50 }
 0x2e5   : > { %2820 = vrot.lane.b32.xlu0 %v2259_v42, %s5118_s14  ;;  %v8576_v22 = vrot.slane %v6344_v56, 2  ;;  %v2541_v45 = vsel %vm2502_vm4, %v2462_v58, %v2463_v10  ;;  %v6376_v42 = vpop.xlane.xlu1 %1607  ;;  %v2466_v33 = vrot.slane %v6293_v1, 3 }
 0x2e6   : > { %v2374_v4 = vsel %vm2341_vm2, %v2307_v37, %v2308_v59  ;;  %v2540_v9 = vsel %vm2502_vm4, %v2463_v10, %v2464_v7  ;;  %v2465_v10 = vrot.slane %v6290_v44, 3 }
 0x2e7   : > { %2912 = vrot.lane.b32.xlu1 %v2418_v57, %s5117_s26  ;;  %v2373_v36 = vsel %vm2341_vm2, %v2308_v59, %v8576_v22  ;;  %v6380_v57 = vpop.xlane.xlu0 %1610  ;;  %v2579_v3 = vpack.c.bf16 %v2540_v9, %v2541_v45  ;;  %v2141_v59 = vrot.slane %v6290_v44, 1  ;;  %v1782_v22 = vadd.f32 1e-05, %v1718_v31 }
 0x2e8   : > { %v2421_v5 = vpack.c.bf16 %v2373_v36, %v2374_v4  ;;  %v1781_v36 = vadd.f32 1e-05, %v1717_v6  ;;  %v2538_v31 = vsel %vm2502_vm4, %v2465_v10, %v2466_v33  ;;  %v2306_v45 = vrot.slane %v6317_v2, 2 }
 0x2e9   : > { %v2216_v58 = vsel %vm2180_vm3, %v2141_v59, %v2142_v63  ;;  %v2217_v50 = vsel %vm2180_vm3, %v2140_v27, %v2141_v59  ;;  %4939 = vrsqrt.f32 %v1782_v22  ;;  %v2539_v63 = vsel %vm2502_vm4, %v2464_v7, %v2465_v10 }
 0x2ea   : > { %2918 = vrot.lane.b32.xlu0 %v2421_v5, %s5117_s26  ;;  %v2258_v4 = vpack.c.bf16 %v2216_v58, %v2217_v50  ;;  %v1602_v5 = vpop.xlane.xlu1 %1601  ;;  %4941 = vrsqrt.f32 %v1781_v36  ;;  %v2580_v6 = vpack.c.bf16 %v2538_v31, %v2539_v63  ;;  %v2375_v27 = vsel %vm2341_vm2, %v2306_v45, %v2307_v37 }
 0x2eb   : > { %3008 = vrot.lane.b32.xlu1 %v2579_v3, %s5119_s17  ;;  %v6395_v3 = vpop.xlane.xlu0 %1604  ;;  %v2376_v9 = vsel %vm2341_vm2, %v2305_v28, %v2306_v45  ;;  %v2467_v22 = vrot.slane %v6317_v2, 3  ;;  %v2468_v36 = vrot.slane %v6314_v41, 3  ;;  %v8577_v10 = vrot.slane %v6344_v56, 1 }
 0x2ec   : > { %v2420_v58 = vpack.c.bf16 %v2375_v27, %v2376_v9  ;;  %v2145_v28 = vrot.slane %v6341_v48, 1  ;;  %v1358_v31 = vmul.f32 0.03125, %v5967_v51  ;;  %v1719_v63 = vmul.f32 0.03125, %v6330_v8 }
 0x2ed   : > { %v2536_v50 = vsel %vm2502_vm4, %v2467_v22, %v2468_v36  ;;  %v2537_v37 = vsel %vm2502_vm4, %v2466_v33, %v2467_v22  ;;  %v8583_v33 = vrot.slane %v6344_v56, 3  ;;  %v1720_v27 = vmul.f32 0.03125, %v1602_v5 }
 0x2ee   : > { %v6409_v59 = vpop.xlane.xlu1 %1619  ;;  %v2213_v51 = vsel %vm2180_vm3, %v2144_v20, %v2145_v28  ;;  %v2469_v8 = vrot.slane %v6341_v48, 3  ;;  %v1783_v5 = vadd.f32 1e-05, %v1719_v63 }
 0x2ef   : > { %2818 = vrot.lane.b32.xlu1 %v2258_v4, %s5118_s14  ;;  %v6412_v7 = vpop.xlane.xlu0 %1616  ;;  %v2581_v4 = vpack.c.bf16 %v2536_v50, %v2537_v37  ;;  %v1313_v50 = vmul.f32 0.03125, %v5740_v53  ;;  %v1784_v54 = vadd.f32 1e-05, %v1720_v27  ;;  %v2622_v27 = vrot.slane %v6233_v21, 4 }
 0x2f0   : > { %v2535_v53 = vsel %vm2502_vm4, %v2468_v36, %v2469_v8  ;;  %4943 = vrsqrt.f32 %v1783_v5  ;;  %v2623_v36 = vrot.slane %v6240_v62, 4 }
 0x2f1   : > { %4945 = vrsqrt.f32 %v1784_v54  ;;  %v2624_v54 = vrot.slane %v6265_v12, 4 }
 0x2f2   : > { %v6423_v45 = vpop.xlane.xlu1 %1613 }
 0x2f3   : > { %3010 = vrot.lane.b32.xlu1 %v2580_v6, %s5119_s17  ;;  %v2212_v6 = vsel %vm2180_vm3, %v2145_v28, %v8577_v10  ;;  %v6430_v9 = vpop.xlane.xlu0 %1625  ;;  %v8751_v10 = vld [vmem:[#allocation10_spill] sm:$0xff] }
 0x2f4   : > { %v2260_v37 = vpack.c.bf16 %v2212_v6, %v2213_v51  ;;  %v6440_v32 = vsub.f32 %v8751_v10, %v1358_v31  ;;  %v8753_v10 = vld [vmem:[#allocation7_spill] sm:$0xff]  ;;  %v8584_v51 = vrot.slane %v6172_v38, 4 }
 0x2f5   : > { %v6454_v31 = vsub.f32 %v8753_v10, %v1313_v50 }
 0x2f6   : > { %v4940_v22 = vpop.eup %4939  ;;  %8752 = vst [vmem:[#allocation10_spill] sm:$0xff] %v6440_v32  ;;  %v6449_v28 = vpop.xlane.xlu1 %1622  ;;  %v6476_v50 = vsel %vm2663_vm1, %v8584_v51, %v2622_v27 }
 0x2f7   : > { %2916 = vrot.lane.b32.xlu1 %v2420_v58, %s5117_s26  ;;  %v4942_v58 = vpop.eup %4941  ;;  %v1910_v14 = vmul.f32 %v4940_v22, %v5833_v19  ;;  %8754 = vst [vmem:[#allocation7_spill] sm:$0xff] %v6454_v31  ;;  %v6456_v63 = vpop.xlane.xlu0 %1634  ;;  %v1486_v19 = vmul.f32 %v6440_v32, %v6440_v32  ;;  %v2630_v32 = vrot.slane %v6341_v48, 4 }
 0x2f8   : > { %v1909_v20 = vmul.f32 %v4942_v58, %v5863_v24  ;;  %v6470_v58 = vsel %vm2663_vm1, %v2622_v27, %v2623_v36  ;;  %v6494_v27 = vsel %vm2663_vm1, %v2623_v36, %v2624_v54  ;;  %v1722_v36 = vmul.f32 0.03125, %v6376_v42 }
 0x2f9   : > { %v1981_v22 = vmul.f32 %v6023_v35, %v1910_v14  ;;  %v1666_v5 = vsel %vm1106_vm0, %v1486_v19, 0.0  ;;  %v2626_v14 = vrot.slane %v6290_v44, 4  ;;  %v2627_v19 = vrot.slane %v6293_v1, 4 }
 0x2fa   : > { %v2631_v1 = vrot.slane %v6344_v56, 4  ;;  %v1786_v48 = vadd.f32 1e-05, %v1722_v36 }
 0x2fb   : > { %3012 = vrot.lane.b32.xlu1 %v2581_v4, %s5119_s17  ;;  %v2534_v4 = vsel %vm2502_vm4, %v2469_v8, %v8583_v33  ;;  %v1980_v8 = vmul.f32 %v6023_v35, %v1909_v20  ;;  %v6488_v10 = vadd.f32 %v6039_v61, %v1981_v22  ;;  %v2628_v33 = vrot.slane %v6317_v2, 4 }
 0x2fc   : > { %v2582_v6 = vpack.c.bf16 %v2534_v4, %v2535_v53  ;;  %v1441_v4 = vmul.f32 %v6454_v31, %v6454_v31  ;;  %v2625_v53 = vrot.slane %v6270_v13, 4  ;;  %v6512_v51 = vsel %vm2663_vm1, %v2626_v14, %v2627_v19 }
 0x2fd   : > { %v6499_v24 = vadd.f32 %v6039_v61, %v1980_v8  ;;  %v2629_v22 = vrot.slane %v6314_v41, 4  ;;  %v6524_v31 = vsel %vm2663_vm1, %v2627_v19, %v2628_v33  ;;  %v8595_v19 = vrot.slane %v6488_v10, 4  ;;  %v4944_v41 = vpop.eup %4943 }
 0x2fe   : > { %v6503_v20 = vsel %vm2663_vm1, %v2624_v54, %v2625_v53  ;;  %v6516_v8 = vsel %vm2663_vm1, %v2625_v53, %v2626_v14  ;;  %8755 = vst [vmem:[#allocation62_spill] sm:$0xff] %v6524_v31  ;;  %v1721_v2 = vmul.f32 0.03125, %v6395_v3  ;;  %v6542_v44 = vsel %vm2663_vm1, %v2630_v32, %v2631_v1 }
 0x2ff   : > { %2822 = vrot.lane.b32.xlu1 %v2260_v37, %s5118_s14  ;;  %v1632_v37 = vpop.xlane.xlu1 %1631  ;;  %v2632_v54 = vrot.slane %v6499_v24, 4  ;;  %8757 = vst [vmem:[#allocation64_spill] sm:$0xff] %v6542_v44  ;;  %v1724_v14 = vmul.f32 0.03125, %v6423_v45  ;;  %v1911_v36 = vmul.f32 %v4944_v41, %v5851_v52  ;;  %4947 = vrsqrt.f32 %v1786_v48 }
 0x300   : > { %v1785_v44 = vadd.f32 1e-05, %v1721_v2  ;;  %v1728_v45 = vmul.f32 0.03125, %v6430_v9  ;;  %v1314_v9 = vmul.f32 0.03125, %v5724_v17 }
 0x301   : > { %v6555_v3 = vsel %vm2663_vm1, %v2632_v54, %v8595_v19  ;;  %v6559_v13 = vsel %vm2663_vm1, %v2631_v1, %v2632_v54  ;;  %v1725_v19 = vmul.f32 0.03125, %v6412_v7  ;;  %v1727_v1 = vmul.f32 0.03125, %v6449_v28 }
 0x302   : > { %8759 = vst [vmem:[#allocation66_spill] sm:$0xff] %v6555_v3  ;;  %8760 = vst [vmem:[#allocation67_spill] sm:$0xff] %v6559_v13  ;;  %v1788_v13 = vadd.f32 1e-05, %v1724_v14  ;;  %4949 = vrsqrt.f32 %v1785_v44  ;;  %v1731_v7 = vmul.f32 0.03125, %v6456_v63  ;;  %v1982_v28 = vmul.f32 %v6023_v35, %v1911_v36 }
 0x303   : > { %3014 = vrot.lane.b32.xlu1 %v2582_v6, %s5119_s17  ;;  %v6490_v6 = vpop.xlane.xlu0 %1628  ;;  %v1638_v53 = vpop.xlane.xlu1 %1637  ;;  %v1789_v3 = vadd.f32 1e-05, %v1725_v19  ;;  %v1791_v2 = vadd.f32 1e-05, %v1727_v1  ;;  %v1792_v52 = vadd.f32 1e-05, %v1728_v45 }
 0x304   : > { %v2147_v44 = vrot.slane %v6499_v24, 1  ;;  %v1795_v63 = vadd.f32 1e-05, %v1731_v7 }
 0x307   : > { %v1644_v42 = vpop.xlane.xlu0 %1643  ;;  %v1641_v54 = vpop.xlane.xlu1 %1640 }
 0x308   : > { %v1733_v19 = vmul.f32 0.03125, %v1641_v54 }
 0x309   : > { %1667 = vadd.xlane.f32.xlu0 %v1666_v5  ;;  %v1531_v5 = vsel %vm1106_vm0, %v1441_v4, 0.0  ;;  %v6533_v4 = vsel %vm2663_vm1, %v2628_v33, %v2629_v22  ;;  %v1723_v33 = vmul.f32 0.03125, %v6380_v57 }
 0x30a   : > { %8756 = vst [vmem:[#allocation63_spill] sm:$0xff] %v6533_v4  ;;  %v1797_v7 = vadd.f32 1e-05, %v1733_v19  ;;  %v1316_v19 = vmul.f32 0.03125, %v5745_v30 }
 0x30b   : > { %v1787_v31 = vadd.f32 1e-05, %v1723_v33  ;;  %v1647_v57 = vpop.xlane.xlu0 %1646  ;;  %v1650_v41 = vpop.xlane.xlu1 %1649 }
 0x30d   : > { %1532 = vadd.xlane.f32.xlu0 %v1531_v5  ;;  %v6546_v5 = vsel %vm2663_vm1, %v2629_v22, %v2630_v32  ;;  %v1726_v32 = vmul.f32 0.03125, %v6409_v59  ;;  %v4946_v22 = vpop.eup %4945  ;;  %4951 = vrsqrt.f32 %v1787_v31  ;;  %v1357_v31 = vmul.f32 0.03125, %v6004_v18 }
 0x30e   : > { %8758 = vst [vmem:[#allocation65_spill] sm:$0xff] %v6546_v5  ;;  %v1912_v59 = vmul.f32 %v4946_v22, %v5869_v15  ;;  %v1730_v5 = vmul.f32 0.03125, %v1632_v37  ;;  %v1732_v15 = vmul.f32 0.03125, %v1638_v53  ;;  %v6579_v37 = vadd.f32 %v6039_v61, %v1982_v28 }
 0x30f   : > { %v1790_v4 = vadd.f32 1e-05, %v1726_v32  ;;  %v1656_v14 = vpop.xlane.xlu0 %1655  ;;  %v8600_v53 = vrot.slane %v6488_v10, 1  ;;  %v8761_v18 = vrot.slane %v6344_v56, 1  ;;  %v1653_v1 = vpop.xlane.xlu1 %1652  ;;  %v1735_v28 = vmul.f32 0.03125, %v1647_v57 }
 0x310   : > { %v1983_v33 = vmul.f32 %v6023_v35, %v1912_v59  ;;  %v1794_v48 = vadd.f32 1e-05, %v1730_v5  ;;  %v1734_v5 = vmul.f32 0.03125, %v1644_v42  ;;  %v1736_v42 = vmul.f32 0.03125, %v1650_v41 }
 0x311   : > { %4953 = vrsqrt.f32 %v1790_v4  ;;  %v1796_v4 = vadd.f32 1e-05, %v1732_v15  ;;  %v2210_v17 = vsel %vm2180_vm3, %v2147_v44, %v8600_v53  ;;  %v2634_v59 = vrot.slane %v6579_v37, 4 }
 0x312   : > { %4955 = vrsqrt.f32 %v1788_v13  ;;  %v6582_v35 = vadd.f32 %v6039_v61, %v1983_v33  ;;  %v1729_v13 = vmul.f32 0.03125, %v6490_v6  ;;  %v2211_v61 = vsel %vm2180_vm3, %v8761_v18, %v2147_v44  ;;  %v8764_v6 = vld [vmem:[#allocation13_spill] sm:$0xff] }
 0x313   : > { %4957 = vrsqrt.f32 %v1789_v3  ;;  %v8762_v3 = vld [vmem:[#allocation5_spill] sm:$0xff]  ;;  %v6598_v22 = vsub.f32 %v8764_v6, %v1357_v31  ;;  %v1659_v36 = vpop.xlane.xlu0 %1658  ;;  %v2261_v33 = vpack.c.bf16 %v2210_v17, %v2211_v61  ;;  %v1737_v15 = vmul.f32 0.03125, %v1653_v1 }
 0x314   : > { %4959 = vrsqrt.f32 %v1791_v2  ;;  %v6595_v32 = vsub.f32 %v8762_v3, %v1314_v9  ;;  %v1793_v54 = vadd.f32 1e-05, %v1729_v13  ;;  %v2635_v45 = vrot.slane %v6582_v35, 4  ;;  %v4948_v2 = vpop.eup %4947 }
 0x315   : > { %4961 = vrsqrt.f32 %v1792_v52  ;;  %8765 = vst [vmem:[#allocation13_spill] sm:$0xff] %v6598_v22  ;;  %v1798_v52 = vadd.f32 1e-05, %v1734_v5  ;;  %v8767_v41 = vrot.slane %v6488_v10, 4  ;;  %v4950_v9 = vpop.eup %4949  ;;  %v1315_v31 = vmul.f32 0.03125, %v5732_v25 }
 0x316   : > { %4963 = vrsqrt.f32 %v1794_v48  ;;  %8763 = vst [vmem:[#allocation5_spill] sm:$0xff] %v6595_v32  ;;  %v6606_v48 = vsel %vm2663_vm1, %v2634_v59, %v2635_v45  ;;  %v1485_v57 = vmul.f32 %v6598_v22, %v6598_v22  ;;  %v1914_v5 = vmul.f32 %v4948_v2, %v5860_v60 }
 0x317   : > { %4965 = vrsqrt.f32 %v1795_v63  ;;  %8766 = vst [vmem:[#allocation68_spill] sm:$0xff] %v6606_v48  ;;  %v6612_v44 = vsel %vm2663_vm1, %v8767_v41, %v2634_v59  ;;  %v1739_v63 = vmul.f32 0.03125, %v1659_v36  ;;  %v1800_v17 = vadd.f32 1e-05, %v1736_v42  ;;  %v8769_v59 = vld [vmem:[#allocation6_spill] sm:$0xff]  ;;  %v1662_v41 = vpop.xlane.xlu1 %1661  ;;  %v8771_v42 = vld [vmem:[#allocation8_spill] sm:$0xff] }
 0x318   : > { %4967 = vrsqrt.f32 %v1796_v4  ;;  %8768 = vst [vmem:[#allocation69_spill] sm:$0xff] %v6612_v44  ;;  %v1799_v61 = vadd.f32 1e-05, %v1735_v28  ;;  %v1913_v3 = vmul.f32 %v4950_v9, %v5881_v26  ;;  %v1801_v6 = vadd.f32 1e-05, %v1737_v15 }
 0x319   : > { %4969 = vrsqrt.f32 %v1793_v54  ;;  %v1738_v1 = vmul.f32 0.03125, %v1656_v14  ;;  %v1803_v13 = vadd.f32 1e-05, %v1739_v63  ;;  %v1663_v30 = vsel %vm1106_vm0, %v1485_v57, 0.0  ;;  %v6636_v14 = vld [vmem:[%s8524_s2] ss:$0 sm:$0xff] }
 0x31a   : > { %v4952_v4 = vpop.eup %4951  ;;  %4971 = vrsqrt.f32 %v1797_v7  ;;  %v1442_v60 = vmul.f32 %v6595_v32, %v6595_v32  ;;  %v6630_v2 = vsub.f32 %v8771_v42, %v1316_v19  ;;  %v1359_v26 = vmul.f32 0.03125, %v6000_v34  ;;  %v8789_v32 = vld [vmem:[#allocation35_spill] sm:$0xff] }
 0x31b   : > { %4973 = vrsqrt.f32 %v1798_v52  ;;  %v1985_v7 = vmul.f32 %v6636_v14, %v1914_v5  ;;  %v1915_v28 = vmul.f32 %v4952_v4, %v5873_v29  ;;  %v1802_v34 = vadd.f32 1e-05, %v1738_v1  ;;  %v8773_v4 = vld [vmem:[#allocation12_spill] sm:$0xff] }
 0x31c   : > { %8772 = vst [vmem:[#allocation8_spill] sm:$0xff] %v6630_v2  ;;  %4975 = vrsqrt.f32 %v1800_v17  ;;  %v1740_v63 = vmul.f32 0.03125, %v1662_v41  ;;  %v1534_v17 = vsel %vm1106_vm0, %v1442_v60, 0.0 }
 0x31d   : > { %4977 = vrsqrt.f32 %v1799_v61 }
 0x31e   : > { %v4954_v18 = vpop.eup %4953  ;;  %4979 = vrsqrt.f32 %v1801_v6  ;;  %v1804_v1 = vadd.f32 1e-05, %v1740_v63 }
 0x31f   : > { %v4956_v25 = vpop.eup %4955  ;;  %v1918_v52 = vmul.f32 %v4954_v18, %v5886_v16  ;;  %4981 = vrsqrt.f32 %v1803_v13  ;;  %v6647_v16 = vsub.f32 %v8773_v4, %v1359_v26  ;;  %v1444_v18 = vmul.f32 %v6630_v2, %v6630_v2 }
 0x320   : > { %v4958_v36 = vpop.eup %4957  ;;  %v1916_v15 = vmul.f32 %v4956_v25, %v5899_v46  ;;  %v1986_v13 = vmul.f32 %v6636_v14, %v1915_v28  ;;  %4983 = vrsqrt.f32 %v1802_v34  ;;  %v2620_v4 = vrot.slane %v6188_v0, 4 }
 0x321   : > { %v4960_v54 = vpop.eup %4959  ;;  %v1917_v19 = vmul.f32 %v4958_v36, %v5896_v11  ;;  %8774 = vst [vmem:[#allocation12_spill] sm:$0xff] %v6647_v16  ;;  %v6656_v11 = vld [vmem:[%s8525_s3] ss:$0 sm:$0xff]  ;;  %v1989_v61 = vmul.f32 %v6636_v14, %v1918_v52  ;;  %v6681_v26 = vsel %vm1106_vm0, %v1444_v18, 0.0  ;;  %4985 = vrsqrt.f32 %v1804_v1 }
 0x322   : > { %v4962_v9 = vpop.eup %4961  ;;  %v1919_v5 = vmul.f32 %v4960_v54, %v5905_v23  ;;  %v6659_v23 = vadd.f32 %v6656_v11, %v1985_v7  ;;  %v1987_v25 = vmul.f32 %v6636_v14, %v1916_v15  ;;  %v6675_v54 = vmul.f32 %v6647_v16, %v6647_v16  ;;  %v8780_v1 = vld [vmem:[#allocation53_spill] sm:$0xff] }
 0x323   : > { %2824 = vrot.lane.b32.xlu0 %v2261_v33, %s5118_s14  ;;  %v6624_v33 = vsub.f32 %v8769_v59, %v1315_v31  ;;  %v1984_v31 = vmul.f32 %v6636_v14, %v1913_v3  ;;  %v4964_v57 = vpop.eup %4963  ;;  %v1988_v59 = vmul.f32 %v6636_v14, %v1917_v19  ;;  %v6684_v28 = vadd.f32 %v6656_v11, %v1986_v13  ;;  %v8778_v13 = vld [vmem:[#allocation31_spill] sm:$0xff] }
 0x324   : > { %v4966_v29 = vpop.eup %4965  ;;  %v1990_v41 = vmul.f32 %v6636_v14, %v1919_v5  ;;  %v1922_v60 = vmul.f32 %v4964_v57, %v5914_v47  ;;  %v6687_v52 = vadd.f32 %v6656_v11, %v1989_v61  ;;  %v8601_v34 = vrot.slane %v6659_v23, 4 }
 0x325   : > { %8770 = vst [vmem:[#allocation6_spill] sm:$0xff] %v6624_v33  ;;  %v1443_v46 = vmul.f32 %v6624_v33, %v6624_v33  ;;  %v4968_v3 = vpop.eup %4967  ;;  %v6665_v6 = vadd.f32 %v6656_v11, %v1984_v31  ;;  %v1923_v47 = vmul.f32 %v4966_v29, %v5932_v55  ;;  %v6697_v57 = vadd.f32 %v6656_v11, %v1988_v59 }
 0x326   : > { %v4970_v7 = vpop.eup %4969  ;;  %8775 = vst [vmem:[#allocation70_spill] sm:$0xff] %v6687_v52  ;;  %v6700_v19 = vadd.f32 %v6656_v11, %v1990_v41  ;;  %v1993_v55 = vmul.f32 %v6636_v14, %v1922_v60 }
 0x327   : > { %1664 = vadd.xlane.f32.xlu1 %v1663_v30  ;;  %v1920_v30 = vmul.f32 %v4962_v9, %v5919_v49  ;;  %v6678_v42 = vsel %vm1106_vm0, %v1443_v46, 0.0  ;;  %v6690_v49 = vadd.f32 %v6656_v11, %v1987_v25  ;;  %v4972_v15 = vpop.eup %4971  ;;  %v1924_v9 = vmul.f32 %v4968_v3, %v5936_v39  ;;  %v8779_v3 = vld [vmem:[#allocation54_spill] sm:$0xff] }
 0x328   : > { %v2636_v31 = vrot.slane %v6665_v6, 4  ;;  %v4974_v63 = vpop.eup %4973  ;;  %8776 = vst [vmem:[#allocation71_spill] sm:$0xff] %v6700_v19  ;;  %v1921_v39 = vmul.f32 %v4970_v7, %v5926_v40  ;;  %v1925_v61 = vmul.f32 %v4972_v15, %v8778_v13  ;;  %v8602_v25 = vrot.slane %v6488_v10, 2  ;;  %v8782_v7 = vld [vmem:[#allocation29_spill] sm:$0xff] }
 0x329   : > { %v1991_v5 = vmul.f32 %v6636_v14, %v1920_v30  ;;  %v4976_v18 = vpop.eup %4975  ;;  %v2091_v59 = vpack.c.bf16 %v8780_v1, %v8779_v3  ;;  %v1994_v30 = vmul.f32 %v6636_v14, %v1923_v47  ;;  %v1995_v60 = vmul.f32 %v6636_v14, %v1924_v9 }
 0x32a   : > { %v6711_v46 = vsel %vm2663_vm1, %v2636_v31, %v8601_v34  ;;  %v6721_v40 = vsel %vm2663_vm1, %v2635_v45, %v2636_v31  ;;  %v4978_v41 = vpop.eup %4977  ;;  %v1926_v36 = vmul.f32 %v4974_v63, %v8782_v7  ;;  %v8783_v45 = vrot.slane %v6344_v56, 2  ;;  %v8785_v34 = vld [vmem:[#allocation55_spill] sm:$0xff] }
 0x32b   : > { %1535 = vadd.xlane.f32.xlu1 %v1534_v17  ;;  %v2310_v17 = vrot.slane %v6499_v24, 2  ;;  %8777 = vst [vmem:[#allocation72_spill] sm:$0xff] %v6711_v46  ;;  %8781 = vst [vmem:[#allocation31_spill] sm:$0xff] %v6721_v40  ;;  %v4980_v13 = vpop.eup %4979  ;;  %v2471_v63 = vrot.slane %v6499_v24, 3  ;;  %v8784_v7 = vrot.slane %v6172_v38, 4  ;;  %v8786_v3 = vrot.slane %v8785_v34, 4 }
 0x32c   : > { %v4982_v9 = vpop.eup %4981  ;;  %v1992_v33 = vmul.f32 %v6636_v14, %v1921_v39  ;;  %v1929_v16 = vmul.f32 %v4980_v13, %v8789_v32  ;;  %v8613_v40 = vrot.slane %v6488_v10, 3 }
 0x32d   : > { %v2371_v1 = vsel %vm2341_vm2, %v2310_v17, %v8602_v25  ;;  %v2372_v31 = vsel %vm2341_vm2, %v8783_v45, %v2310_v17  ;;  %v2705_v15 = vsel %vm2663_vm1, %v2620_v4, %v8784_v7  ;;  %v2706_v25 = vsel %vm2663_vm1, %v8786_v3, %v2620_v4  ;;  %v8788_v45 = vld [vmem:[#allocation30_spill] sm:$0xff]  ;;  %v4984_v44 = vpop.eup %4983 }
 0x32e   : > { %v1996_v17 = vmul.f32 %v6636_v14, %v1925_v61  ;;  %v1927_v2 = vmul.f32 %v4978_v41, %v8788_v45  ;;  %v8790_v4 = vld [vmem:[#allocation34_spill] sm:$0xff]  ;;  %v2422_v39 = vpack.c.bf16 %v2371_v1, %v2372_v31  ;;  %v2738_v48 = vpack.c.bf16 %v2705_v15, %v2706_v25 }
 0x32f   : > { %v1931_v3 = vmul.f32 %v4982_v9, %v8790_v4  ;;  %v2532_v32 = vsel %vm2502_vm4, %v2471_v63, %v8613_v40  ;;  %v8791_v41 = vrot.slane %v6344_v56, 3  ;;  %v6769_v1 = vadd.f32 %v6656_v11, %v1991_v5 }
 0x330   : > { %v1669_v25 = vsel %vm1106_vm0, %v6675_v54, 0.0  ;;  %v6778_v15 = vadd.f32 %v6656_v11, %v1993_v55  ;;  %v6781_v31 = vadd.f32 %v6656_v11, %v1994_v30  ;;  %v2000_v5 = vmul.f32 %v6636_v14, %v1929_v16 }
 0x331   : > { %8792 = vst [vmem:[#allocation53_spill] sm:$0xff] %v6769_v1  ;;  %v2002_v54 = vmul.f32 %v6636_v14, %v1931_v3  ;;  %v6793_v55 = vadd.f32 %v6656_v11, %v1996_v17 }
 0x332   : > { %8793 = vst [vmem:[#allocation29_spill] sm:$0xff] %v6778_v15  ;;  %8794 = vst [vmem:[#allocation55_spill] sm:$0xff] %v6781_v31  ;;  %v6813_v4 = vadd.f32 %v6656_v11, %v2000_v5  ;;  %v2643_v5 = vrot.slane %v6769_v1, 4 }
 0x333   : > { %8797 = vst [vmem:[#allocation30_spill] sm:$0xff] %v6793_v55 }
 0x334   : > { %8801 = vst [vmem:[#allocation73_spill] sm:$0xff] %v6813_v4 }
 0x33c   : > { %2920 = vrot.lane.b32.xlu1 %v2422_v39, %s5117_s26 }
 0x33f   : > { %v2907_v29 = vpop.permute.xlu1 %2906 }
 0x340   : > { %v2811_v53 = vpop.permute.xlu0 %2810 }
 0x341   : > { %v3077_v47 = vsel %vm1106_vm0, %v2091_v59, %v2811_v53  ;;  %v8787_v53 = vld [vmem:[#allocation32_spill] sm:$0xff] }
 0x342   : > { %v1928_v59 = vmul.f32 %v4976_v18, %v8787_v53  ;;  %v3164_v7 = vsel %vm3144_vm5, %v3077_v47, %v2907_v29  ;;  %v1997_v18 = vmul.f32 %v6636_v14, %v1926_v36  ;;  %v2533_v29 = vsel %vm2502_vm4, %v8791_v41, %v2471_v63  ;;  %v8795_v47 = vld [vmem:[#allocation33_spill] sm:$0xff]  ;;  %v4986_v63 = vpop.eup %4985  ;;  %1670 = vadd.xlane.f32.xlu0 %v1669_v25 }
 0x343   : > { %v3003_v46 = vpop.permute.xlu1 %3002  ;;  %v1998_v36 = vmul.f32 %v6636_v14, %v1927_v2  ;;  %v1930_v9 = vmul.f32 %v4984_v44, %v8795_v47  ;;  %v6786_v2 = vadd.f32 %v6656_v11, %v1995_v60  ;;  %v6789_v53 = vadd.f32 %v6656_v11, %v1992_v33 }
 0x344   : > { %v3238_v61 = vsel %vm3209_vm6, %v3164_v7, %v3003_v46  ;;  %v1999_v46 = vmul.f32 %v6636_v14, %v1928_v59  ;;  %v2813_v59 = vpop.permute.xlu0 %2812  ;;  %v6796_v30 = vadd.f32 %v6656_v11, %v1997_v18  ;;  %v2092_v44 = vpack.c.bf16 %v6188_v0, %v8785_v34  ;;  %v8802_v34 = vld [vmem:[#allocation11_spill] sm:$0xff] }
 0x345   : > { %3636 = vmatmul.mubr.bf16.vlgmr.msra.gmra.mxu1 %v3238_v61  ;;  %8796 = vst [vmem:[#allocation32_spill] sm:$0xff] %v6786_v2  ;;  %v6806_v33 = vadd.f32 %v6656_v11, %v1998_v36  ;;  %v2638_v7 = vrot.slane %v6684_v28, 4  ;;  %v2001_v0 = vmul.f32 %v6636_v14, %v1930_v9  ;;  %v1932_v3 = vmul.f32 %v4986_v63, %v8802_v34 }
 0x346   : > { %4603 = vmatprep.mubr.msk.bf16.mxu1 %vm1106_vm0, %v2738_v48  ;;  %v2583_v48 = vpack.c.bf16 %v2532_v32, %v2533_v29  ;;  %8798 = vst [vmem:[#allocation35_spill] sm:$0xff] %v6796_v30  ;;  %v6803_v60 = vadd.f32 %v6656_v11, %v1999_v46  ;;  %v3080_v39 = vsel %vm1106_vm0, %v2092_v44, %v2813_v59  ;;  %v2639_v32 = vrot.slane %v6690_v49, 4 }
 0x347   : > { %8800 = vst [vmem:[#allocation33_spill] sm:$0xff] %v6806_v33  ;;  %v6819_v61 = vadd.f32 %v6656_v11, %v2002_v54  ;;  %v8804_v41 = vrot.slane %v6659_v23, 4  ;;  %v2640_v46 = vrot.slane %v6697_v57, 4  ;;  %v2641_v36 = vrot.slane %v6687_v52, 4  ;;  %1538 = vadd.xlane.f32.xlu0 %v6678_v42 }
 0x348   : > { %8799 = vst [vmem:[#allocation34_spill] sm:$0xff] %v6803_v60  ;;  %3016 = vrot.lane.b32.xlu1 %v2583_v48, %s5119_s17  ;;  %v2909_v45 = vpop.permute.xlu1 %2908  ;;  %v2642_v25 = vrot.slane %v6700_v19, 4  ;;  %v6835_v47 = vsel %vm2663_vm1, %v2638_v7, %v2639_v32  ;;  %v2644_v63 = vrot.slane %v6789_v53, 4  ;;  %v2645_v54 = vrot.slane %v6778_v15, 4 }
 0x349   : > { %8803 = vst [vmem:[#allocation11_spill] sm:$0xff] %v6819_v61  ;;  %v3166_v18 = vsel %vm3144_vm5, %v3080_v39, %v2909_v45  ;;  %v6827_v29 = vsel %vm2663_vm1, %v8804_v41, %v2638_v7  ;;  %v6846_v59 = vsel %vm2663_vm1, %v2640_v46, %v2641_v36  ;;  %v6850_v44 = vsel %vm2663_vm1, %v2639_v32, %v2640_v46 }
 0x34a   : > { %v6854_v45 = vsel %vm2663_vm1, %v2642_v25, %v2643_v5  ;;  %v6860_v42 = vsel %vm2663_vm1, %v2641_v36, %v2642_v25  ;;  %v6864_v39 = vsel %vm2663_vm1, %v2644_v63, %v2645_v54  ;;  %v6868_v32 = vsel %vm2663_vm1, %v2643_v5, %v2644_v63 }
 0x34b   : > { %8805 = vst [vmem:[#allocation74_spill] sm:$0xff] %v6864_v39  ;;  %8806 = vst [vmem:[#allocation75_spill] sm:$0xff] %v6868_v32  ;;  %v2646_v5 = vrot.slane %v6781_v31, 4  ;;  %v6884_v63 = vadd.f32 %v6656_v11, %v2001_v0  ;;  %1541 = vadd.xlane.f32.xlu0 %v6681_v26  ;;  %v2648_v0 = vrot.slane %v6793_v55, 4  ;;  %v2649_v26 = vrot.slane %v6796_v30, 4 }
 0x34c   : > { %v3005_v7 = vpop.permute.xlu1 %3004  ;;  %v2003_v16 = vmul.f32 %v6636_v14, %v1932_v3  ;;  %v2651_v9 = vrot.slane %v6803_v60, 4 }
 0x34d   : > { %v3241_v41 = vsel %vm3209_vm6, %v3166_v18, %v3005_v7  ;;  %v2647_v18 = vrot.slane %v6786_v2, 4  ;;  %8807 = vst [vmem:[#allocation76_spill] sm:$0xff] %v6884_v63  ;;  %v8808_v7 = vpack.c.bf16 %v6470_v58, %v6476_v50  ;;  %v6899_v36 = vsel %vm2663_vm1, %v2645_v54, %v2646_v5 }
 0x34e   : > { %3644 = vmatmul.mubr.bf16.gmra.mxu1 %v3241_v41  ;;  %8810 = vst [vmem:[#allocation78_spill] sm:$0xff] %v6899_v36  ;;  %v2650_v58 = vrot.slane %v6806_v33, 4  ;;  %v6923_v46 = vadd.f32 %v6656_v11, %v2003_v16 }
 0x34f   : > { %4604 = vmatprep.mubr.msk.bf16.mxu1 %vm1106_vm0, %v8808_v7  ;;  %v6895_v25 = vsel %vm2663_vm1, %v2646_v5, %v2647_v18  ;;  %v6908_v7 = vsel %vm2663_vm1, %v2648_v0, %v2649_v26  ;;  %v6912_v41 = vsel %vm2663_vm1, %v2647_v18, %v2648_v0  ;;  %v2093_v5 = vpack.c.bf16 %v6233_v21, %v6172_v38  ;;  %v2911_v21 = vpop.permute.xlu0 %2910 }
 0x350   : > { %8809 = vst [vmem:[#allocation77_spill] sm:$0xff] %v6895_v25  ;;  %v2815_v50 = vpop.permute.xlu1 %2814  ;;  %8811 = vst [vmem:[#allocation79_spill] sm:$0xff] %v6908_v7  ;;  %v2652_v18 = vrot.slane %v6813_v4, 4  ;;  %v2653_v0 = vrot.slane %v6884_v63, 4  ;;  %v6930_v54 = vsel %vm2663_vm1, %v2650_v58, %v2651_v9  ;;  %v6934_v38 = vsel %vm2663_vm1, %v2649_v26, %v2650_v58  ;;  %v8859_v25 = vld [vmem:[#allocation69_spill] sm:$0xff] }
 0x351   : > { %8812 = vst [vmem:[#allocation80_spill] sm:$0xff] %v6912_v41  ;;  %v3083_v13 = vsel %vm1106_vm0, %v2093_v5, %v2815_v50  ;;  %8813 = vst [vmem:[#allocation81_spill] sm:$0xff] %v6930_v54  ;;  %v2654_v26 = vrot.slane %v6819_v61, 4  ;;  %v8612_v3 = vrot.slane %v6923_v46, 4  ;;  %v8855_v41 = vld [vmem:[#allocation47_spill] sm:$0xff] }
 0x352   : > { %8814 = vst [vmem:[#allocation82_spill] sm:$0xff] %v6934_v38  ;;  %v6940_v16 = vsel %vm2663_vm1, %v2652_v18, %v2653_v0  ;;  %v6944_v50 = vsel %vm2663_vm1, %v2651_v9, %v2652_v18  ;;  %v3168_v34 = vsel %vm3144_vm5, %v3083_v13, %v2911_v21  ;;  %v8818_v9 = vpack.c.bf16 %v6503_v20, %v6494_v27  ;;  %v8820_v21 = vld [vmem:[#allocation37_spill] sm:$0xff]  ;;  %v8821_v27 = vld [vmem:[#allocation15_spill] sm:$0xff] }
 0x353   : > { %8815 = vst [vmem:[#allocation83_spill] sm:$0xff] %v6940_v16  ;;  %8816 = vst [vmem:[#allocation84_spill] sm:$0xff] %v6944_v50  ;;  %v6954_v48 = vsel %vm2663_vm1, %v2653_v0, %v2654_v26  ;;  %v6964_v13 = vsel %vm2663_vm1, %v2654_v26, %v8612_v3  ;;  %v2817_v22 = vpop.permute.xlu0 %2816  ;;  %v8822_v26 = vpack.c.bf16 %v6265_v12, %v6240_v62  ;;  %v8823_v18 = vrot.slane %v6488_v10, 2 }
 0x354   : > { %8817 = vst [vmem:[#allocation85_spill] sm:$0xff] %v6954_v48  ;;  %8819 = vst [vmem:[#allocation86_spill] sm:$0xff] %v6964_v13  ;;  %v8824_v62 = vpack.c.bf16 %v6512_v51, %v6516_v8  ;;  %v8829_v51 = vld [vmem:[#allocation62_spill] sm:$0xff]  ;;  %v8626_v7 = vrot.slane %v8855_v41, 1 }
 0x355   : > { %v3007_v5 = vpop.permute.xlu1 %3006  ;;  %v3086_v3 = vsel %vm1106_vm0, %v8822_v26, %v2817_v22  ;;  %v8825_v22 = vld [vmem:[#allocation57_spill] sm:$0xff] }
 0x356   : > { %v3244_v58 = vsel %vm3209_vm6, %v3168_v34, %v3007_v5  ;;  %v2313_v34 = vrot.slane %v6582_v35, 2  ;;  %v1360_v5 = vmul.f32 0.03125, %v8820_v21 }
 0x357   : > { %3652 = vmatmul.mubr.bf16.gmra.mxu1 %v3244_v58  ;;  %v2312_v58 = vrot.slane %v6579_v37, 2 }
 0x358   : > { %4605 = vmatprep.mubr.msk.bf16.mxu1 %vm1106_vm0, %v8818_v9  ;;  %v6976_v9 = vsub.f32 %v8821_v27, %v1360_v5 }
 0x359   : > { %v2913_v0 = vpop.permute.xlu1 %2912  ;;  %v2369_v20 = vsel %vm2341_vm2, %v2312_v58, %v2313_v34  ;;  %v2370_v21 = vsel %vm2341_vm2, %v8823_v18, %v2312_v58  ;;  %v8826_v18 = vld [vmem:[#allocation56_spill] sm:$0xff] }
 0x35a   : > { %v3170_v17 = vsel %vm3144_vm5, %v3086_v3, %v2913_v0  ;;  %v2423_v48 = vpack.c.bf16 %v2369_v20, %v2370_v21  ;;  %v1488_v5 = vmul.f32 %v6976_v9, %v6976_v9  ;;  %v8827_v58 = vpack.c.bf16 %v8825_v22, %v8826_v18  ;;  %v2915_v0 = vpop.permute.xlu0 %2914  ;;  %v8828_v20 = vld [vmem:[#allocation63_spill] sm:$0xff]  ;;  %v8831_v21 = vld [vmem:[#allocation60_spill] sm:$0xff] }
 0x35b   : > { %v8830_v8 = vpack.c.bf16 %v8828_v20, %v8829_v51  ;;  %v8617_v20 = vrot.slane %v6582_v35, 3  ;;  %v8837_v51 = vld [vmem:[#allocation36_spill] sm:$0xff] }
 0x35d   : > { %v3009_v40 = vpop.permute.xlu1 %3008 }
 0x35e   : > { %v3247_v13 = vsel %vm3209_vm6, %v3170_v17, %v3009_v40  ;;  %v1672_v40 = vsel %vm1106_vm0, %v1488_v5, 0.0  ;;  %v2821_v27 = vpop.permute.xlu0 %2820  ;;  %v8616_v5 = vrot.slane %v6582_v35, 1 }
 0x35f   : > { %3660 = vmatmul.mubr.bf16.gmra.mxu1 %v3247_v13 }
 0x360   : > { %4606 = vmatprep.mubr.msk.bf16.mxu1 %vm1106_vm0, %v8824_v62  ;;  %v8832_v62 = vld [vmem:[#allocation58_spill] sm:$0xff] }
 0x361   : > { %2922 = vrot.lane.b32.xlu0 %v2423_v48, %s5117_s26  ;;  %v2819_v12 = vpop.permute.xlu1 %2818 }
 0x362   : > { %v3089_v3 = vsel %vm1106_vm0, %v8827_v58, %v2819_v12  ;;  %v8833_v12 = vpack.c.bf16 %v8831_v21, %v8832_v62  ;;  %v8839_v21 = vld [vmem:[#allocation59_spill] sm:$0xff] }
 0x363   : > { %v3172_v48 = vsel %vm3144_vm5, %v3089_v3, %v2915_v0  ;;  %v2149_v0 = vrot.slane %v6579_v37, 1 }
 0x364   : > { %v3092_v22 = vsel %vm1106_vm0, %v8833_v12, %v2821_v27 }
 0x365   : > { %v3011_v17 = vpop.permute.xlu1 %3010 }
 0x366   : > { %v3250_v13 = vsel %vm3209_vm6, %v3172_v48, %v3011_v17  ;;  %v8835_v17 = vld [vmem:[#allocation65_spill] sm:$0xff] }
 0x367   : > { %3668 = vmatmul.mubr.bf16.gmra.mxu1 %v3250_v13  ;;  %v2208_v13 = vsel %vm2180_vm3, %v2149_v0, %v8616_v5  ;;  %v8843_v5 = vld [vmem:[#allocation14_spill] sm:$0xff] }
 0x368   : > { %4607 = vmatprep.mubr.msk.bf16.mxu1 %vm1106_vm0, %v8830_v8  ;;  %v1362_v8 = vmul.f32 0.03125, %v8837_v51 }
 0x369   : > { %v2917_v26 = vpop.permute.xlu1 %2916 }
 0x36a   : > { %v3174_v18 = vsel %vm3144_vm5, %v3092_v22, %v2917_v26  ;;  %v8838_v26 = vld [vmem:[#allocation61_spill] sm:$0xff]  ;;  %v8841_v22 = vrot.slane %v6488_v10, 1 }
 0x36b   : > { %v8840_v62 = vpack.c.bf16 %v8838_v26, %v8839_v21  ;;  %v7039_v26 = vsub.f32 %v8843_v5, %v1362_v8  ;;  %v8848_v5 = vld [vmem:[#allocation9_spill] sm:$0xff] }
 0x36c   : > { %1673 = vadd.xlane.f32.xlu1 %v1672_v40  ;;  %v8834_v40 = vld [vmem:[#allocation64_spill] sm:$0xff] }
 0x36d   : > { %v3013_v58 = vpop.permute.xlu1 %3012  ;;  %v8836_v48 = vpack.c.bf16 %v8834_v40, %v8835_v17  ;;  %v2919_v40 = vpop.permute.xlu0 %2918 }
 0x36e   : > { %v3253_v3 = vsel %vm3209_vm6, %v3174_v18, %v3013_v58  ;;  %v2209_v18 = vsel %vm2180_vm3, %v8841_v22, %v2149_v0  ;;  %v2473_v58 = vrot.slane %v6579_v37, 3 }
 0x36f   : > { %3676 = vmatmul.mubr.bf16.gmra.mxu1 %v3253_v3  ;;  %v2262_v3 = vpack.c.bf16 %v2208_v13, %v2209_v18  ;;  %v8844_v13 = vrot.slane %v6488_v10, 3  ;;  %v8845_v18 = vld [vmem:[#allocation66_spill] sm:$0xff] }
 0x370   : > { %4608 = vmatprep.mubr.msk.bf16.mxu1 %vm1106_vm0, %v8836_v48  ;;  %v2530_v17 = vsel %vm2502_vm4, %v2473_v58, %v8617_v20  ;;  %v8842_v48 = vld [vmem:[#allocation28_spill] sm:$0xff]  ;;  %v8846_v20 = vld [vmem:[#allocation67_spill] sm:$0xff] }
 0x371   : > { %v2823_v27 = vpop.permute.xlu1 %2822  ;;  %v1317_v51 = vmul.f32 0.03125, %v8842_v48  ;;  %v8847_v48 = vpack.c.bf16 %v8845_v18, %v8846_v20  ;;  %v2314_v20 = vrot.slane %v6665_v6, 2  ;;  %v2153_v18 = vrot.slane %v6684_v28, 1 }
 0x372   : > { %v3095_v12 = vsel %vm1106_vm0, %v8840_v62, %v2823_v27  ;;  %v2531_v62 = vsel %vm2502_vm4, %v8844_v13, %v2473_v58  ;;  %v2154_v13 = vrot.slane %v6690_v49, 1 }
 0x373   : > { %v3176_v21 = vsel %vm3144_vm5, %v3095_v12, %v2919_v40  ;;  %v2584_v22 = vpack.c.bf16 %v2530_v17, %v2531_v62  ;;  %v7053_v8 = vsub.f32 %v8848_v5, %v1317_v51  ;;  %v1490_v12 = vmul.f32 %v7039_v26, %v7039_v26  ;;  %v8849_v17 = vld [vmem:[#allocation39_spill] sm:$0xff]  ;;  %v8850_v62 = vld [vmem:[#allocation17_spill] sm:$0xff] }
 0x374   : > { %v2315_v51 = vrot.slane %v6659_v23, 2  ;;  %v2152_v5 = vrot.slane %v6659_v23, 1 }
 0x375   : > { %v3015_v27 = vpop.permute.xlu1 %3014  ;;  %v1445_v58 = vmul.f32 %v7053_v8, %v7053_v8 }
 0x376   : > { %v3256_v0 = vsel %vm3209_vm6, %v3176_v21, %v3015_v27  ;;  %v1361_v27 = vmul.f32 0.03125, %v8849_v17  ;;  %v2367_v21 = vsel %vm2341_vm2, %v2314_v20, %v2315_v51 }
 0x377   : > { %3684 = vmatmul.mubr.bf16.gmra.mxu1 %v3256_v0  ;;  %v1543_v40 = vsel %vm1106_vm0, %v1445_v58, 0.0  ;;  %v2368_v0 = vsel %vm2341_vm2, %v2313_v34, %v2314_v20  ;;  %v2205_v58 = vsel %vm2180_vm3, %v2152_v5, %v2153_v18 }
 0x378   : > { %4609 = vmatprep.mubr.msk.bf16.mxu1 %vm1106_vm0, %v8847_v48  ;;  %v2424_v48 = vpack.c.bf16 %v2367_v21, %v2368_v0 }
 0x37d   : > { %2826 = vrot.lane.b32.xlu1 %v2262_v3, %s5118_s14  ;;  %v1678_v3 = vsel %vm1106_vm0, %v1490_v12, 0.0  ;;  %v2204_v12 = vsel %vm2180_vm3, %v2153_v18, %v2154_v13  ;;  %v2476_v18 = vrot.slane %v6659_v23, 3 }
 0x37e   : > { %v2264_v20 = vpack.c.bf16 %v2204_v12, %v2205_v58  ;;  %v2155_v58 = vrot.slane %v6697_v57, 1 }
 0x380   : > { %1679 = vadd.xlane.f32.xlu0 %v1678_v3  ;;  %v2317_v3 = vrot.slane %v6690_v49, 2 }
 0x381   : > { %3018 = vrot.lane.b32.xlu1 %v2584_v22, %s5119_s17  ;;  %v7073_v22 = vsub.f32 %v8850_v62, %v1361_v27  ;;  %v2478_v27 = vrot.slane %v6690_v49, 3  ;;  %v2477_v62 = vrot.slane %v6684_v28, 3 }
 0x383   : > { %v1489_v34 = vmul.f32 %v7073_v22, %v7073_v22  ;;  %v2526_v12 = vsel %vm2502_vm4, %v2477_v62, %v2478_v27 }
 0x384   : > { %1544 = vadd.xlane.f32.xlu0 %v1543_v40  ;;  %v2316_v40 = vrot.slane %v6684_v28, 2 }
 0x385   : > { %v1675_v21 = vsel %vm1106_vm0, %v1489_v34, 0.0  ;;  %v2156_v34 = vrot.slane %v6687_v52, 1 }
 0x386   : > { %v2365_v17 = vsel %vm2341_vm2, %v2316_v40, %v2317_v3  ;;  %v2366_v0 = vsel %vm2341_vm2, %v2315_v51, %v2316_v40  ;;  %v2203_v40 = vsel %vm2180_vm3, %v2154_v13, %v2155_v58 }
 0x387   : > { %v2202_v51 = vsel %vm2180_vm3, %v2155_v58, %v2156_v34  ;;  %v8851_v58 = vrot.slane %v6582_v35, 1 }
 0x388   : > { %v2265_v50 = vpack.c.bf16 %v2202_v51, %v2203_v40  ;;  %v2480_v51 = vrot.slane %v6687_v52, 3  ;;  %v2475_v40 = vrot.slane %v6665_v6, 3 }
 0x392   : > { %v7130_v38 = vpop.xlane.xlu0 %1667 }
 0x39a   : > { %2924 = vrot.lane.b32.xlu0 %v2424_v48, %s5117_s26  ;;  %v2425_v48 = vpack.c.bf16 %v2365_v17, %v2366_v0  ;;  %v2318_v17 = vrot.slane %v6697_v57, 2  ;;  %v2319_v0 = vrot.slane %v6687_v52, 2 }
 0x39e   : > { %2830 = vrot.lane.b32.xlu0 %v2264_v20, %s5118_s14  ;;  %v2527_v20 = vsel %vm2502_vm4, %v2476_v18, %v2477_v62  ;;  %v2363_v62 = vsel %vm2341_vm2, %v2318_v17, %v2319_v0 }
 0x3a2   : > { %2926 = vrot.lane.b32.xlu0 %v2425_v48, %s5117_s26  ;;  %v2151_v48 = vrot.slane %v6665_v6, 1 }
 0x3a4   : > { %v2206_v13 = vsel %vm2180_vm3, %v2151_v48, %v2152_v5  ;;  %v8621_v5 = vrot.slane %v6769_v1, 1 }
 0x3a5   : > { %1676 = vadd.xlane.f32.xlu1 %v1675_v21  ;;  %v2586_v21 = vpack.c.bf16 %v2526_v12, %v2527_v20  ;;  %v2364_v12 = vsel %vm2341_vm2, %v2317_v3, %v2318_v17  ;;  %v2479_v20 = vrot.slane %v6697_v57, 3 }
 0x3a6   : > { %v2426_v16 = vpack.c.bf16 %v2363_v62, %v2364_v12  ;;  %v8852_v62 = vrot.slane %v6582_v35, 3 }
 0x3a7   : > { %3022 = vrot.lane.b32.xlu0 %v2586_v21, %s5119_s17  ;;  %v2207_v21 = vsel %vm2180_vm3, %v8851_v58, %v2151_v48  ;;  %v2524_v3 = vsel %vm2502_vm4, %v2479_v20, %v2480_v51  ;;  %v2525_v17 = vsel %vm2502_vm4, %v2478_v27, %v2479_v20  ;;  %v2528_v58 = vsel %vm2502_vm4, %v2475_v40, %v2476_v18 }
 0x3a8   : > { %v2263_v48 = vpack.c.bf16 %v2206_v13, %v2207_v21  ;;  %v2529_v12 = vsel %vm2502_vm4, %v8852_v62, %v2475_v40  ;;  %v2587_v27 = vpack.c.bf16 %v2524_v3, %v2525_v17  ;;  %v2320_v13 = vrot.slane %v6700_v19, 2  ;;  %v7151_v62 = vpop.xlane.xlu0 %1532 }
 0x3a9   : > { %v2321_v18 = vrot.slane %v6769_v1, 2  ;;  %v2585_v40 = vpack.c.bf16 %v2528_v58, %v2529_v12 }
 0x3ab   : > { %2832 = vrot.lane.b32.xlu0 %v2265_v50, %s5118_s14  ;;  %v2157_v50 = vrot.slane %v6700_v19, 1  ;;  %v2361_v17 = vsel %vm2341_vm2, %v2320_v13, %v2321_v18 }
 0x3ad   : > { %v2200_v20 = vsel %vm2180_vm3, %v2157_v50, %v8621_v5  ;;  %v2825_v5 = vpop.permute.xlu0 %2824 }
 0x3af   : > { %2928 = vrot.lane.b32.xlu0 %v2426_v16, %s5117_s26  ;;  %v2201_v16 = vsel %vm2180_vm3, %v2156_v34, %v2157_v50  ;;  %v2362_v34 = vsel %vm2341_vm2, %v2319_v0, %v2320_v13  ;;  %v2481_v50 = vrot.slane %v6700_v19, 3  ;;  %v8854_v13 = vld [vmem:[#allocation48_spill] sm:$0xff]  ;;  %v8870_v19 = vld [vmem:[#allocation18_spill] sm:$0xff] }
 0x3b0   : > { %v7149_v21 = vpop.xlane.xlu1 %1664  ;;  %v2266_v3 = vpack.c.bf16 %v2200_v20, %v2201_v16  ;;  %v2427_v58 = vpack.c.bf16 %v2361_v17, %v2362_v34  ;;  %v8853_v16 = vld [vmem:[#allocation50_spill] sm:$0xff]  ;;  %v8629_v54 = vrot.slane %v8854_v13, 1  ;;  %v8856_v17 = vpack.c.bf16 %v6499_v24, %v6344_v56  ;;  %v8857_v56 = vld [vmem:[#allocation45_spill] sm:$0xff] }
 0x3b1   : > { %v2523_v20 = vsel %vm2502_vm4, %v2480_v51, %v2481_v50  ;;  %v1690_v24 = vmul.f32 0.03125, %v8857_v56 }
 0x3b2   : > { %v3098_v34 = vsel %vm1106_vm0, %v8856_v17, %v2825_v5 }
 0x3b3   : > { %3024 = vrot.lane.b32.xlu0 %v2587_v27, %s5119_s17 }
 0x3b4   : > { %v7161_v27 = vpop.xlane.xlu1 %1535 }
 0x3b6   : > { %2828 = vrot.lane.b32.xlu1 %v2263_v48, %s5118_s14  ;;  %v2482_v48 = vrot.slane %v6769_v1, 3 }
 0x3b7   : > { %2834 = vrot.lane.b32.xlu0 %v2266_v3, %s5118_s14 }
 0x3b8   : > { %v2522_v12 = vsel %vm2502_vm4, %v2481_v50, %v2482_v48  ;;  %v2921_v0 = vpop.permute.xlu1 %2920 }
 0x3b9   : > { %v2588_v3 = vpack.c.bf16 %v2522_v12, %v2523_v20  ;;  %v3178_v36 = vsel %vm3144_vm5, %v3098_v34, %v2921_v0  ;;  %v2323_v20 = vrot.slane %v6778_v15, 2  ;;  %v8861_v34 = vld [vmem:[#allocation40_spill] sm:$0xff] }
 0x3ba   : > { %3020 = vrot.lane.b32.xlu1 %v2585_v40, %s5119_s17  ;;  %v2115_v40 = vrot.slane %v8853_v16, 1  ;;  %v1687_v56 = vmul.f32 0.03125, %v8861_v34 }
 0x3bb   : > { %2930 = vrot.lane.b32.xlu0 %v2427_v58, %s5117_s26  ;;  %v2322_v58 = vrot.slane %v6789_v53, 2 }
 0x3bc   : > { %v2242_v51 = vsel %vm2180_vm3, %v2115_v40, %v8626_v7  ;;  %v2243_v50 = vsel %vm2180_vm3, %v8629_v54, %v2115_v40  ;;  %v3017_v12 = vpop.permute.xlu1 %3016  ;;  %v8858_v7 = vld [vmem:[#allocation68_spill] sm:$0xff]  ;;  %v8863_v54 = vld [vmem:[#allocation38_spill] sm:$0xff] }
 0x3bd   : > { %v3259_v5 = vsel %vm3209_vm6, %v3178_v36, %v3017_v12  ;;  %v2245_v17 = vpack.c.bf16 %v2242_v51, %v2243_v50  ;;  %v8860_v32 = vpack.c.bf16 %v8858_v7, %v8859_v25  ;;  %v2359_v40 = vsel %vm2341_vm2, %v2322_v58, %v2323_v20  ;;  %v8862_v51 = vld [vmem:[#allocation41_spill] sm:$0xff] }
 0x3be   : > { %3692 = vmatmul.mubr.bf16.gmra.mxu1 %v3259_v5  ;;  %v2360_v0 = vsel %vm2341_vm2, %v2321_v18, %v2322_v58  ;;  %v1754_v36 = vadd.f32 1e-05, %v1690_v24  ;;  %v1688_v50 = vmul.f32 0.03125, %v8862_v51  ;;  %v8630_v12 = vrot.slane %v8854_v13, 2 }
 0x3bf   : > { %3026 = vrot.lane.b32.xlu0 %v2588_v3, %s5119_s17  ;;  %4610 = vmatprep.mubr.msk.bf16.mxu1 %vm1106_vm0, %v8860_v32  ;;  %v2278_v3 = vrot.slane %v8853_v16, 2  ;;  %v8631_v25 = vrot.slane %v8855_v41, 2  ;;  %v2428_v32 = vpack.c.bf16 %v2359_v40, %v2360_v0  ;;  %v2483_v58 = vrot.slane %v6789_v53, 3 }
 0x3c0   : > { %v1751_v24 = vadd.f32 1e-05, %v1687_v56  ;;  %4987 = vrsqrt.f32 %v1754_v36  ;;  %v1752_v5 = vadd.f32 1e-05, %v1688_v50  ;;  %v2162_v51 = vrot.slane %v6786_v2, 1 }
 0x3c1   : > { %v2403_v7 = vsel %vm2341_vm2, %v2278_v3, %v8631_v25  ;;  %v2404_v18 = vsel %vm2341_vm2, %v8630_v12, %v2278_v3  ;;  %v2521_v34 = vsel %vm2502_vm4, %v2482_v48, %v2483_v58  ;;  %v1363_v3 = vmul.f32 0.03125, %v8863_v54  ;;  %v8866_v54 = vld [vmem:[#allocation43_spill] sm:$0xff] }
 0x3c2   : > { %v2406_v40 = vpack.c.bf16 %v2403_v7, %v2404_v18  ;;  %4989 = vrsqrt.f32 %v1751_v24  ;;  %v8632_v56 = vrot.slane %v6778_v15, 1  ;;  %v2161_v36 = vrot.slane %v6781_v31, 1  ;;  %v8864_v18 = vld [vmem:[#allocation16_spill] sm:$0xff] }
 0x3c3   : > { %2792 = vrot.lane.b32.xlu0 %v2245_v17, %s5118_s14  ;;  %v2484_v17 = vrot.slane %v6778_v15, 3  ;;  %4991 = vrsqrt.f32 %v1752_v5  ;;  %v2325_v7 = vrot.slane %v6786_v2, 2  ;;  %v7227_v48 = vsub.f32 %v8864_v18, %v1363_v3 }
 0x3c4   : > { %v2197_v24 = vsel %vm2180_vm3, %v8632_v56, %v2161_v36  ;;  %v2324_v5 = vrot.slane %v6781_v31, 2  ;;  %v2163_v56 = vrot.slane %v6793_v55, 1 }
 0x3c5   : > { %v2520_v0 = vsel %vm2502_vm4, %v2483_v58, %v2484_v17  ;;  %8865 = vst [vmem:[#allocation37_spill] sm:$0xff] %v7227_v48  ;;  %v1689_v58 = vmul.f32 0.03125, %v8866_v54  ;;  %v1491_v3 = vmul.f32 %v7227_v48, %v7227_v48  ;;  %v8869_v48 = vld [vmem:[#allocation19_spill] sm:$0xff] }
 0x3c6   : > { %v2589_v50 = vpack.c.bf16 %v2520_v0, %v2521_v34  ;;  %v2357_v0 = vsel %vm2341_vm2, %v2324_v5, %v2325_v7  ;;  %v2486_v34 = vrot.slane %v6786_v2, 3  ;;  %v2358_v12 = vsel %vm2341_vm2, %v2323_v20, %v2324_v5  ;;  %v8868_v2 = vld [vmem:[#allocation42_spill] sm:$0xff] }
 0x3c7   : > { %2932 = vrot.lane.b32.xlu0 %v2428_v32, %s5117_s26  ;;  %v2196_v32 = vsel %vm2180_vm3, %v2161_v36, %v2162_v51  ;;  %v1753_v54 = vadd.f32 1e-05, %v1689_v58  ;;  %v2485_v36 = vrot.slane %v6781_v31, 3  ;;  %v1691_v39 = vmul.f32 0.03125, %v8868_v2 }
 0x3c8   : > { %v1681_v58 = vsel %vm1106_vm0, %v1491_v3, 0.0  ;;  %v2195_v2 = vsel %vm2180_vm3, %v2162_v51, %v2163_v56  ;;  %v8640_v3 = vrot.slane %v6796_v30, 2 }
 0x3c9   : > { %4993 = vrsqrt.f32 %v1753_v54 }
 0x3cb   : > { %2888 = vrot.lane.b32.xlu0 %v2406_v40, %s5117_s26  ;;  %v2268_v40 = vpack.c.bf16 %v2196_v32, %v2197_v24  ;;  %v2429_v32 = vpack.c.bf16 %v2357_v0, %v2358_v12  ;;  %v2518_v24 = vsel %vm2502_vm4, %v2485_v36, %v2486_v34  ;;  %v2519_v12 = vsel %vm2502_vm4, %v2484_v17, %v2485_v36  ;;  %v8872_v36 = vld [vmem:[#allocation20_spill] sm:$0xff] }
 0x3cc   : > { %v2590_v31 = vpack.c.bf16 %v2518_v24, %v2519_v12 }
 0x3cd   : > { %v4988_v25 = vpop.eup %4987 }
 0x3ce   : > { %v1882_v20 = vmul.f32 %v4988_v25, %v8869_v48  ;;  %v1755_v48 = vadd.f32 1e-05, %v1691_v39  ;;  %v8639_v39 = vrot.slane %v6796_v30, 3 }
 0x3cf   : > { %3028 = vrot.lane.b32.xlu0 %v2589_v50, %s5119_s17  ;;  %v8867_v50 = vld [vmem:[#allocation49_spill] sm:$0xff] }
 0x3d0   : > { %v1694_v18 = vmul.f32 0.03125, %v8867_v50  ;;  %v4990_v50 = vpop.eup %4989  ;;  %v1953_v17 = vmul.f32 %v6636_v14, %v1882_v20 }
 0x3d1   : > { %v4992_v0 = vpop.eup %4991  ;;  %v1879_v25 = vmul.f32 %v4990_v50, %v8870_v19  ;;  %v2487_v19 = vrot.slane %v6793_v55, 3 }
 0x3d2   : > { %v1758_v5 = vadd.f32 1e-05, %v1694_v18  ;;  %v8871_v18 = vld [vmem:[#allocation44_spill] sm:$0xff]  ;;  %v1880_v24 = vmul.f32 %v4992_v0, %v8872_v36  ;;  %v2159_v0 = vrot.slane %v6789_v53, 1 }
 0x3d3   : > { %2838 = vrot.lane.b32.xlu0 %v2268_v40, %s5118_s14  ;;  %v2164_v40 = vrot.slane %v6796_v30, 1  ;;  %v1692_v54 = vmul.f32 0.03125, %v8871_v18  ;;  %v8642_v18 = vrot.slane %v6803_v60, 1 }
 0x3d4   : > { %4995 = vrsqrt.f32 %v1758_v5  ;;  %v1951_v20 = vmul.f32 %v6636_v14, %v1880_v24  ;;  %v8874_v24 = vld [vmem:[#allocation51_spill] sm:$0xff] }
 0x3d5   : > { %v2194_v52 = vsel %vm2180_vm3, %v2163_v56, %v2164_v40  ;;  %4997 = vrsqrt.f32 %v1755_v48  ;;  %v1756_v50 = vadd.f32 1e-05, %v1692_v54  ;;  %v2517_v48 = vsel %vm2502_vm4, %v2486_v34, %v2487_v19  ;;  %v8877_v5 = vld [vmem:[#allocation23_spill] sm:$0xff] }
 0x3d7   : > { %2934 = vrot.lane.b32.xlu0 %v2429_v32, %s5117_s26  ;;  %v2326_v32 = vrot.slane %v6793_v55, 2  ;;  %4999 = vrsqrt.f32 %v1756_v50  ;;  %v8878_v55 = vrot.slane %v8855_v41, 3 }
 0x3d9   : > { %v2355_v51 = vsel %vm2341_vm2, %v2326_v32, %v8640_v3  ;;  %v2356_v56 = vsel %vm2341_vm2, %v2325_v7, %v2326_v32  ;;  %v2165_v7 = vrot.slane %v6806_v33, 1  ;;  %v1741_v32 = vmul.f32 0.03125, %v7149_v21 }
 0x3da   : > { %v2430_v12 = vpack.c.bf16 %v2355_v51, %v2356_v56  ;;  %v7300_v21 = vadd.f32 %v6656_v11, %v1951_v20  ;;  %v1742_v51 = vmul.f32 0.03125, %v7130_v38  ;;  %v2439_v56 = vrot.slane %v8853_v16, 3 }
 0x3db   : > { %3030 = vrot.lane.b32.xlu0 %v2590_v31, %s5119_s17  ;;  %v1950_v31 = vmul.f32 %v6636_v14, %v1879_v25  ;;  %v2516_v25 = vsel %vm2502_vm4, %v2487_v19, %v8639_v39  ;;  %v4994_v19 = vpop.eup %4993  ;;  %v1671_v39 = vpop.xlane.xlu0 %1670  ;;  %v2193_v50 = vsel %vm2180_vm3, %v2164_v40, %v2165_v7  ;;  %v8876_v20 = vrot.slane %v6769_v1, 1 }
 0x3dc   : > { %v2192_v34 = vsel %vm2180_vm3, %v2165_v7, %v8642_v18  ;;  %v2564_v7 = vsel %vm2502_vm4, %v2439_v56, %v8878_v55  ;;  %v8881_v55 = vrot.slane %v6796_v30, 2 }
 0x3dd   : > { %v7294_v54 = vadd.f32 %v6656_v11, %v1950_v31  ;;  %v2591_v31 = vpack.c.bf16 %v2516_v25, %v2517_v48  ;;  %v2199_v38 = vsel %vm2180_vm3, %v8876_v20, %v2159_v0  ;;  %v2328_v25 = vrot.slane %v6806_v33, 2 }
 0x3de   : > { %1682 = vadd.xlane.f32.xlu1 %v1681_v58  ;;  %v2269_v58 = vpack.c.bf16 %v2194_v52, %v2195_v2  ;;  %v7278_v52 = vadd.f32 %v6656_v11, %v1953_v17  ;;  %v8873_v17 = vld [vmem:[#allocation46_spill] sm:$0xff] }
 0x3df   : > { %v1695_v36 = vmul.f32 0.03125, %v8873_v17  ;;  %v8875_v17 = vrot.slane %v6778_v15, 1  ;;  %v2280_v2 = vrot.slane %v7294_v54, 2  ;;  %v2270_v15 = vpack.c.bf16 %v2192_v34, %v2193_v50 }
 0x3e0   : > { %2840 = vrot.lane.b32.xlu0 %v2269_v58, %s5118_s14  ;;  %v1693_v58 = vmul.f32 0.03125, %v8874_v24  ;;  %v1805_v24 = vadd.f32 1e-05, %v1741_v32  ;;  %v1806_v32 = vadd.f32 1e-05, %v1742_v51  ;;  %v2354_v34 = vsel %vm2341_vm2, %v8881_v55, %v2328_v25 }
 0x3e1   : > { %v1759_v48 = vadd.f32 1e-05, %v1695_v36  ;;  %v4996_v18 = vpop.eup %4995  ;;  %v8879_v36 = vrot.slane %v8854_v13, 3 }
 0x3e2   : > { %v1757_v3 = vadd.f32 1e-05, %v1693_v58  ;;  %5001 = vrsqrt.f32 %v1805_v24 }
 0x3e3   : > { %v2565_v58 = vsel %vm2502_vm4, %v8879_v36, %v2439_v56  ;;  %5003 = vrsqrt.f32 %v1759_v48  ;;  %v8882_v56 = vld [vmem:[#allocation52_spill] sm:$0xff]  ;;  %v8883_v36 = vld [vmem:[#allocation22_spill] sm:$0xff]  ;;  %v8884_v48 = vrot.slane %v7300_v21, 1 }
 0x3e4   : > { %2936 = vrot.lane.b32.xlu0 %v2430_v12, %s5117_s26  ;;  %v2198_v12 = vsel %vm2180_vm3, %v2159_v0, %v8875_v17  ;;  %v2117_v17 = vrot.slane %v7294_v54, 1  ;;  %v1881_v0 = vmul.f32 %v4994_v19, %v8877_v5  ;;  %v8880_v5 = vrot.slane %v6803_v60, 2 }
 0x3e5   : > { %v2267_v20 = vpack.c.bf16 %v2198_v12, %v2199_v38  ;;  %v8644_v19 = vrot.slane %v6803_v60, 3  ;;  %v1696_v50 = vmul.f32 0.03125, %v8882_v56  ;;  %v7346_v12 = vpop.xlane.xlu0 %1538  ;;  %v2441_v38 = vrot.slane %v7294_v54, 3 }
 0x3e6   : > { %v2353_v51 = vsel %vm2341_vm2, %v2328_v25, %v8880_v5  ;;  %v1886_v5 = vmul.f32 %v4996_v18, %v8883_v36  ;;  %v1952_v40 = vmul.f32 %v6636_v14, %v1881_v0  ;;  %5005 = vrsqrt.f32 %v1806_v32 }
 0x3e7   : > { %v2567_v25 = vpack.c.bf16 %v2564_v7, %v2565_v58  ;;  %5007 = vrsqrt.f32 %v1757_v3  ;;  %v2431_v55 = vpack.c.bf16 %v2353_v51, %v2354_v34  ;;  %v2240_v56 = vsel %vm2180_vm3, %v2117_v17, %v8884_v48  ;;  %v8886_v7 = vld [vmem:[#allocation21_spill] sm:$0xff] }
 0x3e8   : > { %3032 = vrot.lane.b32.xlu0 %v2591_v31, %s5119_s17  ;;  %v2489_v31 = vrot.slane %v6806_v33, 3  ;;  %v8885_v14 = vrot.slane %v6796_v30, 3  ;;  %v2167_v0 = vrot.slane %v6813_v4, 1  ;;  %v1760_v51 = vadd.f32 1e-05, %v1696_v50 }
 0x3e9   : > { %v8887_v34 = vrot.slane %v8855_v41, 1  ;;  %v7377_v24 = vadd.f32 %v6656_v11, %v1952_v40  ;;  %v8646_v32 = vrot.slane %v7300_v21, 3  ;;  %v8915_v30 = vrot.slane %v6884_v63, 2 }
 0x3ea   : > { %v2514_v18 = vsel %vm2502_vm4, %v2489_v31, %v8644_v19  ;;  %v2515_v3 = vsel %vm2502_vm4, %v8885_v14, %v2489_v31  ;;  %v1743_v31 = vmul.f32 0.03125, %v1671_v39  ;;  %v8890_v39 = vrot.slane %v6884_v63, 1 }
 0x3eb   : > { %v2241_v36 = vsel %vm2180_vm3, %v8887_v34, %v2117_v17  ;;  %8888 = vst [vmem:[#allocation15_spill] sm:$0xff] %v7377_v24  ;;  %5009 = vrsqrt.f32 %v1760_v51  ;;  %v8893_v34 = vpack.c.bf16 %v6579_v37, %v6488_v10  ;;  %v2491_v51 = vrot.slane %v6813_v4, 3 }
 0x3ec   : > { %2842 = vrot.lane.b32.xlu0 %v2270_v15, %s5118_s14  ;;  %v8645_v15 = vrot.slane %v7300_v21, 2  ;;  %v2246_v19 = vpack.c.bf16 %v2240_v56, %v2241_v36  ;;  %v2190_v40 = vsel %vm2180_vm3, %v2167_v0, %v8890_v39  ;;  %v8891_v56 = vrot.slane %v6803_v60, 1  ;;  %v8892_v36 = vld [vmem:[#allocation24_spill] sm:$0xff] }
 0x3ed   : > { %v1807_v39 = vadd.f32 1e-05, %v1743_v31  ;;  %v8894_v31 = vrot.slane %v6884_v63, 2  ;;  %v8896_v37 = vrot.slane %v8855_v41, 3 }
 0x3ee   : > { %v2401_v17 = vsel %vm2341_vm2, %v2280_v2, %v8645_v15  ;;  %v2119_v15 = vrot.slane %v7377_v24, 1 }
 0x3ef   : > { %2836 = vrot.lane.b32.xlu1 %v2267_v20, %s5118_s14  ;;  %v4998_v20 = vpop.eup %4997 }
 0x3f0   : > { %v1883_v58 = vmul.f32 %v4998_v20, %v8886_v7  ;;  %2938 = vrot.lane.b32.xlu0 %v2431_v55, %s5117_s26  ;;  %v5000_v48 = vpop.eup %4999  ;;  %v7380_v20 = vpop.xlane.xlu0 %1541  ;;  %v2592_v55 = vpack.c.bf16 %v2514_v18, %v2515_v3  ;;  %v8889_v7 = vrot.slane %v8855_v41, 2  ;;  %v2191_v18 = vsel %vm2180_vm3, %v8891_v56, %v2167_v0 }
 0x3f1   : > { %v2330_v3 = vrot.slane %v6813_v4, 2  ;;  %v2562_v56 = vsel %vm2502_vm4, %v2441_v38, %v8646_v32  ;;  %v2332_v4 = vrot.slane %v6819_v61, 2 }
 0x3f2   : > { %v2402_v11 = vsel %vm2341_vm2, %v8889_v7, %v2280_v2  ;;  %v7404_v2 = vld [vmem:[%s8524_s2] ss:$0 sm:$0xff] }
 0x3f3   : > { %2984 = vrot.lane.b32.xlu1 %v2567_v25, %s5119_s17  ;;  %v2407_v0 = vpack.c.bf16 %v2401_v17, %v2402_v11  ;;  %v8895_v17 = vrot.slane %v6803_v60, 2  ;;  %v5002_v11 = vpop.eup %5001 }
 0x3f4   : > { %3034 = vrot.lane.b32.xlu0 %v2592_v55, %s5119_s17  ;;  %v2351_v55 = vsel %vm2341_vm2, %v2330_v3, %v8894_v31 }
 0x3f5   : > { %v1674_v14 = vpop.xlane.xlu1 %1673  ;;  %v2352_v10 = vsel %vm2341_vm2, %v8895_v17, %v2330_v3 }
 0x3f6   : > { %v1744_v50 = vmul.f32 0.03125, %v1674_v14  ;;  %v1884_v14 = vmul.f32 %v5000_v48, %v8892_v36  ;;  %v2271_v48 = vpack.c.bf16 %v2190_v40, %v2191_v18  ;;  %v1957_v40 = vmul.f32 %v7404_v2, %v1886_v5  ;;  %v7437_v18 = vld [vmem:[%s8525_s3] ss:$0 sm:$0xff] }
 0x3f7   : > { %2794 = vrot.lane.b32.xlu1 %v2246_v19, %s5118_s14  ;;  %v1954_v19 = vmul.f32 %v7404_v2, %v1883_v58  ;;  %v8897_v5 = vrot.slane %v7278_v52, 1  ;;  %v2432_v32 = vpack.c.bf16 %v2351_v55, %v2352_v10  ;;  %v8900_v55 = vrot.slane %v6803_v60, 3 }
 0x3f8   : > { %v1808_v7 = vadd.f32 1e-05, %v1744_v50  ;;  %v8647_v50 = vrot.slane %v6884_v63, 3  ;;  %v1955_v36 = vmul.f32 %v7404_v2, %v1884_v14  ;;  %2844 = vrot.lane.b32.xlu0 %v2271_v48, %s5118_s14 }
 0x3f9   : > { %v2827_v25 = vpop.permute.xlu1 %2826  ;;  %v2238_v17 = vsel %vm2180_vm3, %v2119_v15, %v8897_v5  ;;  %v2513_v10 = vsel %vm2502_vm4, %v8900_v55, %v2491_v51 }
 0x3fa   : > { %v3101_v58 = vsel %vm1106_vm0, %v8893_v34, %v2827_v25  ;;  %5011 = vrsqrt.f32 %v1808_v7  ;;  %v2563_v25 = vsel %vm2502_vm4, %v8896_v37, %v2441_v38  ;;  %v7440_v34 = vadd.f32 %v7437_v18, %v1954_v19  ;;  %v2923_v7 = vpop.permute.xlu0 %2922 }
 0x3fb   : > { %2890 = vrot.lane.b32.xlu1 %v2407_v0, %s5117_s26  ;;  %v2568_v3 = vpack.c.bf16 %v2562_v56, %v2563_v25  ;;  %v5004_v0 = vpop.eup %5003  ;;  %5013 = vrsqrt.f32 %v1807_v39  ;;  %v3180_v31 = vsel %vm3144_vm5, %v3101_v58, %v2923_v7  ;;  %v2282_v37 = vrot.slane %v7377_v24, 2  ;;  %v8899_v25 = vld [vmem:[#allocation13_spill] sm:$0xff] }
 0x3fc   : > { %v5006_v19 = vpop.eup %5005  ;;  %v2512_v56 = vsel %vm2502_vm4, %v2491_v51, %v8647_v50  ;;  %v8898_v39 = vrot.slane %v7300_v21, 1  ;;  %v1933_v7 = vmul.f32 %v5002_v11, %v8899_v25  ;;  %v7468_v5 = vadd.f32 %v7437_v18, %v1955_v36  ;;  %v8901_v50 = vld [vmem:[#allocation25_spill] sm:$0xff]  ;;  %2940 = vrot.lane.b32.xlu0 %v2432_v32, %s5117_s26  ;;  %v8902_v11 = vld [vmem:[#allocation72_spill] sm:$0xff]  ;;  %v8905_v25 = vld [vmem:[#allocation10_spill] sm:$0xff] }
 0x3fd   : > { %v3019_v38 = vpop.permute.xlu1 %3018  ;;  %v5008_v48 = vpop.eup %5007  ;;  %v2121_v51 = vrot.slane %v7440_v34, 1  ;;  %v1934_v55 = vmul.f32 %v5006_v19, %v8905_v25  ;;  %v8909_v19 = vrot.slane %v6923_v46, 1  ;;  %v2284_v25 = vrot.slane %v7440_v34, 2 }
 0x3fe   : > { %v3262_v14 = vsel %vm3209_vm6, %v3180_v31, %v3019_v38  ;;  %v2239_v58 = vsel %vm2180_vm3, %v8898_v39, %v2119_v15  ;;  %v2169_v38 = vrot.slane %v6819_v61, 1  ;;  %v1887_v15 = vmul.f32 %v5004_v0, %v8901_v50  ;;  %v8903_v39 = vld [vmem:[#allocation31_spill] sm:$0xff] }
 0x3ff   : > { %2986 = vrot.lane.b32.xlu1 %v2568_v3, %s5119_s17  ;;  %3700 = vmatmul.mubr.bf16.gmra.mxu1 %v3262_v14  ;;  %v8904_v3 = vpack.c.bf16 %v8902_v11, %v8903_v39  ;;  %v2443_v14 = vrot.slane %v7377_v24, 3  ;;  %v2247_v60 = vpack.c.bf16 %v2238_v17, %v2239_v58  ;;  %v8906_v31 = vrot.slane %v7278_v52, 2  ;;  %v8908_v11 = vld [vmem:[#allocation26_spill] sm:$0xff]  ;;  %v8916_v24 = vld [vmem:[#allocation27_spill] sm:$0xff] }
 0x400   : > { %v8907_v50 = vrot.slane %v7300_v21, 2  ;;  %v7488_v0 = vadd.f32 %v7437_v18, %v1957_v40  ;;  %v1885_v39 = vmul.f32 %v5008_v48, %v8908_v11  ;;  %v2004_v17 = vmul.f32 %v7404_v2, %v1933_v7 }
 0x401   : > { %4611 = vmatprep.mubr.msk.bf16.mxu1 %vm1106_vm0, %v8904_v3  ;;  %v2399_v36 = vsel %vm2341_vm2, %v2282_v37, %v8906_v31  ;;  %v2593_v3 = vpack.c.bf16 %v2512_v56, %v2513_v10  ;;  %v2188_v58 = vsel %vm2180_vm3, %v2169_v38, %v8909_v19  ;;  %v8910_v31 = vrot.slane %v6884_v63, 1 }
 0x402   : > { %v2400_v32 = vsel %vm2341_vm2, %v8907_v50, %v2282_v37  ;;  %v7504_v56 = vmul.f32 %v7404_v2, %v1887_v15  ;;  %v5010_v50 = vpop.eup %5009  ;;  %v2005_v11 = vmul.f32 %v7404_v2, %v1934_v55  ;;  %v8913_v15 = vrot.slane %v7300_v21, 3  ;;  %v7530_v55 = vld [vmem:[%s8527_s5 + $0x8] sm:$0xff] }
 0x403   : > { %2796 = vrot.lane.b32.xlu1 %v2247_v60, %s5118_s14  ;;  %v2189_v40 = vsel %vm2180_vm3, %v8910_v31, %v2169_v38  ;;  %3036 = vrot.lane.b32.xlu0 %v2593_v3, %s5119_s17  ;;  %v2408_v7 = vpack.c.bf16 %v2399_v36, %v2400_v32  ;;  %v8911_v60 = vrot.slane %v7278_v52, 1  ;;  %v8912_v38 = vrot.slane %v7278_v52, 3  ;;  %v7525_v3 = vld [vmem:[%s8527_s5] sm:$0xff] }
 0x404   : > { %v2561_v36 = vsel %vm2502_vm4, %v8913_v15, %v2443_v14  ;;  %v2272_v37 = vpack.c.bf16 %v2188_v58, %v2189_v40  ;;  %v7536_v15 = vadd.f32 %v7437_v18, %v2004_v17  ;;  %v8914_v32 = vrot.slane %v6923_v46, 2 }
 0x405   : > { %v3637_v48 = vpop.f32.mrf.mxu1  ;;  %v2237_v10 = vsel %vm2180_vm3, %v8911_v60, %v2121_v51  ;;  %v2560_v19 = vsel %vm2502_vm4, %v2443_v14, %v8912_v38  ;;  %v1956_v60 = vmul.f32 %v7404_v2, %v1885_v39  ;;  %v1698_v38 = vmul.f32 0.03125, %v7161_v27 }
 0x406   : > { %v2493_v14 = vrot.slane %v6819_v61, 3  ;;  %v2350_v39 = vsel %vm2341_vm2, %v8915_v30, %v2332_v4  ;;  %v1697_v61 = vmul.f32 0.03125, %v7151_v62  ;;  %v2569_v17 = vpack.c.bf16 %v2560_v19, %v2561_v36 }
 0x407   : > { %v3639_v31 = vpop.f32.mrf.mxu1  ;;  %2892 = vrot.lane.b32.xlu1 %v2408_v7, %s5117_s26  ;;  %v5012_v40 = vpop.eup %5011  ;;  %2846 = vrot.lane.b32.xlu0 %v2272_v37, %s5118_s14  ;;  %v3840_v7 = vadd.f32 %v7525_v3, %v3637_v48  ;;  %v7554_v41 = vadd.f32 %v7437_v18, %v2005_v11  ;;  %v8917_v30 = vrot.slane %v7468_v5, 1  ;;  %v2285_v27 = vrot.slane %v7468_v5, 2 }
 0x408   : > { %v2349_v31 = vsel %vm2341_vm2, %v2332_v4, %v8914_v32  ;;  %v1888_v32 = vmul.f32 %v5010_v50, %v8916_v24  ;;  %v5014_v1 = vpop.eup %5013  ;;  %v1762_v37 = vadd.f32 1e-05, %v1698_v38  ;;  %v8660_v48 = vrot.slane %v7468_v5, 3 }
 0x409   : > { %v3640_v58 = vpop.f32.mrf.mxu1  ;;  %v2236_v4 = vsel %vm2180_vm3, %v2121_v51, %v8917_v30  ;;  %v2433_v19 = vpack.c.bf16 %v2349_v31, %v2350_v39  ;;  %v1936_v24 = vmul.f32 %v5012_v40, %v6976_v9  ;;  %v8919_v50 = vrot.slane %v6923_v46, 3 }
 0x40a   : > { %v3841_v33 = vadd.f32 %v7530_v55, %v3640_v58  ;;  %v8920_v51 = vrot.slane %v6884_v63, 3  ;;  %v2171_v38 = vrot.slane %v7536_v15, 1  ;;  %v1761_v31 = vadd.f32 1e-05, %v1697_v61 }
 0x40b   : > { %v3642_v62 = vpop.f32.mrf.mxu1  ;;  %2988 = vrot.lane.b32.xlu1 %v2569_v17, %s5119_s17  ;;  %v2510_v11 = vsel %vm2502_vm4, %v2493_v14, %v8919_v50  ;;  %2942 = vrot.lane.b32.xlu0 %v2433_v19, %s5117_s26  ;;  %v2248_v9 = vpack.c.bf16 %v2236_v4, %v2237_v10  ;;  %v2445_v39 = vrot.slane %v7440_v34, 3  ;;  %v1959_v40 = vmul.f32 %v7404_v2, %v1888_v32  ;;  %v8921_v17 = vld [vmem:[#allocation12_spill] sm:$0xff]  ;;  %v7596_v4 = vpop.xlane.xlu0 %1679 }
 0x40c   : > { %v7561_v36 = vmax.f32 %v3840_v7, %v3841_v33  ;;  %v2511_v58 = vsel %vm2502_vm4, %v8920_v51, %v2493_v14  ;;  %v7576_v33 = vadd.f32 %v7437_v18, %v1956_v60  ;;  %v1935_v7 = vmul.f32 %v5014_v1, %v8921_v17 }
 0x40d   : > { %v8659_v30 = vrot.slane %v7554_v41, 1  ;;  %v2397_v14 = vsel %vm2341_vm2, %v2284_v25, %v2285_v27  ;;  %5015 = vrsqrt.f32 %v1762_v37  ;;  %v2594_v60 = vpack.c.bf16 %v2510_v11, %v2511_v58 }
 0x40e   : > { %8918 = vst [vmem:[#allocation57_spill] sm:$0xff] %v7561_v36  ;;  %v8922_v61 = vrot.slane %v7278_v52, 2  ;;  %v2558_v32 = vsel %vm2502_vm4, %v2445_v39, %v8660_v48  ;;  %v2007_v1 = vmul.f32 %v7404_v2, %v1936_v24  ;;  %v8923_v37 = vrot.slane %v6923_v46, 1  ;;  %v3645_v11 = vpop.f32.mrf.mxu1 }
 0x40f   : > { %2798 = vrot.lane.b32.xlu1 %v2248_v9, %s5118_s14  ;;  %v2186_v62 = vsel %vm2180_vm3, %v2171_v38, %v8659_v30  ;;  %v2334_v19 = vrot.slane %v7536_v15, 2  ;;  %v7610_v50 = vadd.f32 %v7437_v18, %v7504_v56  ;;  %5017 = vrsqrt.f32 %v1761_v31  ;;  %3038 = vrot.lane.b32.xlu0 %v2594_v60, %s5119_s17 }
 0x410   : > { %v2398_v10 = vsel %vm2341_vm2, %v8922_v61, %v2284_v25  ;;  %v2187_v25 = vsel %vm2180_vm3, %v8923_v37, %v2171_v38  ;;  %v2123_v51 = vrot.slane %v7576_v33, 1  ;;  %v7615_v58 = vadd.f32 %v7437_v18, %v1959_v40  ;;  %v1545_v40 = vpop.xlane.xlu0 %1544 }
 0x411   : > { %8924 = vst [vmem:[#allocation56_spill] sm:$0xff] %v7610_v50  ;;  %v2409_v24 = vpack.c.bf16 %v2397_v14, %v2398_v10  ;;  %v2006_v9 = vmul.f32 %v7404_v2, %v1935_v7  ;;  %v8657_v38 = vrot.slane %v7554_v41, 2  ;;  %v8925_v17 = vrot.slane %v7278_v52, 3  ;;  %v3647_v14 = vpop.f32.mrf.mxu1 }
 0x412   : > { %v1700_v31 = vmul.f32 0.03125, %v7380_v20  ;;  %v2273_v61 = vpack.c.bf16 %v2186_v62, %v2187_v25  ;;  %v8658_v10 = vrot.slane %v7488_v0, 1  ;;  %v7626_v37 = vadd.f32 %v7437_v18, %v2007_v1 }
 0x413   : > { %v2559_v56 = vsel %vm2502_vm4, %v8925_v17, %v2445_v39  ;;  %2894 = vrot.lane.b32.xlu1 %v2409_v24, %s5117_s26  ;;  %v2347_v7 = vsel %vm2341_vm2, %v2334_v19, %v8657_v38  ;;  %v8926_v39 = vrot.slane %v6923_v46, 2  ;;  %v1699_v62 = vmul.f32 0.03125, %v7346_v12  ;;  %v3648_v17 = vpop.f32.mrf.mxu1 }
 0x414   : > { %v2570_v60 = vpack.c.bf16 %v2558_v32, %v2559_v56  ;;  %v2495_v32 = vrot.slane %v7536_v15, 3  ;;  %2848 = vrot.lane.b32.xlu0 %v2273_v61, %s5118_s14  ;;  %v2234_v1 = vsel %vm2180_vm3, %v2123_v51, %v8658_v10  ;;  %v8927_v25 = vrot.slane %v7468_v5, 1 }
 0x415   : > { %v2348_v20 = vsel %vm2341_vm2, %v8926_v39, %v2334_v19  ;;  %v2286_v56 = vrot.slane %v7576_v33, 2  ;;  %v7650_v19 = vadd.f32 %v7437_v18, %v2006_v9  ;;  %v3842_v12 = vadd.f32 %v7525_v3, %v3645_v11  ;;  %v3650_v10 = vpop.f32.mrf.mxu1 }
 0x416   : > { %v2235_v24 = vsel %vm2180_vm3, %v8927_v25, %v2123_v51  ;;  %v8661_v61 = vrot.slane %v7554_v41, 3  ;;  %v3843_v14 = vadd.f32 %v7530_v55, %v3648_v17  ;;  %v1764_v39 = vadd.f32 1e-05, %v1700_v31  ;;  %v7657_v51 = vpop.permute.xlu0 %2924 }
 0x417   : > { %8928 = vst [vmem:[#allocation63_spill] sm:$0xff] %v7650_v19  ;;  %v2434_v38 = vpack.c.bf16 %v2347_v7, %v2348_v20  ;;  %v8663_v30 = vrot.slane %v7488_v0, 2  ;;  %v2447_v48 = vrot.slane %v7576_v33, 3  ;;  %2990 = vrot.lane.b32.xlu1 %v2570_v60, %s5119_s17  ;;  %v8929_v9 = vrot.slane %v6923_v46, 3 }
 0x418   : > { %v2508_v11 = vsel %vm2502_vm4, %v2495_v32, %v8661_v61  ;;  %v7668_v7 = vmax.f32 %v3842_v12, %v3843_v14  ;;  %v8664_v10 = vrot.slane %v7626_v37, 1  ;;  %v1763_v20 = vadd.f32 1e-05, %v1699_v62 }
 0x419   : > { %v2509_v31 = vsel %vm2502_vm4, %v8929_v9, %v2495_v32  ;;  %2944 = vrot.lane.b32.xlu0 %v2434_v38, %s5117_s26  ;;  %v2249_v25 = vpack.c.bf16 %v2234_v1, %v2235_v24  ;;  %v8662_v60 = vrot.slane %v7488_v0, 3  ;;  %v2173_v17 = vrot.slane %v7650_v19, 1 }
 0x41a   : > { %8930 = vst [vmem:[#allocation62_spill] sm:$0xff] %v7668_v7  ;;  %v2395_v61 = vsel %vm2341_vm2, %v2286_v56, %v8663_v30  ;;  %v2396_v32 = vsel %vm2341_vm2, %v2285_v27, %v2286_v56  ;;  %v8668_v12 = vrot.slane %v7615_v58, 1  ;;  %5019 = vrsqrt.f32 %v1764_v39  ;;  %v5016_v14 = vpop.eup %5015  ;;  %v7691_v9 = vpop.permute.xlu0 %2830  ;;  %v8933_v56 = vld [vmem:[#allocation5_spill] sm:$0xff] }
 0x41b   : > { %v2595_v62 = vpack.c.bf16 %v2508_v11, %v2509_v31  ;;  %v2556_v38 = vsel %vm2502_vm4, %v2447_v48, %v8662_v60  ;;  %v8931_v1 = vrot.slane %v7468_v5, 3  ;;  %2800 = vrot.lane.b32.xlu1 %v2249_v25, %s5118_s14  ;;  %v2184_v27 = vsel %vm2180_vm3, %v2173_v17, %v8664_v10  ;;  %v3653_v31 = vpop.f32.mrf.mxu1 }
 0x41c   : > { %v2125_v39 = vrot.slane %v7610_v50, 1  ;;  %5021 = vrsqrt.f32 %v1763_v20  ;;  %v2410_v11 = vpack.c.bf16 %v2395_v61, %v2396_v32  ;;  %v8932_v60 = vrot.slane %v7554_v41, 1 }
 0x41d   : > { %v2557_v24 = vsel %vm2502_vm4, %v8931_v1, %v2447_v48  ;;  %3040 = vrot.lane.b32.xlu0 %v2595_v62, %s5119_s17  ;;  %v2336_v48 = vrot.slane %v7650_v19, 2  ;;  %v5018_v1 = vpop.eup %5017  ;;  %v2658_v20 = vrot.slane %v7650_v19, 4  ;;  %v1890_v62 = vmul.f32 %v5016_v14, %v8933_v56  ;;  %v3655_v7 = vpop.f32.mrf.mxu1 }
 0x41e   : > { %v2185_v25 = vsel %vm2180_vm3, %v8932_v60, %v2173_v17  ;;  %v2571_v30 = vpack.c.bf16 %v2556_v38, %v2557_v24  ;;  %v2232_v10 = vsel %vm2180_vm3, %v2125_v39, %v8668_v12  ;;  %v1701_v61 = vmul.f32 0.03125, %v1545_v40  ;;  %v7713_v63 = vpop.permute.xlu0 %2926  ;;  %v8935_v40 = vld [vmem:[#allocation7_spill] sm:$0xff] }
 0x41f   : > { %v2274_v32 = vpack.c.bf16 %v2184_v27, %v2185_v25  ;;  %2896 = vrot.lane.b32.xlu1 %v2410_v11, %s5117_s26  ;;  %v8934_v60 = vrot.slane %v7626_v37, 2  ;;  %v8671_v38 = vrot.slane %v7626_v37, 3  ;;  %v8670_v24 = vrot.slane %v7554_v41, 4  ;;  %v3656_v25 = vpop.f32.mrf.mxu1 }
 0x420   : > { %v8669_v14 = vrot.slane %v7626_v37, 4  ;;  %v1889_v27 = vmul.f32 %v5018_v1, %v8935_v40  ;;  %v1746_v7 = vmul.f32 0.03125, %v7596_v4  ;;  %v8936_v56 = vrot.slane %v7554_v41, 2 }
 0x421   : > { %v2345_v17 = vsel %vm2341_vm2, %v2336_v48, %v8934_v60  ;;  %2850 = vrot.lane.b32.xlu0 %v2274_v32, %s5118_s14  ;;  %v2497_v60 = vrot.slane %v7650_v19, 3  ;;  %v3844_v12 = vadd.f32 %v7525_v3, %v3653_v31  ;;  %v3845_v36 = vadd.f32 %v7530_v55, %v3656_v25 }
 0x422   : > { %v2346_v11 = vsel %vm2341_vm2, %v8936_v56, %v2336_v48  ;;  %v7737_v1 = vsel %vm2663_vm1, %v2658_v20, %v8669_v14  ;;  %v7743_v4 = vsel %vm2663_vm1, %v8670_v24, %v2658_v20  ;;  %v1961_v48 = vmul.f32 %v7404_v2, %v1890_v62  ;;  %v3658_v56 = vpop.f32.mrf.mxu1  ;;  %v7748_v25 = vpop.permute.xlu0 %3022 }
 0x423   : > { %8937 = vst [vmem:[#allocation60_spill] sm:$0xff] %v7737_v1  ;;  %8938 = vst [vmem:[#allocation58_spill] sm:$0xff] %v7743_v4  ;;  %v1765_v32 = vadd.f32 1e-05, %v1701_v61  ;;  %v2435_v40 = vpack.c.bf16 %v2345_v17, %v2346_v11  ;;  %2992 = vrot.lane.b32.xlu1 %v2571_v30, %s5119_s17  ;;  %v7751_v14 = vmax.f32 %v3844_v12, %v3845_v36  ;;  %v8940_v62 = vrot.slane %v7488_v0, 1 }
 0x424   : > { %v2506_v20 = vsel %vm2502_vm4, %v2497_v60, %v8671_v38  ;;  %v1960_v24 = vmul.f32 %v7404_v2, %v1889_v27  ;;  %v2288_v17 = vrot.slane %v7610_v50, 2  ;;  %v1810_v11 = vadd.f32 1e-05, %v1746_v7  ;;  %v3661_v38 = vpop.f32.mrf.mxu1 }
 0x425   : > { %8939 = vst [vmem:[#allocation64_spill] sm:$0xff] %v7751_v14  ;;  %2946 = vrot.lane.b32.xlu0 %v2435_v40, %s5117_s26  ;;  %v2233_v61 = vsel %vm2180_vm3, %v8940_v62, %v2125_v39  ;;  %v8941_v36 = vrot.slane %v7554_v41, 3  ;;  %v8673_v56 = vrot.slane %v7615_v58, 3  ;;  %v7770_v27 = vadd.f32 %v7437_v18, %v1961_v48 }
 0x426   : > { %v2250_v12 = vpack.c.bf16 %v2232_v10, %v2233_v61  ;;  %5023 = vrsqrt.f32 %v1765_v32  ;;  %v8942_v31 = vrot.slane %v7615_v58, 2  ;;  %v7776_v7 = vpop.permute.xlu0 %2832  ;;  %v2449_v10 = vrot.slane %v7610_v50, 3 }
 0x427   : > { %v2507_v30 = vsel %vm2502_vm4, %v8941_v36, %v2497_v60  ;;  %v5020_v62 = vpop.eup %5019  ;;  %v7781_v60 = vadd.f32 %v7437_v18, %v1960_v24  ;;  %v8944_v48 = vrot.slane %v7488_v0, 2  ;;  %5025 = vrsqrt.f32 %v1810_v11  ;;  %v8945_v36 = vld [vmem:[#allocation8_spill] sm:$0xff] }
 0x428   : > { %v2596_v40 = vpack.c.bf16 %v2506_v20, %v2507_v30  ;;  %v2393_v39 = vsel %vm2341_vm2, %v2288_v17, %v8942_v31  ;;  %2802 = vrot.lane.b32.xlu1 %v2250_v12, %s5118_s14  ;;  %v3663_v31 = vpop.f32.mrf.mxu1  ;;  %v1892_v30 = vmul.f32 %v5020_v62, %v8945_v36  ;;  %v2554_v12 = vsel %vm2502_vm4, %v2449_v10, %v8673_v56 }
 0x429   : > { %8943 = vst [vmem:[#allocation65_spill] sm:$0xff] %v7781_v60  ;;  %v2394_v32 = vsel %vm2341_vm2, %v8944_v48, %v2288_v17  ;;  %v5022_v20 = vpop.eup %5021  ;;  %v8946_v17 = vrot.slane %v7488_v0, 3  ;;  %v3846_v62 = vadd.f32 %v7525_v3, %v3661_v38  ;;  %v2127_v31 = vrot.slane %v7781_v60, 1 }
 0x42a   : > { %3042 = vrot.lane.b32.xlu0 %v2596_v40, %s5119_s17  ;;  %v2411_v61 = vpack.c.bf16 %v2393_v39, %v2394_v32  ;;  %v7794_v14 = vpop.permute.xlu0 %2928  ;;  %v3664_v40 = vpop.f32.mrf.mxu1  ;;  %v8947_v39 = vld [vmem:[#allocation6_spill] sm:$0xff]  ;;  %v1963_v24 = vmul.f32 %v7404_v2, %v1892_v30  ;;  %v8949_v4 = vrot.slane %v7770_v27, 1  ;;  %v8950_v30 = vrot.slane %v7615_v58, 1 }
 0x42b   : > { %v2555_v11 = vsel %vm2502_vm4, %v8946_v17, %v2449_v10  ;;  %v1891_v48 = vmul.f32 %v5022_v20, %v8947_v39  ;;  %v3847_v32 = vadd.f32 %v7530_v55, %v3664_v40  ;;  %v2290_v39 = vrot.slane %v7781_v60, 2 }
 0x42c   : > { %2898 = vrot.lane.b32.xlu1 %v2411_v61, %s5117_s26  ;;  %v3666_v36 = vpop.f32.mrf.mxu1  ;;  %v2572_v56 = vpack.c.bf16 %v2554_v12, %v2555_v11  ;;  %v2230_v10 = vsel %vm2180_vm3, %v2127_v31, %v8949_v4  ;;  %v2231_v11 = vsel %vm2180_vm3, %v8950_v30, %v2127_v31  ;;  %v7824_v20 = vadd.f32 %v7437_v18, %v1963_v24 }
 0x42d   : > { %v7806_v19 = vmax.f32 %v3846_v62, %v3847_v32  ;;  %v1962_v12 = vmul.f32 %v7404_v2, %v1891_v48  ;;  %v2251_v4 = vpack.c.bf16 %v2230_v10, %v2231_v11  ;;  %v2452_v36 = vrot.slane %v7770_v27, 3 }
 0x42e   : > { %v1677_v61 = vpop.xlane.xlu1 %1676  ;;  %v7813_v17 = vpop.permute.xlu0 %3024  ;;  %v8952_v31 = vpack.c.bf16 %v6665_v6, %v6582_v35  ;;  %v2451_v24 = vrot.slane %v7781_v60, 3  ;;  %v2130_v60 = vrot.slane %v7824_v20, 1 }
 0x42f   : > { %8948 = vst [vmem:[#allocation36_spill] sm:$0xff] %v7806_v19  ;;  %v1745_v38 = vmul.f32 0.03125, %v1677_v61  ;;  %v3669_v40 = vpop.f32.mrf.mxu1  ;;  %v7839_v30 = vadd.f32 %v7437_v18, %v1962_v12 }
 0x430   : > { %2994 = vrot.lane.b32.xlu1 %v2572_v56, %s5119_s17  ;;  %v8951_v56 = vrot.slane %v7770_v27, 2  ;;  %v3848_v11 = vadd.f32 %v7525_v3, %v3669_v40 }
 0x431   : > { %v1809_v62 = vadd.f32 1e-05, %v1745_v38  ;;  %v3671_v32 = vpop.f32.mrf.mxu1 }
 0x432   : > { %v2829_v61 = vpop.permute.xlu1 %2828  ;;  %v2391_v48 = vsel %vm2341_vm2, %v2290_v39, %v8951_v56  ;;  %v7830_v1 = vpop.permute.xlu0 %2834 }
 0x433   : > { %v5024_v19 = vpop.eup %5023  ;;  %5027 = vrsqrt.f32 %v1809_v62  ;;  %v3104_v10 = vsel %vm1106_vm0, %v8952_v31, %v2829_v61  ;;  %v3672_v38 = vpop.f32.mrf.mxu1  ;;  %v8953_v62 = vrot.slane %v7615_v58, 2 }
 0x434   : > { %2804 = vrot.lane.b32.xlu1 %v2251_v4, %s5118_s14  ;;  %v3849_v32 = vadd.f32 %v7530_v55, %v3672_v38  ;;  %v2552_v4 = vsel %vm2502_vm4, %v2451_v24, %v2452_v36  ;;  %v5026_v61 = vpop.eup %5025  ;;  %v1893_v12 = vmul.f32 %v5024_v19, %v7053_v8  ;;  %v3182_v38 = vsel %vm3144_vm5, %v3104_v10, %v7657_v51 }
 0x435   : > { %v2392_v56 = vsel %vm2341_vm2, %v8953_v62, %v2290_v39  ;;  %v3674_v35 = vpop.f32.mrf.mxu1  ;;  %v8954_v62 = vrot.slane %v7615_v58, 3  ;;  %v2129_v19 = vrot.slane %v7839_v30, 1  ;;  %v8955_v10 = vpack.c.bf16 %v6835_v47, %v6827_v29 }
 0x436   : > { %v2412_v6 = vpack.c.bf16 %v2391_v48, %v2392_v56  ;;  %v7852_v31 = vmax.f32 %v3848_v11, %v3849_v32  ;;  %v3021_v40 = vpop.permute.xlu1 %3020  ;;  %v7857_v50 = vpop.permute.xlu0 %2930  ;;  %v1938_v11 = vmul.f32 %v5026_v61, %v7039_v26  ;;  %v1964_v56 = vmul.f32 %v7404_v2, %v1893_v12 }
 0x437   : > { %v3677_v39 = vpop.f32.mrf.mxu1  ;;  %v3265_v48 = vsel %vm3209_vm6, %v3182_v38, %v3021_v40  ;;  %v2553_v8 = vsel %vm2502_vm4, %v8954_v62, %v2451_v24  ;;  %v2228_v35 = vsel %vm2180_vm3, %v2129_v19, %v2130_v60  ;;  %v8956_v29 = vrot.slane %v7770_v27, 1 }
 0x438   : > { %2900 = vrot.lane.b32.xlu1 %v2412_v6, %s5117_s26  ;;  %3708 = vmatmul.mubr.bf16.gmra.mxu1 %v3265_v48  ;;  %v2573_v32 = vpack.c.bf16 %v2552_v4, %v2553_v8  ;;  %v2293_v6 = vrot.slane %v7824_v20, 2  ;;  %v3850_v26 = vadd.f32 %v7525_v3, %v3677_v39  ;;  %v2292_v4 = vrot.slane %v7839_v30, 2 }
 0x439   : > { %v3679_v51 = vpop.f32.mrf.mxu1  ;;  %4612 = vmatprep.mubr.msk.bf16.mxu1 %vm1106_vm0, %v8955_v10  ;;  %v2229_v47 = vsel %vm2180_vm3, %v8956_v29, %v2129_v19  ;;  %v2009_v12 = vmul.f32 %v7404_v2, %v1938_v11  ;;  %v8957_v38 = vpack.c.bf16 %v6684_v28, %v6659_v23  ;;  %v2454_v39 = vrot.slane %v7824_v20, 3 }
 0x43a   : > { %v7875_v40 = vpop.permute.xlu0 %3026  ;;  %v2252_v8 = vpack.c.bf16 %v2228_v35, %v2229_v47  ;;  %v7893_v51 = vadd.f32 %v7437_v18, %v1964_v56  ;;  %v2389_v11 = vsel %vm2341_vm2, %v2292_v4, %v2293_v6  ;;  %v8958_v56 = vrot.slane %v7770_v27, 2 }
 0x43b   : > { %v3680_v24 = vpop.f32.mrf.mxu1  ;;  %v3107_v48 = vsel %vm1106_vm0, %v8957_v38, %v7691_v9  ;;  %v2453_v35 = vrot.slane %v7839_v30, 3  ;;  %v8959_v29 = vpack.c.bf16 %v6846_v59, %v6850_v44  ;;  %v8960_v59 = vpack.c.bf16 %v6697_v57, %v6690_v49 }
 0x43c   : > { %2996 = vrot.lane.b32.xlu1 %v2573_v32, %s5119_s17  ;;  %v3851_v61 = vadd.f32 %v7530_v55, %v3680_v24  ;;  %v3184_v19 = vsel %vm3144_vm5, %v3107_v48, %v7713_v63  ;;  %v2390_v63 = vsel %vm2341_vm2, %v8958_v56, %v2292_v4  ;;  %v7914_v24 = vadd.f32 %v7437_v18, %v2009_v12 }
 0x43d   : > { %v3682_v62 = vpop.f32.mrf.mxu1  ;;  %v3268_v9 = vsel %vm3209_vm6, %v3184_v19, %v7748_v25  ;;  %v2413_v25 = vpack.c.bf16 %v2389_v11, %v2390_v63  ;;  %v2550_v47 = vsel %vm2502_vm4, %v2453_v35, %v2454_v39  ;;  %v2131_v4 = vrot.slane %v7893_v51, 1 }
 0x43e   : > { %v7897_v10 = vmax.f32 %v3850_v26, %v3851_v61  ;;  %v7903_v23 = vpop.permute.xlu0 %2792  ;;  %v3110_v44 = vsel %vm1106_vm0, %v8960_v59, %v7776_v7  ;;  %v2176_v49 = vrot.slane %v7914_v24, 1  ;;  %v8961_v7 = vld [vmem:[#allocation54_spill] sm:$0xff]  ;;  %v2294_v63 = vrot.slane %v7893_v51, 2 }
 0x43f   : > { %v3685_v28 = vpop.f32.mrf.mxu1  ;;  %v3186_v19 = vsel %vm3144_vm5, %v3110_v44, %v7794_v14  ;;  %v2455_v44 = vrot.slane %v7893_v51, 3 }
 0x440   : > { %2806 = vrot.lane.b32.xlu1 %v2252_v8, %s5118_s14  ;;  %v5028_v32 = vpop.eup %5027  ;;  %3716 = vmatmul.mubr.bf16.gmra.mxu1 %v3268_v9  ;;  %v2551_v8 = vsel %vm2502_vm4, %v2452_v36, %v2453_v35  ;;  %v2227_v36 = vsel %vm2180_vm3, %v2130_v60, %v2131_v4  ;;  %v3271_v35 = vsel %vm3209_vm6, %v3186_v19, %v7813_v17  ;;  %v8682_v60 = vrot.slane %v7914_v24, 4 }
 0x441   : > { %v1937_v26 = vmul.f32 %v5028_v32, %v7073_v22  ;;  %v3687_v61 = vpop.f32.mrf.mxu1  ;;  %4613 = vmatprep.mubr.msk.bf16.mxu1 %vm1106_vm0, %v8959_v29  ;;  %v3852_v22 = vadd.f32 %v7525_v3, %v3685_v28  ;;  %v2574_v32 = vpack.c.bf16 %v2550_v47, %v2551_v8  ;;  %v8962_v28 = vrot.slane %v8961_v7, 1 }
 0x442   : > { %v7927_v12 = vpop.permute.xlu0 %2932 }
 0x443   : > { %v2008_v38 = vmul.f32 %v7404_v2, %v1937_v26  ;;  %v3688_v48 = vpop.f32.mrf.mxu1  ;;  %v2226_v56 = vsel %vm2180_vm3, %v2131_v4, %v8962_v28  ;;  %v8963_v4 = vpack.c.bf16 %v6854_v45, %v6860_v42  ;;  %v2388_v42 = vsel %vm2341_vm2, %v2293_v6, %v2294_v63 }
 0x444   : > { %2902 = vrot.lane.b32.xlu1 %v2413_v25, %s5117_s26  ;;  %v3853_v62 = vadd.f32 %v7530_v55, %v3688_v48  ;;  %v2339_v25 = vrot.slane %v7914_v24, 2  ;;  %v2253_v17 = vpack.c.bf16 %v2226_v56, %v2227_v36  ;;  %v8964_v48 = vrot.slane %v7626_v37, 1 }
 0x445   : > { %v7944_v11 = vadd.f32 %v7437_v18, %v2008_v38  ;;  %v3690_v9 = vpop.f32.mrf.mxu1  ;;  %v8967_v56 = vrot.slane %v7626_v37, 4 }
 0x446   : > { %v7947_v57 = vmax.f32 %v3852_v22, %v3853_v62  ;;  %v7956_v14 = vpop.permute.xlu0 %2888  ;;  %v8965_v62 = vrot.slane %v8961_v7, 2 }
 0x447   : > { %v2175_v26 = vrot.slane %v7944_v11, 1  ;;  %v2338_v61 = vrot.slane %v7944_v11, 2  ;;  %v2660_v29 = vrot.slane %v7944_v11, 4  ;;  %v2499_v8 = vrot.slane %v7944_v11, 3 }
 0x448   : > { %2998 = vrot.lane.b32.xlu1 %v2574_v32, %s5119_s17  ;;  %3724 = vmatmul.mubr.bf16.gmra.mxu1 %v3271_v35  ;;  %v2387_v45 = vsel %vm2341_vm2, %v2294_v63, %v8965_v62  ;;  %v8966_v32 = vrot.slane %v7626_v37, 2  ;;  %v8968_v35 = vld [vmem:[#allocation71_spill] sm:$0xff]  ;;  %v2549_v62 = vsel %vm2502_vm4, %v2454_v39, %v2455_v44  ;;  %v8973_v39 = vld [vmem:[#allocation74_spill] sm:$0xff] }
 0x449   : > { %4614 = vmatprep.mubr.msk.bf16.mxu1 %vm1106_vm0, %v8963_v4  ;;  %v2182_v38 = vsel %vm2180_vm3, %v2175_v26, %v2176_v49  ;;  %v2183_v59 = vsel %vm2180_vm3, %v8964_v48, %v2175_v26  ;;  %v2343_v9 = vsel %vm2341_vm2, %v2338_v61, %v2339_v25  ;;  %v8003_v6 = vsel %vm2663_vm1, %v2660_v29, %v8682_v60  ;;  %v8969_v26 = vld [vmem:[#allocation70_spill] sm:$0xff] }
 0x44a   : > { %v2275_v22 = vpack.c.bf16 %v2182_v38, %v2183_v59  ;;  %v3029_v19 = vpop.permute.xlu0 %3028  ;;  %v2344_v28 = vsel %vm2341_vm2, %v8966_v32, %v2338_v61  ;;  %v8009_v36 = vsel %vm2663_vm1, %v8967_v56, %v2660_v29  ;;  %v8970_v61 = vpack.c.bf16 %v8968_v35, %v8969_v26 }
 0x44b   : > { %v2758_v63 = vpack.c.bf16 %v8003_v6, %v8009_v36  ;;  %v2500_v38 = vrot.slane %v7914_v24, 3  ;;  %v2436_v59 = vpack.c.bf16 %v2343_v9, %v2344_v28  ;;  %v8971_v29 = vrot.slane %v8961_v7, 3 }
 0x44c   : > { %2808 = vrot.lane.b32.xlu1 %v2253_v17, %s5118_s14  ;;  %2852 = vrot.lane.b32.xlu0 %v2275_v22, %s5118_s14  ;;  %v3113_v4 = vsel %vm1106_vm0, %v8970_v61, %v7830_v1  ;;  %v2414_v17 = vpack.c.bf16 %v2387_v45, %v2388_v42  ;;  %v8972_v45 = vrot.slane %v7626_v37, 3  ;;  %v2615_v6 = vrot.slane %v7824_v20, 4 }
 0x44d   : > { %v3188_v48 = vsel %vm3144_vm5, %v3113_v4, %v7857_v50  ;;  %v2548_v22 = vsel %vm2502_vm4, %v2455_v44, %v8971_v29  ;;  %v2504_v50 = vsel %vm2502_vm4, %v2499_v8, %v2500_v38  ;;  %v8974_v44 = vld [vmem:[#allocation75_spill] sm:$0xff] }
 0x44e   : > { %v2839_v32 = vpop.permute.xlu0 %2838  ;;  %v3274_v1 = vsel %vm3209_vm6, %v3188_v48, %v7875_v40  ;;  %v2505_v42 = vsel %vm2502_vm4, %v8972_v45, %v2499_v8  ;;  %v8975_v9 = vpack.c.bf16 %v8973_v39, %v8974_v44  ;;  %v2575_v28 = vpack.c.bf16 %v2548_v22, %v2549_v62  ;;  %v8976_v45 = vld [vmem:[#allocation53_spill] sm:$0xff] }
 0x44f   : > { %v2597_v40 = vpack.c.bf16 %v2504_v50, %v2505_v42  ;;  %v2602_v62 = vrot.slane %v7294_v54, 4  ;;  %v2082_v50 = vpack.c.bf16 %v8853_v16, %v8854_v13  ;;  %v8977_v42 = vpack.c.bf16 %v6789_v53, %v8976_v45  ;;  %v8978_v53 = vld [vmem:[#allocation47_spill] sm:$0xff]  ;;  %v8980_v45 = vld [vmem:[#allocation77_spill] sm:$0xff] }
 0x450   : > { %2904 = vrot.lane.b32.xlu1 %v2414_v17, %s5117_s26  ;;  %2948 = vrot.lane.b32.xlu0 %v2436_v59, %s5117_s26  ;;  %v2603_v59 = vrot.slane %v7300_v21, 4 }
 0x451   : > { %3732 = vmatmul.mubr.bf16.gmra.mxu1 %v3274_v1 }
 0x452   : > { %4615 = vmatprep.mubr.msk.bf16.mxu1 %vm1106_vm0, %v8975_v9  ;;  %v2935_v56 = vpop.permute.xlu0 %2934  ;;  %v2723_v9 = vsel %vm2663_vm1, %v2602_v62, %v2603_v59 }
 0x454   : > { %3000 = vrot.lane.b32.xlu1 %v2575_v28, %s5119_s17  ;;  %3044 = vrot.lane.b32.xlu0 %v2597_v40, %s5119_s17  ;;  %v3050_v28 = vsel %vm1106_vm0, %v2082_v50, %v7903_v23  ;;  %v8983_v50 = vld [vmem:[#allocation55_spill] sm:$0xff] }
 0x455   : > { %v3146_v16 = vsel %vm3144_vm5, %v3050_v28, %v7956_v14 }
 0x456   : > { %v3031_v35 = vpop.permute.xlu0 %3030 }
 0x45a   : > { %v2841_v26 = vpop.permute.xlu0 %2840 }
 0x45e   : > { %v2937_v61 = vpop.permute.xlu0 %2936 }
 0x462   : > { %v3033_v4 = vpop.permute.xlu0 %3032 }
 0x466   : > { %v8048_v8 = vpop.permute.xlu0 %2842 }
 0x467   : > { %v1683_v17 = vpop.xlane.xlu1 %1682 }
 0x468   : > { %v1747_v48 = vmul.f32 0.03125, %v1683_v17 }
 0x46a   : > { %v1811_v29 = vadd.f32 1e-05, %v1747_v48  ;;  %v8051_v1 = vpop.permute.xlu0 %2938 }
 0x46b   : > { %v2837_v22 = vpop.permute.xlu1 %2836 }
 0x46c   : > { %5029 = vrsqrt.f32 %v1811_v29  ;;  %v3116_v39 = vsel %vm1106_vm0, %v8977_v42, %v2837_v22  ;;  %v8979_v29 = vrot.slane %v8978_v53, 4  ;;  %v8981_v42 = vld [vmem:[#allocation78_spill] sm:$0xff] }
 0x46d   : > { %v3190_v44 = vsel %vm3144_vm5, %v3116_v39, %v7927_v12  ;;  %v8982_v39 = vpack.c.bf16 %v8980_v45, %v8981_v42  ;;  %v8987_v42 = vld [vmem:[#allocation79_spill] sm:$0xff] }
 0x46e   : > { %v3277_v40 = vsel %vm3209_vm6, %v3190_v44, %v3029_v19  ;;  %v8069_v17 = vpop.permute.xlu0 %3034  ;;  %v2724_v12 = vsel %vm2663_vm1, %v8979_v29, %v2602_v62  ;;  %v8984_v44 = vld [vmem:[#allocation29_spill] sm:$0xff] }
 0x46f   : > { %v2985_v48 = vpop.permute.xlu1 %2984  ;;  %3740 = vmatmul.mubr.bf16.gmra.mxu1 %v3277_v40  ;;  %v2729_v23 = vpack.c.bf16 %v2723_v9, %v2724_v12  ;;  %v8985_v28 = vpack.c.bf16 %v8983_v50, %v8984_v44  ;;  %v2605_v12 = vrot.slane %v7278_v52, 4  ;;  %v8990_v50 = vld [vmem:[#allocation37_spill] sm:$0xff] }
 0x470   : > { %v3211_v22 = vsel %vm3209_vm6, %v3146_v16, %v2985_v48  ;;  %4616 = vmatprep.mubr.msk.bf16.mxu1 %vm1106_vm0, %v8982_v39  ;;  %v8986_v16 = vld [vmem:[#allocation15_spill] sm:$0xff]  ;;  %v8988_v39 = vld [vmem:[#allocation80_spill] sm:$0xff] }
 0x471   : > { %3564 = vmatmul.mubr.bf16.vlgmr.msra.gmra.mxu0 %v3211_v22  ;;  %v3119_v40 = vsel %vm1106_vm0, %v8985_v28, %v2839_v32  ;;  %v2604_v48 = vrot.slane %v8986_v16, 4  ;;  %v2083_v22 = vpack.c.bf16 %v7294_v54, %v8978_v53  ;;  %v8991_v53 = vld [vmem:[#allocation30_spill] sm:$0xff] }
 0x472   : > { %4594 = vmatprep.mubr.msk.bf16.mxu0 %vm1106_vm0, %v2729_v23  ;;  %v8081_v14 = vpop.permute.xlu0 %2844  ;;  %v3192_v62 = vsel %vm3144_vm5, %v3119_v40, %v2935_v56  ;;  %v8989_v23 = vpack.c.bf16 %v8987_v42, %v8988_v39 }
 0x473   : > { %v2795_v19 = vpop.permute.xlu1 %2794  ;;  %v3280_v29 = vsel %vm3209_vm6, %v3192_v62, %v3031_v35  ;;  %v2721_v56 = vsel %vm2663_vm1, %v2604_v48, %v2605_v12  ;;  %v2722_v35 = vsel %vm2663_vm1, %v2603_v59, %v2604_v48 }
 0x474   : > { %v3053_v28 = vsel %vm1106_vm0, %v2083_v22, %v2795_v19  ;;  %v2730_v60 = vpack.c.bf16 %v2721_v56, %v2722_v35 }
 0x476   : > { %v8090_v45 = vpop.permute.xlu0 %2940 }
 0x477   : > { %v2891_v9 = vpop.permute.xlu1 %2890  ;;  %3748 = vmatmul.mubr.bf16.gmra.mxu1 %v3280_v29  ;;  %v8992_v29 = vld [vmem:[#allocation32_spill] sm:$0xff] }
 0x478   : > { %4617 = vmatprep.mubr.msk.bf16.mxu1 %vm1106_vm0, %v8989_v23  ;;  %v3148_v40 = vsel %vm3144_vm5, %v3053_v28, %v2891_v9  ;;  %v8993_v42 = vpack.c.bf16 %v8991_v53, %v8992_v29 }
 0x479   : > { %v5030_v32 = vpop.eup %5029 }
 0x47a   : > { %v1939_v44 = vmul.f32 %v5030_v32, %v8990_v50  ;;  %v8106_v62 = vpop.permute.xlu0 %3036  ;;  %v3122_v39 = vsel %vm1106_vm0, %v8993_v42, %v2841_v26  ;;  %v8994_v26 = vld [vmem:[#allocation81_spill] sm:$0xff]  ;;  %v8995_v32 = vld [vmem:[#allocation82_spill] sm:$0xff] }
 0x47b   : > { %v2987_v54 = vpop.permute.xlu1 %2986  ;;  %v3194_v59 = vsel %vm3144_vm5, %v3122_v39, %v2937_v61  ;;  %v2607_v61 = vrot.slane %v7468_v5, 4  ;;  %v8999_v42 = vld [vmem:[#allocation33_spill] sm:$0xff]  ;;  %v9000_v39 = vld [vmem:[#allocation35_spill] sm:$0xff] }
 0x47c   : > { %v2010_v23 = vmul.f32 %v7404_v2, %v1939_v44  ;;  %v3214_v47 = vsel %vm3209_vm6, %v3148_v40, %v2987_v54  ;;  %v3283_v48 = vsel %vm3209_vm6, %v3194_v59, %v3033_v4  ;;  %v8996_v2 = vpack.c.bf16 %v8994_v26, %v8995_v32 }
 0x47d   : > { %3572 = vmatmul.mubr.bf16.gmra.mxu0 %v3214_v47  ;;  %v8997_v4 = vrot.slane %v8854_v13, 1  ;;  %v8998_v44 = vrot.slane %v8854_v13, 2  ;;  %v9002_v26 = vrot.slane %v8854_v13, 3 }
 0x47e   : > { %v8116_v19 = vadd.f32 %v7437_v18, %v2010_v23  ;;  %4595 = vmatprep.mubr.msk.bf16.mxu0 %vm1106_vm0, %v2730_v60  ;;  %v8120_v9 = vpop.permute.xlu0 %2846  ;;  %v9001_v23 = vpack.c.bf16 %v8999_v42, %v9000_v39  ;;  %v9007_v42 = vld [vmem:[#allocation34_spill] sm:$0xff] }
 0x47f   : > { %v2797_v22 = vpop.permute.xlu1 %2796  ;;  %3756 = vmatmul.mubr.bf16.gmra.mxu1 %v3283_v48 }
 0x480   : > { %4618 = vmatprep.mubr.msk.bf16.mxu1 %vm1106_vm0, %v8996_v2  ;;  %v2177_v56 = vrot.slane %v8116_v19, 1  ;;  %v2340_v47 = vrot.slane %v8116_v19, 2  ;;  %v2501_v18 = vrot.slane %v8116_v19, 3  ;;  %v3125_v59 = vsel %vm1106_vm0, %v9001_v23, %v8048_v8 }
 0x481   : > { %v3196_v2 = vsel %vm3144_vm5, %v3125_v59, %v8051_v1 }
 0x482   : > { %v2181_v60 = vsel %vm2180_vm3, %v2176_v49, %v2177_v56  ;;  %v2244_v35 = vsel %vm2180_vm3, %v2177_v56, %v8997_v4  ;;  %v2342_v50 = vsel %vm2341_vm2, %v2339_v25, %v2340_v47  ;;  %v2405_v28 = vsel %vm2341_vm2, %v2340_v47, %v8998_v44  ;;  %v2943_v40 = vpop.permute.xlu0 %2942 }
 0x483   : > { %v2893_v54 = vpop.permute.xlu1 %2892  ;;  %v2276_v53 = vpack.c.bf16 %v2244_v35, %v2181_v60  ;;  %v2437_v29 = vpack.c.bf16 %v2405_v28, %v2342_v50  ;;  %v2606_v49 = vrot.slane %v7440_v34, 4  ;;  %v2084_v25 = vpack.c.bf16 %v8986_v16, %v7300_v21  ;;  %v3693_v16 = vpop.f32.mrf.mxu1  ;;  %v9003_v35 = vld [vmem:[#allocation83_spill] sm:$0xff]  ;;  %v9004_v50 = vld [vmem:[#allocation84_spill] sm:$0xff] }
 0x484   : > { %v2503_v48 = vsel %vm2502_vm4, %v2500_v38, %v2501_v18  ;;  %v2566_v32 = vsel %vm2502_vm4, %v2501_v18, %v9002_v26  ;;  %v3286_v38 = vsel %vm3209_vm6, %v3196_v2, %v8069_v17  ;;  %v9005_v44 = vpack.c.bf16 %v9003_v35, %v9004_v50  ;;  %v9014_v50 = vld [vmem:[#allocation11_spill] sm:$0xff] }
 0x485   : > { %2854 = vrot.lane.b32.xlu0 %v2276_v53, %s5118_s14  ;;  %2950 = vrot.lane.b32.xlu1 %v2437_v29, %s5117_s26  ;;  %v2719_v21 = vsel %vm2663_vm1, %v2606_v49, %v2607_v61  ;;  %v3056_v8 = vsel %vm1106_vm0, %v2084_v25, %v2797_v22  ;;  %v2598_v60 = vpack.c.bf16 %v2566_v32, %v2503_v48  ;;  %v3695_v4 = vpop.f32.mrf.mxu1  ;;  %v2608_v26 = vrot.slane %v7576_v33, 4  ;;  %s324_s26 = sand.u32 1, %s5105_s10  }
 0x486   : > { %v3150_v56 = vsel %vm3144_vm5, %v3056_v8, %v2893_v54  ;;  %v3039_v47 = vpop.permute.xlu0 %3038  ;;  %v2720_v1 = vsel %vm2663_vm1, %v2605_v12, %v2606_v49  ;;  %v3854_v54 = vadd.f32 %v7525_v3, %v3693_v16  ;;  %v9006_v49 = vld [vmem:[#allocation73_spill] sm:$0xff]  ;;  %v2609_v2 = vrot.slane %v7488_v0, 4  ;;  %v9009_v8 = vld [vmem:[#allocation86_spill] sm:$0xff]  ;;  %s4500_s14 = sshll.u32 %s324_s26, 5  ;;  %s8482_s16 = scalar_lea.sflag [#allocation3], %s324_s26 }
 0x487   : > { %v2989_v18 = vpop.permute.xlu1 %2988  ;;  %3764 = vmatmul.mubr.bf16.gmra.mxu1 %v3286_v38  ;;  %v2731_v28 = vpack.c.bf16 %v2719_v21, %v2720_v1  ;;  %v3696_v17 = vpop.f32.mrf.mxu1  ;;  %v9008_v39 = vpack.c.bf16 %v9006_v49, %v9007_v42  ;;  %v2656_v21 = vrot.slane %v7536_v15, 4  ;;  %v9010_v16 = vld [vmem:[#allocation85_spill] sm:$0xff]  ;;  %v9012_v4 = vrot.slane %v7554_v41, 4 }
 0x488   : > { %4619 = vmatprep.mubr.msk.bf16.mxu1 %vm1106_vm0, %v9005_v44  ;;  %v3217_v22 = vsel %vm3209_vm6, %v3150_v56, %v2989_v18  ;;  %v3855_v12 = vadd.f32 %v7530_v55, %v3696_v17  ;;  %v2717_v38 = vsel %vm2663_vm1, %v2608_v26, %v2609_v2  ;;  %v9015_v44 = vld [vmem:[#allocation76_spill] sm:$0xff] }
 0x489   : > { %3046 = vrot.lane.b32.xlu0 %v2598_v60, %s5119_s17  ;;  %3580 = vmatmul.mubr.bf16.gmra.mxu0 %v3217_v22  ;;  %v3128_v23 = vsel %vm1106_vm0, %v9008_v39, %v8081_v14  ;;  %v3698_v59 = vpop.f32.mrf.mxu1  ;;  %v2085_v14 = vpack.c.bf16 %v7440_v34, %v7278_v52  ;;  %v2669_v52 = vsel %vm2663_vm1, %v2656_v21, %v9012_v4  ;;  %v9013_v34 = vrot.slane %v6923_v46, 4  ;;  %s326_s17 = scalar_lea.vmem [#allocation2], %s4500_s14 }
 0x48a   : > { %4596 = vmatprep.mubr.msk.bf16.mxu0 %vm1106_vm0, %v2731_v28  ;;  %v2849_v53 = vpop.permute.xlu0 %2848  ;;  %v3198_v25 = vsel %vm3144_vm5, %v3128_v23, %v8090_v45  ;;  %v8190_v48 = vmax.f32 %v3854_v54, %v3855_v12  ;;  %v9011_v45 = vpack.c.bf16 %v9009_v8, %v9010_v16  ;;  %v2611_v39 = vrot.slane %v7615_v58, 4  ;;  %v9017_v59 = vld [vmem:[#allocation56_spill] sm:$0xff]  ;;  %v9019_v16 = vld [vmem:[#allocation58_spill] sm:$0xff]  ;;  %s4434_s25 = sshll.u32 %s326_s17, 4  ;;  %s8480_s25 = int_to_ptr.vmem [resolvable:$true] %s4434_s25 }
 0x48b   : > { %v2799_v29 = vpop.permute.xlu1 %2798  ;;  %v3289_v3 = vsel %vm3209_vm6, %v3198_v25, %v8106_v62  ;;  %v2718_v62 = vsel %vm2663_vm1, %v2607_v61, %v2608_v26  ;;  %v2670_v35 = vsel %vm2663_vm1, %v9013_v34, %v2656_v21  ;;  %v9016_v61 = vpack.c.bf16 %v9014_v50, %v9015_v44  ;;  %v9018_v8 = vld [vmem:[#allocation60_spill] sm:$0xff]  ;;  %s5053_s13 = scalar_lea.vmem %s8480_s25, 512  ;;  %p5060_p0 = scmp.lt.s32.totalorder %s8480_s25, %s5058_s22 }
 0x48c   : > { %v3059_v56 = vsel %vm1106_vm0, %v2085_v14, %v2799_v29  ;;  %v2732_v17 = vpack.c.bf16 %v2717_v38, %v2718_v62  ;;  %v2756_v29 = vpack.c.bf16 %v2669_v52, %v2670_v35  ;;  %v2610_v25 = vrot.slane %v9017_v59, 4  ;;  %v9022_v52 = vld [vmem:[#allocation65_spill] sm:$0xff]  ;;  %p5054_p11 = scmp.ne.s32.totalorder %s8480_s25, %s5053_s13  ;;  %p5061_p1 = scmp.lt.s32.totalorder %s5059_s23, %s5053_s13 }
 0x48d   : > { %v3131_v22 = vsel %vm1106_vm0, %v9016_v61, %v8120_v9  ;;  %v2110_v9 = vpack.c.bf16 %v7536_v15, %v6923_v46  ;;  %v2086_v26 = vpack.c.bf16 %v7576_v33, %v7468_v5  ;;  %v9020_v5 = vpack.c.bf16 %v9018_v8, %v9019_v16 }
 0x48e   : > { %v2945_v32 = vpop.permute.xlu0 %2944  ;;  %v3200_v54 = vsel %vm3144_vm5, %v3131_v22, %v2943_v40  ;;  %v2612_v34 = vrot.slane %v9022_v52, 4  ;;  %v2087_v35 = vpack.c.bf16 %v9017_v59, %v7488_v0  ;;  %v3999_v59 = vrot.slane %v8190_v48, 4  ;;  %p5055_p12 = pnand %p5054_p11, %p5211_p5  ;;  %p5062_p2 = por %p5061_p1, %p5060_p0 }
 0x48f   : > { %v2895_v55 = vpop.permute.xlu1 %2894  ;;  %3772 = vmatmul.mubr.bf16.gmra.mxu1 %v3289_v3  ;;  %v3292_v12 = vsel %vm3209_vm6, %v3200_v54, %v3039_v47  ;;  %v3134_v40 = vsel %vm1106_vm0, %v2110_v9, %v2849_v53  ;;  %v2716_v53 = vsel %vm2663_vm1, %v2609_v2, %v2610_v25  ;;  %v2088_v54 = vpack.c.bf16 %v9022_v52, %v7615_v58 }
 0x490   : > { %4620 = vmatprep.mubr.msk.bf16.mxu1 %vm1106_vm0, %v9011_v45  ;;  %v3152_v18 = vsel %vm3144_vm5, %v3059_v56, %v2895_v55  ;;  %v3202_v47 = vsel %vm3144_vm5, %v3134_v40, %v2945_v32  ;;  %v2715_v55 = vsel %vm2663_vm1, %v2610_v25, %v2611_v39  ;;  %v9021_v45 = vld [vmem:[#allocation63_spill] sm:$0xff]  ;;  %v2714_v22 = vsel %vm2663_vm1, %v2611_v39, %v2612_v34  ;;  %p5056_p13 = pneg %p5055_p12 }
 0x491   : > { %v2733_v32 = vpack.c.bf16 %v2715_v55, %v2716_v53  ;;  %v2111_v38 = vpack.c.bf16 %v9021_v45, %v7554_v41  ;;  %v2616_v25 = vrot.slane %v7893_v51, 4  ;;  %v4000_v40 = vmax.f32 %v8190_v48, %v3999_v59 }
 0x492   : > { %v3041_v60 = vpop.permute.xlu0 %3040  ;;  %v2662_v55 = vrot.slane %v8116_v19, 4  ;;  %p5063_p3 = pnand %p5062_p2, %p5056_p13 }
 0x493   : > { %v2991_v1 = vpop.permute.xlu1 %2990  ;;  %v3295_v14 = vsel %vm3209_vm6, %v3202_v47, %v3041_v60  ;;  %v2613_v60 = vrot.slane %v7770_v27, 4  ;;  %v4001_v8 = vrot.slane %v4000_v40, 2 }
 0x494   : > { %v3220_v28 = vsel %vm3209_vm6, %v3152_v18, %v2991_v1 }
 0x495   : > { %3588 = vmatmul.mubr.bf16.gmra.mxu0 %v3220_v28  ;;  %v2713_v41 = vsel %vm2663_vm1, %v2612_v34, %v2613_v60  ;;  %v4002_v34 = vmax.f32 %v4000_v40, %v4001_v8 }
 0x496   : > { %4597 = vmatprep.mubr.msk.bf16.mxu0 %vm1106_vm0, %v2732_v17  ;;  %v2851_v49 = vpop.permute.xlu0 %2850  ;;  %v2734_v17 = vpack.c.bf16 %v2713_v41, %v2714_v22 }
 0x497   : > { %v2801_v42 = vpop.permute.xlu1 %2800  ;;  %3780 = vmatmul.mubr.bf16.gmra.mxu1 %v3292_v12  ;;  %v3137_v18 = vsel %vm1106_vm0, %v2111_v38, %v2851_v49 }
 0x498   : > { %4621 = vmatprep.mubr.msk.bf16.mxu1 %vm1106_vm0, %v2756_v29  ;;  %v3062_v21 = vsel %vm1106_vm0, %v2086_v26, %v2801_v42 }
 0x49a   : > { %v2947_v3 = vpop.permute.xlu0 %2946 }
 0x49b   : > { %v2897_v23 = vpop.permute.xlu1 %2896  ;;  %v3204_v2 = vsel %vm3144_vm5, %v3137_v18, %v2947_v3 }
 0x49c   : > { %v3154_v46 = vsel %vm3144_vm5, %v3062_v21, %v2897_v23  ;;  %v2089_v21 = vpack.c.bf16 %v7839_v30, %v7770_v27  ;;  %v9024_v27 = vrot.slane %v7914_v24, 4 }
 0x49e   : > { %v3043_v62 = vpop.permute.xlu0 %3042 }
 0x49f   : > { %v2993_v15 = vpop.permute.xlu1 %2992  ;;  %3788 = vmatmul.mubr.bf16.gmra.mxu1 %v3295_v14  ;;  %v3298_v1 = vsel %vm3209_vm6, %v3204_v2, %v3043_v62  ;;  %v9023_v14 = vrot.slane %v8961_v7, 4  ;;  %v8302_v7 = vld [vmem:[%s8527_s5] sm:$0xff]  ;;  %v8308_v62 = vld [vmem:[%s8527_s5 + $0x8] sm:$0xff]  ;;  %v9025_v2 = vrot.slane %v8854_v13, 4 }
 0x4a0   : > { %4622 = vmatprep.mubr.msk.bf16.mxu1 %vm1106_vm0, %v9020_v5  ;;  %v3223_v33 = vsel %vm3209_vm6, %v3154_v46, %v2993_v15  ;;  %v2710_v15 = vsel %vm2663_vm1, %v2615_v6, %v2616_v25 }
 0x4a1   : > { %3596 = vmatmul.mubr.bf16.gmra.mxu0 %v3223_v33  ;;  %v2709_v46 = vsel %vm2663_vm1, %v2616_v25, %v9023_v14 }
 0x4a2   : > { %4598 = vmatprep.mubr.msk.bf16.mxu0 %vm1106_vm0, %v2733_v32  ;;  %v2736_v45 = vpack.c.bf16 %v2709_v46, %v2710_v15 }
 0x4a3   : > { %v2803_v56 = vpop.permute.xlu1 %2802 }
 0x4a4   : > { %v3065_v50 = vsel %vm1106_vm0, %v2087_v35, %v2803_v56 }
 0x4a7   : > { %v2899_v4 = vpop.permute.xlu1 %2898  ;;  %3796 = vmatmul.mubr.bf16.gmra.mxu1 %v3298_v1  ;;  %v9026_v1 = vpack.c.bf16 %v7944_v11, %v7626_v37  ;;  %v4003_v37 = vrot.slane %v4002_v34, 1 }
 0x4a8   : > { %4623 = vmatprep.mubr.msk.bf16.mxu1 %vm1106_vm0, %v2758_v63  ;;  %v3156_v44 = vsel %vm3144_vm5, %v3065_v50, %v2899_v4  ;;  %v2614_v63 = vrot.slane %v7839_v30, 4  ;;  %v2664_v30 = vsel %vm2663_vm1, %v9024_v27, %v2662_v55 }
 0x4aa   : > { %v2711_v12 = vsel %vm2663_vm1, %v2614_v63, %v2615_v6  ;;  %v2712_v39 = vsel %vm2663_vm1, %v2613_v60, %v2614_v63  ;;  %v2727_v60 = vsel %vm2663_vm1, %v2662_v55, %v9025_v2 }
 0x4ab   : > { %v2995_v61 = vpop.permute.xlu1 %2994  ;;  %v2735_v23 = vpack.c.bf16 %v2711_v12, %v2712_v39 }
 0x4ac   : > { %v3226_v28 = vsel %vm3209_vm6, %v3156_v44, %v2995_v61  ;;  %v2759_v61 = vpack.c.bf16 %v2727_v60, %v2664_v30 }
 0x4ad   : > { %3604 = vmatmul.mubr.bf16.gmra.mxu0 %v3226_v28 }
 0x4ae   : > { %4599 = vmatprep.mubr.msk.bf16.mxu0 %vm1106_vm0, %v2734_v17  ;;  %v2090_v17 = vpack.c.bf16 %v7893_v51, %v7824_v20  ;;  %v2113_v20 = vpack.c.bf16 %v8116_v19, %v7914_v24 }
 0x4af   : > { %v2805_v0 = vpop.permute.xlu1 %2804 }
 0x4b0   : > { %v3068_v29 = vsel %vm1106_vm0, %v2088_v54, %v2805_v0  ;;  %v4004_v0 = vmax.f32 %v4002_v34, %v4003_v37 }
 0x4b3   : > { %v2901_v36 = vpop.permute.xlu1 %2900 }
 0x4b4   : > { %v3158_v49 = vsel %vm3144_vm5, %v3068_v29, %v2901_v36 }
 0x4b7   : > { %v2997_v42 = vpop.permute.xlu1 %2996 }
 0x4b8   : > { %v3229_v9 = vsel %vm3209_vm6, %v3158_v49, %v2997_v42  ;;  %v4126_v49 = vpack.c.bf16 %v4004_v0, %v4004_v0 }
 0x4b9   : > { %3612 = vmatmul.mubr.bf16.gmra.mxu0 %v3229_v9 }
 0x4ba   : > { %4600 = vmatprep.mubr.msk.bf16.mxu0 %vm1106_vm0, %v2735_v23  ;;  %v4213_v9 = vunpack.c.l.b16 %v4126_v49 }
 0x4bb   : > { %v2807_v58 = vpop.permute.xlu1 %2806 }
 0x4bc   : > { %v3071_v48 = vsel %vm1106_vm0, %v2089_v21, %v2807_v58 }
 0x4be   : > { %v2853_v26 = vpop.permute.xlu0 %2852 }
 0x4bf   : > { %v2903_v47 = vpop.permute.xlu1 %2902  ;;  %v3701_v3 = vpop.f32.mrf.mxu1  ;;  %v3140_v4 = vsel %vm1106_vm0, %v9026_v1, %v2853_v26 }
 0x4c0   : > { %v3160_v5 = vsel %vm3144_vm5, %v3071_v48, %v2903_v47  ;;  %v3856_v38 = vadd.f32 %v8302_v7, %v3701_v3 }
 0x4c1   : > { %v3703_v53 = vpop.f32.mrf.mxu1 }
 0x4c2   : > { %v2949_v16 = vpop.permute.xlu0 %2948 }
 0x4c3   : > { %v2999_v33 = vpop.permute.xlu1 %2998  ;;  %v3704_v32 = vpop.f32.mrf.mxu1  ;;  %v3206_v35 = vsel %vm3144_vm5, %v3140_v4, %v2949_v16 }
 0x4c4   : > { %v3857_v56 = vadd.f32 %v8308_v62, %v3704_v32  ;;  %v3232_v18 = vsel %vm3209_vm6, %v3160_v5, %v2999_v33 }
 0x4c5   : > { %3620 = vmatmul.mubr.bf16.gmra.mxu0 %v3232_v18  ;;  %v3706_v52 = vpop.f32.mrf.mxu1 }
 0x4c6   : > { %v4005_v41 = vmax.f32 %v3856_v38, %v3857_v56  ;;  %4601 = vmatprep.mubr.msk.bf16.mxu0 %vm1106_vm0, %v2736_v45  ;;  %v3045_v50 = vpop.permute.xlu0 %3044 }
 0x4c7   : > { %v2809_v44 = vpop.permute.xlu1 %2808  ;;  %v3301_v13 = vsel %vm3209_vm6, %v3206_v35, %v3045_v50 }
 0x4c8   : > { %v4006_v43 = vrot.slane %v4005_v41, 4  ;;  %3804 = vmatmul.mubr.bf16.gmra.mxu1 %v3301_v13  ;;  %v3074_v36 = vsel %vm1106_vm0, %v2090_v17, %v2809_v44 }
 0x4c9   : > { %4624 = vmatprep.mubr.msk.bf16.mxu1 %vm1106_vm0, %v2759_v61 }
 0x4ca   : > { %v4007_v11 = vmax.f32 %v4005_v41, %v4006_v43 }
 0x4cb   : > { %v2905_v22 = vpop.permute.xlu1 %2904 }
 0x4cc   : > { %v4008_v28 = vrot.slane %v4007_v11, 2  ;;  %v3162_v63 = vsel %vm3144_vm5, %v3074_v36, %v2905_v22 }
 0x4ce   : > { %v4009_v6 = vmax.f32 %v4007_v11, %v4008_v28 }
 0x4cf   : > { %v3001_v54 = vpop.permute.xlu1 %3000 }
 0x4d0   : > { %v4010_v12 = vrot.slane %v4009_v6, 1  ;;  %v3235_v29 = vsel %vm3209_vm6, %v3162_v63, %v3001_v54 }
 0x4d1   : > { %3628 = vmatmul.mubr.bf16.gmra.mxu0 %v3235_v29 }
 0x4d2   : > { %v4011_v42 = vmax.f32 %v4009_v6, %v4010_v12 }
 0x4d4   : > { %v4127_v39 = vpack.c.bf16 %v4011_v42, %v4011_v42 }
 0x4d6   : > { %v4214_v23 = vunpack.c.l.b16 %v4127_v39 }
 0x4d8   : > { %v4250_v59 = vsel %vm4229_vm7, %v4214_v23, %v4213_v9 }
 0x4f7   : > { %v2855_v51 = vpop.permute.xlu0 %2854  ;;  %v2951_v58 = vpop.permute.xlu1 %2950 }
 0x4f8   : > { %v3143_v25 = vsel %vm1106_vm0, %v2113_v20, %v2855_v51  ;;  %v3709_v40 = vpop.f32.mrf.mxu1 }
 0x4f9   : > { %v3208_v3 = vsel %vm3144_vm5, %v3143_v25, %v2951_v58  ;;  %v3858_v14 = vadd.f32 %v8302_v7, %v3709_v40  ;;  %v4895_v58 = vld [vmem:[%s8528_s6 + $0x38] sm:$0xff]   ;;  %v4896_v40 = vld [vmem:[%s8528_s6 + $0x30] sm:$0xff]  }
 0x4fa   : > { %v3711_v26 = vpop.f32.mrf.mxu1  ;;  %4771 = vmatprep.subr.bf16.mxu0 %v4895_v58 }
 0x4fb   : > { %v3047_v47 = vpop.permute.xlu0 %3046  ;;  %4772 = vmatpush3.bf16.msra.mxu0 %v4895_v58  ;;  %v4897_v26 = vld [vmem:[%s8528_s6 + $0x28] sm:$0xff]  }
 0x4fc   : > { %v3712_v55 = vpop.f32.mrf.mxu1  ;;  %v3304_v21 = vsel %vm3209_vm6, %v3208_v3, %v3047_v47  ;;  %4773 = vmatprep.subr.bf16.mxu0 %v4896_v40  ;;  %v4898_v47 = vld [vmem:[%s8528_s6 + $0x20] sm:$0xff]  }
 0x4fd   : > { %v3859_v46 = vadd.f32 %v8308_v62, %v3712_v55  ;;  %3812 = vmatmul.mubr.bf16.gmra.mxu1 %v3304_v21 }
 0x4fe   : > { %v3714_v15 = vpop.f32.mrf.mxu1 }
 0x4ff   : > { %v4012_v53 = vmax.f32 %v3858_v14, %v3859_v46  ;;  %4774 = vmatpush3.bf16.msra.mxu0 %v4896_v40  ;;  %v4899_v15 = vld [vmem:[%s8528_s6 + $0x18] sm:$0xff]  }
 0x500   : > { %v3717_v24 = vpop.f32.mrf.mxu1  ;;  %4775 = vmatprep.subr.bf16.mxu0 %v4897_v26 }
 0x501   : > { %v4013_v19 = vrot.slane %v4012_v53, 4  ;;  %v3860_v33 = vadd.f32 %v8302_v7, %v3717_v24 }
 0x502   : > { %v3719_v8 = vpop.f32.mrf.mxu1 }
 0x503   : > { %v4014_v48 = vmax.f32 %v4012_v53, %v4013_v19  ;;  %4776 = vmatpush3.bf16.msra.mxu0 %v4897_v26 }
 0x504   : > { %v3720_v16 = vpop.f32.mrf.mxu1  ;;  %4777 = vmatprep.subr.bf16.mxu0 %v4898_v47 }
 0x505   : > { %v4015_v5 = vrot.slane %v4014_v48, 2  ;;  %v3861_v32 = vadd.f32 %v8308_v62, %v3720_v16 }
 0x506   : > { %v3722_v45 = vpop.f32.mrf.mxu1 }
 0x507   : > { %v4016_v27 = vmax.f32 %v4014_v48, %v4015_v5  ;;  %v4019_v30 = vmax.f32 %v3860_v33, %v3861_v32  ;;  %4778 = vmatpush3.bf16.msra.mxu0 %v4898_v47 }
 0x508   : > { %v3725_v38 = vpop.f32.mrf.mxu1  ;;  %4779 = vmatprep.subr.bf16.mxu0 %v4899_v15 }
 0x509   : > { %v4017_v56 = vrot.slane %v4016_v27, 1  ;;  %v4020_v18 = vrot.slane %v4019_v30, 4  ;;  %v3862_v35 = vadd.f32 %v8302_v7, %v3725_v38 }
 0x50a   : > { %v3727_v2 = vpop.f32.mrf.mxu1 }
 0x50b   : > { %v4018_v60 = vmax.f32 %v4016_v27, %v4017_v56  ;;  %v4021_v1 = vmax.f32 %v4019_v30, %v4020_v18  ;;  %4780 = vmatpush3.bf16.msra.mxu0 %v4899_v15 }
 0x50c   : > { %v3728_v4 = vpop.f32.mrf.mxu1 }
 0x50d   : > { %v4128_v52 = vpack.c.bf16 %v4018_v60, %v4018_v60  ;;  %v4022_v34 = vrot.slane %v4021_v1, 2  ;;  %v3863_v41 = vadd.f32 %v8308_v62, %v3728_v4 }
 0x50e   : > { %v3730_v50 = vpop.f32.mrf.mxu1 }
 0x50f   : > { %v4215_v44 = vunpack.c.l.b16 %v4128_v52  ;;  %v4023_v13 = vmax.f32 %v4021_v1, %v4022_v34  ;;  %v4026_v61 = vmax.f32 %v3862_v35, %v3863_v41 }
 0x511   : > { %v3733_v43 = vpop.f32.mrf.mxu1  ;;  %v4251_v37 = vsel %vm4231_vm8, %v4215_v44, %v4250_v59  ;;  %v4024_v11 = vrot.slane %v4023_v13, 1  ;;  %v4027_v22 = vrot.slane %v4026_v61, 4  ;;  %v4900_v44 = vld [vmem:[%s8528_s6 + $0x10] sm:$0xff]  }
 0x512   : > { %v3864_v54 = vadd.f32 %v8302_v7, %v3733_v43  ;;  %4781 = vmatprep.subr.bf16.mxu0 %v4900_v44 }
 0x513   : > { %v3735_v28 = vpop.f32.mrf.mxu1  ;;  %v4025_v17 = vmax.f32 %v4023_v13, %v4024_v11  ;;  %v4028_v0 = vmax.f32 %v4026_v61, %v4027_v22  ;;  %4782 = vmatpush3.bf16.msra.mxu0 %v4900_v44 }
 0x515   : > { %v3736_v6 = vpop.f32.mrf.mxu1  ;;  %v4129_v36 = vpack.c.bf16 %v4025_v17, %v4025_v17  ;;  %v4029_v63 = vrot.slane %v4028_v0, 2 }
 0x516   : > { %v3865_v12 = vadd.f32 %v8308_v62, %v3736_v6 }
 0x517   : > { %v3738_v29 = vpop.f32.mrf.mxu1  ;;  %v4216_v49 = vunpack.c.l.b16 %v4129_v36  ;;  %v4030_v42 = vmax.f32 %v4028_v0, %v4029_v63 }
 0x518   : > { %v4033_v39 = vmax.f32 %v3864_v54, %v3865_v12 }
 0x519   : > { %v4252_v9 = vsel %vm4233_vm9, %v4216_v49, %v4251_v37  ;;  %v4031_v23 = vrot.slane %v4030_v42, 1 }
 0x51a   : > { %v4034_v19 = vrot.slane %v4033_v39, 4 }
 0x51b   : > { %v4032_v59 = vmax.f32 %v4030_v42, %v4031_v23 }
 0x51c   : > { %v4035_v38 = vmax.f32 %v4033_v39, %v4034_v19 }
 0x51d   : > { %v4130_v20 = vpack.c.bf16 %v4032_v59, %v4032_v59 }
 0x51e   : > { %v4036_v34 = vrot.slane %v4035_v38, 2 }
 0x51f   : > { %v4217_v51 = vunpack.c.l.b16 %v4130_v20 }
 0x520   : > { %v4037_v22 = vmax.f32 %v4035_v38, %v4036_v34 }
 0x521   : > { %v8349_v25 = vsel %vm4235_vm10, %v4217_v51, %v4252_v9 }
 0x522   : > { %v4038_v39 = vrot.slane %v4037_v22, 1 }
 0x52f   : > { %v3741_v3 = vpop.f32.mrf.mxu1 }
 0x530   : > { %v3866_v53 = vadd.f32 %v8302_v7, %v3741_v3 }
 0x531   : > { %v3565_v55 = vpop.f32.mrf.mxu0  ;;  %v3743_v21 = vpop.f32.mrf.mxu1 }
 0x532   : > { %v3822_v16 = vadd.f32 %v8302_v7, %v3565_v55  ;;  %v4039_v55 = vmax.f32 %v4037_v22, %v4038_v39  ;;  %v4902_v39 = vld [vmem:[%s8528_s6] sm:$0xff]  }
 0x533   : > { %v3567_v14 = vpop.f32.mrf.mxu0  ;;  %v3744_v46 = vpop.f32.mrf.mxu1 }
 0x534   : > { %v3867_v24 = vadd.f32 %v8308_v62, %v3744_v46 }
 0x535   : > { %v3568_v8 = vpop.f32.mrf.mxu0  ;;  %v3746_v48 = vpop.f32.mrf.mxu1 }
 0x536   : > { %v4040_v5 = vmax.f32 %v3866_v53, %v3867_v24  ;;  %v3823_v33 = vadd.f32 %v8308_v62, %v3568_v8 }
 0x537   : > { %v3570_v32 = vpop.f32.mrf.mxu0  ;;  %v3749_v45 = vpop.f32.mrf.mxu1 }
 0x538   : > { %v4041_v27 = vrot.slane %v4040_v5, 4  ;;  %v3886_v30 = vmax.f32 %v3822_v16, %v3823_v33  ;;  %v3868_v4 = vadd.f32 %v8302_v7, %v3749_v45  ;;  %v4131_v45 = vpack.c.bf16 %v4039_v55, %v4039_v55 }
 0x539   : > { %v3751_v56 = vpop.f32.mrf.mxu1 }
 0x53a   : > { %v3887_v18 = vrot.slane %v3886_v30, 4  ;;  %v4042_v2 = vmax.f32 %v4040_v5, %v4041_v27 }
 0x53b   : > { %v3752_v60 = vpop.f32.mrf.mxu1 }
 0x53c   : > { %v3888_v1 = vmax.f32 %v3886_v30, %v3887_v18  ;;  %v3869_v52 = vadd.f32 %v8308_v62, %v3752_v60  ;;  %v4043_v13 = vrot.slane %v4042_v2, 2 }
 0x53d   : > { %v3573_v35 = vpop.f32.mrf.mxu0  ;;  %v3754_v41 = vpop.f32.mrf.mxu1 }
 0x53e   : > { %v4047_v50 = vmax.f32 %v3868_v4, %v3869_v52  ;;  %v3889_v61 = vrot.slane %v3888_v1, 2  ;;  %v3824_v6 = vadd.f32 %v8302_v7, %v3573_v35  ;;  %v4044_v63 = vmax.f32 %v4042_v2, %v4043_v13 }
 0x53f   : > { %v3575_v43 = vpop.f32.mrf.mxu0  ;;  %v3757_v37 = vpop.f32.mrf.mxu1 }
 0x540   : > { %v4048_v11 = vrot.slane %v4047_v50, 4  ;;  %v3890_v54 = vmax.f32 %v3888_v1, %v3889_v61  ;;  %v3870_v9 = vadd.f32 %v8302_v7, %v3757_v37  ;;  %v4045_v58 = vrot.slane %v4044_v63, 1 }
 0x541   : > { %v3576_v28 = vpop.f32.mrf.mxu0  ;;  %v3759_v17 = vpop.f32.mrf.mxu1  ;;  %v4218_v61 = vunpack.c.l.b16 %v4131_v45 }
 0x542   : > { %v4049_v0 = vmax.f32 %v4047_v50, %v4048_v11  ;;  %v3825_v36 = vadd.f32 %v8308_v62, %v3576_v28  ;;  %v3891_v40 = vrot.slane %v3890_v54, 1  ;;  %v4046_v24 = vmax.f32 %v4044_v63, %v4045_v58 }
 0x543   : > { %v3578_v12 = vpop.f32.mrf.mxu0  ;;  %v3760_v29 = vpop.f32.mrf.mxu1 }
 0x544   : > { %v4050_v49 = vrot.slane %v4049_v0, 2  ;;  %v3893_v42 = vmax.f32 %v3824_v6, %v3825_v36  ;;  %v3871_v23 = vadd.f32 %v8308_v62, %v3760_v29  ;;  %v3892_v19 = vmax.f32 %v3890_v54, %v3891_v40 }
 0x545   : > { %v3762_v59 = vpop.f32.mrf.mxu1  ;;  %v4132_v4 = vpack.c.bf16 %v4046_v24, %v4046_v24 }
 0x546   : > { %v4051_v20 = vmax.f32 %v4049_v0, %v4050_v49  ;;  %v3894_v51 = vrot.slane %v3893_v42, 4  ;;  %v4054_v26 = vmax.f32 %v3870_v9, %v3871_v23  ;;  %v4110_v52 = vpack.c.bf16 %v3892_v19, %v3892_v19 }
 0x547   : > { %v3765_v47 = vpop.f32.mrf.mxu1  ;;  %v4219_v0 = vunpack.c.l.b16 %v4132_v4 }
 0x548   : > { %v3895_v3 = vmax.f32 %v3893_v42, %v3894_v51  ;;  %v4052_v21 = vrot.slane %v4051_v20, 1  ;;  %v4055_v14 = vrot.slane %v4054_v26, 4  ;;  %v3872_v33 = vadd.f32 %v8302_v7, %v3765_v47  ;;  %v4901_v42 = vld [vmem:[%s8528_s6 + $0x8] sm:$0xff]  }
 0x549   : > { %v3581_v46 = vpop.f32.mrf.mxu0  ;;  %v3767_v15 = vpop.f32.mrf.mxu1  ;;  %v4197_v6 = vunpack.c.l.b16 %v4110_v52  ;;  %v4254_v51 = vsel %vm4237_vm11, %v4218_v61, %v8349_v25  ;;  %4783 = vmatprep.subr.bf16.mxu0 %v4901_v42 }
 0x54a   : > { %v3896_v53 = vrot.slane %v3895_v3, 2  ;;  %v4056_v8 = vmax.f32 %v4054_v26, %v4055_v14  ;;  %v4053_v27 = vmax.f32 %v4051_v20, %v4052_v21  ;;  %v3826_v2 = vadd.f32 %v8302_v7, %v3581_v46  ;;  %4784 = vmatpush3.bf16.msra.mxu0 %v4901_v42 }
 0x54b   : > { %v3583_v48 = vpop.f32.mrf.mxu0  ;;  %v3768_v16 = vpop.f32.mrf.mxu1  ;;  %v4255_v21 = vsel %vm4239_vm12, %v4219_v0, %v4254_v51  ;;  %4785 = vmatprep.subr.bf16.mxu0 %v4902_v39 }
 0x54c   : > { %v3897_v5 = vmax.f32 %v3895_v3, %v3896_v53  ;;  %v3873_v32 = vadd.f32 %v8308_v62, %v3768_v16  ;;  %v4057_v30 = vrot.slane %v4056_v8, 2  ;;  %v4133_v43 = vpack.c.bf16 %v4053_v27, %v4053_v27 }
 0x54d   : > { %v3584_v38 = vpop.f32.mrf.mxu0  ;;  %v3770_v56 = vpop.f32.mrf.mxu1 }
 0x54e   : > { %v3898_v18 = vrot.slane %v3897_v5, 1  ;;  %v4061_v60 = vmax.f32 %v3872_v33, %v3873_v32  ;;  %v3827_v1 = vadd.f32 %v8308_v62, %v3584_v38  ;;  %v4058_v34 = vmax.f32 %v4056_v8, %v4057_v30  ;;  %4786 = vmatpush3.bf16.msra.mxu0 %v4902_v39 }
 0x54f   : > { %v3586_v35 = vpop.f32.mrf.mxu0  ;;  %v3773_v41 = vpop.f32.mrf.mxu1  ;;  %v4220_v9 = vunpack.c.l.b16 %v4133_v43 }
 0x550   : > { %v3899_v50 = vmax.f32 %v3897_v5, %v3898_v18  ;;  %v4062_v44 = vrot.slane %v4061_v60, 4  ;;  %v3900_v13 = vmax.f32 %v3826_v2, %v3827_v1  ;;  %v4059_v37 = vrot.slane %v4058_v34, 1 }
 0x551   : > { %v3775_v11 = vpop.f32.mrf.mxu1  ;;  %v3874_v36 = vadd.f32 %v8302_v7, %v3773_v41  ;;  %v8394_v8 = vsel %vm4241_vm13, %v4220_v9, %v4255_v21 }
 0x552   : > { %v4111_v22 = vpack.c.bf16 %v3899_v50, %v3899_v50  ;;  %v4063_v28 = vmax.f32 %v4061_v60, %v4062_v44  ;;  %v3901_v17 = vrot.slane %v3900_v13, 4  ;;  %v4060_v23 = vmax.f32 %v4058_v34, %v4059_v37 }
 0x553   : > { %v3776_v63 = vpop.f32.mrf.mxu1 }
 0x554   : > { %v4198_v54 = vunpack.c.l.b16 %v4111_v22  ;;  %v4064_v12 = vrot.slane %v4063_v28, 2  ;;  %v3902_v29 = vmax.f32 %v3900_v13, %v3901_v17  ;;  %v3875_v49 = vadd.f32 %v8308_v62, %v3776_v63 }
 0x555   : > { %v3589_v59 = vpop.f32.mrf.mxu0  ;;  %v3778_v20 = vpop.f32.mrf.mxu1  ;;  %v4134_v53 = vpack.c.bf16 %v4060_v23, %v4060_v23 }
 0x556   : > { %v4230_v58 = vsel %vm4229_vm7, %v4198_v54, %v4197_v6  ;;  %v4065_v40 = vmax.f32 %v4063_v28, %v4064_v12  ;;  %v3903_v26 = vrot.slane %v3902_v29, 2  ;;  %v4068_v47 = vmax.f32 %v3874_v36, %v3875_v49 }
 0x557   : > { %v3591_v3 = vpop.f32.mrf.mxu0  ;;  %v3781_v55 = vpop.f32.mrf.mxu1  ;;  %v3828_v24 = vadd.f32 %v8302_v7, %v3589_v59  ;;  %v4221_v18 = vunpack.c.l.b16 %v4134_v53 }
 0x558   : > { %v4066_v14 = vrot.slane %v4065_v40, 1  ;;  %v3904_v46 = vmax.f32 %v3902_v29, %v3903_v26  ;;  %v4069_v15 = vrot.slane %v4068_v47, 4  ;;  %v3876_v2 = vadd.f32 %v8302_v7, %v3781_v55 }
 0x559   : > { %v3592_v19 = vpop.f32.mrf.mxu0  ;;  %v3783_v25 = vpop.f32.mrf.mxu1 }
 0x55a   : > { %v4067_v48 = vmax.f32 %v4065_v40, %v4066_v14  ;;  %v3905_v16 = vrot.slane %v3904_v46, 1  ;;  %v4070_v5 = vmax.f32 %v4068_v47, %v4069_v15  ;;  %v3829_v33 = vadd.f32 %v8308_v62, %v3592_v19 }
 0x55b   : > { %v3594_v32 = vpop.f32.mrf.mxu0  ;;  %v3784_v45 = vpop.f32.mrf.mxu1 }
 0x55c   : > { %v4135_v27 = vpack.c.bf16 %v4067_v48, %v4067_v48  ;;  %v3906_v30 = vmax.f32 %v3904_v46, %v3905_v16  ;;  %v4071_v38 = vrot.slane %v4070_v5, 2  ;;  %v3907_v56 = vmax.f32 %v3828_v24, %v3829_v33 }
 0x55d   : > { %v3877_v60 = vadd.f32 %v8308_v62, %v3784_v45  ;;  %v3786_v1 = vpop.f32.mrf.mxu1 }
 0x55e   : > { %v4222_v4 = vunpack.c.l.b16 %v4135_v27  ;;  %v4112_v52 = vpack.c.bf16 %v3906_v30, %v3906_v30  ;;  %v4072_v34 = vmax.f32 %v4070_v5, %v4071_v38  ;;  %v3908_v35 = vrot.slane %v3907_v56, 4 }
 0x55f   : > { %v4075_v41 = vmax.f32 %v3876_v2, %v3877_v60  ;;  %v3789_v50 = vpop.f32.mrf.mxu1 }
 0x560   : > { %v4257_v44 = vsel %vm4229_vm7, %v4222_v4, %v4221_v18  ;;  %v4199_v13 = vunpack.c.l.b16 %v4112_v52  ;;  %v4073_v61 = vrot.slane %v4072_v34, 1  ;;  %v3909_v43 = vmax.f32 %v3907_v56, %v3908_v35 }
 0x561   : > { %v4076_v37 = vrot.slane %v4075_v41, 4  ;;  %v8400_v11 = vpop.f32.mrf.mxu0  ;;  %v3791_v22 = vpop.f32.mrf.mxu1  ;;  %v3878_v29 = vadd.f32 %v8302_v7, %v3789_v50 }
 0x562   : > { %v4232_v28 = vsel %vm4231_vm8, %v4199_v13, %v4230_v58  ;;  %v4074_v17 = vmax.f32 %v4072_v34, %v4073_v61  ;;  %v3910_v0 = vrot.slane %v3909_v43, 2 }
 0x563   : > { %v4077_v6 = vmax.f32 %v4075_v41, %v4076_v37  ;;  %v3599_v36 = vpop.f32.mrf.mxu0  ;;  %v3792_v63 = vpop.f32.mrf.mxu1 }
 0x564   : > { %v4136_v54 = vpack.c.bf16 %v4074_v17, %v4074_v17  ;;  %v3911_v12 = vmax.f32 %v3909_v43, %v3910_v0  ;;  %v3879_v49 = vadd.f32 %v8308_v62, %v3792_v63 }
 0x565   : > { %v4078_v42 = vrot.slane %v4077_v6, 2  ;;  %v3600_v39 = vpop.f32.mrf.mxu0  ;;  %v3794_v9 = vpop.f32.mrf.mxu1 }
 0x566   : > { %v4223_v23 = vunpack.c.l.b16 %v4136_v54  ;;  %v3912_v59 = vrot.slane %v3911_v12, 1  ;;  %v4082_v20 = vmax.f32 %v3878_v29, %v3879_v49  ;;  %v3831_v36 = vadd.f32 %v8308_v62, %v3600_v39 }
 0x567   : > { %v4079_v51 = vmax.f32 %v4077_v6, %v4078_v42  ;;  %v3602_v40 = vpop.f32.mrf.mxu0  ;;  %v3797_v58 = vpop.f32.mrf.mxu1 }
 0x568   : > { %v4258_v26 = vsel %vm4231_vm8, %v4223_v23, %v4257_v44  ;;  %v3913_v47 = vmax.f32 %v3911_v12, %v3912_v59  ;;  %v4083_v3 = vrot.slane %v4082_v20, 4  ;;  %v3880_v25 = vadd.f32 %v8302_v7, %v3797_v58 }
 0x569   : > { %v4080_v55 = vrot.slane %v4079_v51, 1  ;;  %v3799_v21 = vpop.f32.mrf.mxu1  ;;  %v3830_v12 = vadd.f32 %v8302_v7, %v8400_v11  ;;  %v9027_v11 = vld [vmem:[#allocation57_spill] sm:$0xff] }
 0x56a   : > { %v4113_v14 = vpack.c.bf16 %v3913_v47, %v3913_v47  ;;  %v4084_v46 = vmax.f32 %v4082_v20, %v4083_v3  ;;  %v3950_v3 = vrot.slane %v9027_v11, 4 }
 0x56b   : > { %v4081_v15 = vmax.f32 %v4079_v51, %v4080_v55  ;;  %v3800_v53 = vpop.f32.mrf.mxu1  ;;  %v3914_v23 = vmax.f32 %v3830_v12, %v3831_v36 }
 0x56c   : > { %v4200_v24 = vunpack.c.l.b16 %v4113_v14  ;;  %v4085_v19 = vrot.slane %v4084_v46, 2  ;;  %v3881_v48 = vadd.f32 %v8308_v62, %v3800_v53  ;;  %v9028_v14 = vld [vmem:[#allocation62_spill] sm:$0xff] }
 0x56d   : > { %v4137_v16 = vpack.c.bf16 %v4081_v15, %v4081_v15  ;;  %v3605_v5 = vpop.f32.mrf.mxu0  ;;  %v3802_v33 = vpop.f32.mrf.mxu1  ;;  %v9029_v15 = vld [vmem:[#allocation64_spill] sm:$0xff] }
 0x56e   : > { %v4086_v32 = vmax.f32 %v4084_v46, %v4085_v19  ;;  %v4089_v45 = vmax.f32 %v3880_v25, %v3881_v48  ;;  %v8409_v38 = vsel %vm4233_vm9, %v4200_v24, %v4232_v28  ;;  %v3832_v42 = vadd.f32 %v8302_v7, %v3605_v5  ;;  %v9030_v48 = vld [vmem:[#allocation36_spill] sm:$0xff] }
 0x56f   : > { %v4224_v27 = vunpack.c.l.b16 %v4137_v16  ;;  %v3607_v30 = vpop.f32.mrf.mxu0  ;;  %v3957_v46 = vrot.slane %v9028_v14, 4  ;;  %v3964_v53 = vrot.slane %v9029_v15, 4  ;;  %v3915_v24 = vrot.slane %v3914_v23, 4 }
 0x570   : > { %v4087_v56 = vrot.slane %v4086_v32, 1  ;;  %v4090_v18 = vrot.slane %v4089_v45, 4  ;;  %v3971_v16 = vrot.slane %v9030_v48, 4  ;;  %v3951_v33 = vmax.f32 %v9027_v11, %v3950_v3 }
 0x571   : > { %v4259_v2 = vsel %vm4233_vm9, %v4224_v27, %v4258_v26  ;;  %v3608_v60 = vpop.f32.mrf.mxu0  ;;  %v3958_v27 = vmax.f32 %v9028_v14, %v3957_v46  ;;  %v3965_v30 = vmax.f32 %v9029_v15, %v3964_v53 }
 0x572   : > { %v4088_v1 = vmax.f32 %v4086_v32, %v4087_v56  ;;  %v4091_v4 = vmax.f32 %v4089_v45, %v4090_v18  ;;  %v3833_v54 = vadd.f32 %v8308_v62, %v3608_v60  ;;  %v3978_v32 = vrot.slane %v7852_v31, 4 }
 0x573   : > { %v3610_v52 = vpop.f32.mrf.mxu0  ;;  %v3985_v56 = vrot.slane %v7897_v10, 4  ;;  %v3916_v18 = vmax.f32 %v3914_v23, %v3915_v24  ;;  %v3992_v60 = vrot.slane %v7947_v57, 4 }
 0x574   : > { %v4138_v34 = vpack.c.bf16 %v4088_v1, %v4088_v1  ;;  %v4092_v35 = vrot.slane %v4091_v4, 2  ;;  %v3921_v51 = vmax.f32 %v3832_v42, %v3833_v54 }
 0x576   : > { %v4225_v41 = vunpack.c.l.b16 %v4138_v34  ;;  %v4093_v50 = vmax.f32 %v4091_v4, %v4092_v35  ;;  %v3922_v19 = vrot.slane %v3921_v51, 4  ;;  %v3972_v4 = vmax.f32 %v9030_v48, %v3971_v16 }
 0x577   : > { %v3952_v35 = vrot.slane %v3951_v33, 2 }
 0x578   : > { %v4260_v44 = vsel %vm4235_vm10, %v4225_v41, %v4259_v2  ;;  %v4094_v13 = vrot.slane %v4093_v50, 1  ;;  %v3923_v1 = vmax.f32 %v3921_v51, %v3922_v19  ;;  %v3979_v41 = vmax.f32 %v7852_v31, %v3978_v32 }
 0x579   : > { %v3613_v61 = vpop.f32.mrf.mxu0  ;;  %v3973_v36 = vrot.slane %v3972_v4, 2  ;;  %v3953_v12 = vmax.f32 %v3951_v33, %v3952_v35 }
 0x57a   : > { %v4095_v43 = vmax.f32 %v4093_v50, %v4094_v13  ;;  %v3834_v59 = vadd.f32 %v8302_v7, %v3613_v61  ;;  %v3966_v13 = vrot.slane %v3965_v30, 2  ;;  %v3986_v61 = vmax.f32 %v7897_v10, %v3985_v56 }
 0x57b   : > { %v3615_v37 = vpop.f32.mrf.mxu0 }
 0x57c   : > { %v4139_v22 = vpack.c.bf16 %v4095_v43, %v4095_v43  ;;  %v3917_v43 = vrot.slane %v3916_v18, 2  ;;  %v3987_v23 = vrot.slane %v3986_v61, 2  ;;  %v3967_v10 = vmax.f32 %v3965_v30, %v3966_v13 }
 0x57d   : > { %v3616_v28 = vpop.f32.mrf.mxu0 }
 0x57e   : > { %v4226_v17 = vunpack.c.l.b16 %v4139_v22  ;;  %v3835_v29 = vadd.f32 %v8308_v62, %v3616_v28  ;;  %v3993_v22 = vmax.f32 %v7947_v57, %v3992_v60  ;;  %v3924_v28 = vrot.slane %v3923_v1, 2 }
 0x57f   : > { %v3618_v0 = vpop.f32.mrf.mxu0  ;;  %v3974_v57 = vmax.f32 %v3972_v4, %v3973_v36  ;;  %v3968_v46 = vrot.slane %v3967_v10, 1 }
 0x580   : > { %v8414_v6 = vsel %vm4237_vm11, %v4226_v17, %v4260_v44  ;;  %v3928_v26 = vmax.f32 %v3834_v59, %v3835_v29  ;;  %v3959_v44 = vrot.slane %v3958_v27, 2  ;;  %v3980_v29 = vrot.slane %v3979_v41, 2 }
 0x581   : > { %v3918_v59 = vmax.f32 %v3916_v18, %v3917_v43  ;;  %v3925_v51 = vmax.f32 %v3923_v1, %v3924_v28  ;;  %v3975_v19 = vrot.slane %v3974_v57, 1  ;;  %v3969_v30 = vmax.f32 %v3967_v10, %v3968_v46 }
 0x582   : > { %v3929_v5 = vrot.slane %v3928_v26, 4  ;;  %v3960_v42 = vmax.f32 %v3958_v27, %v3959_v44 }
 0x583   : > { %v3919_v14 = vrot.slane %v3918_v59, 1  ;;  %v3926_v53 = vrot.slane %v3925_v51, 1  ;;  %v3976_v60 = vmax.f32 %v3974_v57, %v3975_v19  ;;  %v4121_v13 = vpack.c.bf16 %v3969_v30, %v3969_v30 }
 0x584   : > { %v3930_v52 = vmax.f32 %v3928_v26, %v3929_v5  ;;  %v3981_v26 = vmax.f32 %v3979_v41, %v3980_v29  ;;  %v3961_v3 = vrot.slane %v3960_v42, 1 }
 0x585   : > { %v3621_v63 = vpop.f32.mrf.mxu0  ;;  %v3920_v27 = vmax.f32 %v3918_v59, %v3919_v14  ;;  %v3927_v18 = vmax.f32 %v3925_v51, %v3926_v53 }
 0x586   : > { %v3836_v39 = vadd.f32 %v8302_v7, %v3621_v63  ;;  %v3931_v63 = vrot.slane %v3930_v52, 2  ;;  %v3982_v16 = vrot.slane %v3981_v26, 1  ;;  %v3962_v32 = vmax.f32 %v3960_v42, %v3961_v3 }
 0x587   : > { %v3623_v49 = vpop.f32.mrf.mxu0  ;;  %v4114_v44 = vpack.c.bf16 %v3920_v27, %v3920_v27  ;;  %v4115_v43 = vpack.c.bf16 %v3927_v18, %v3927_v18 }
 0x588   : > { %v8422_v9 = vpop.f32.mrf.mxu1  ;;  %v4120_v41 = vpack.c.bf16 %v3962_v32, %v3962_v32 }
 0x589   : > { %v3624_v20 = vpop.f32.mrf.mxu0  ;;  %v4201_v29 = vunpack.c.l.b16 %v4114_v44  ;;  %v4202_v42 = vunpack.c.l.b16 %v4115_v43  ;;  %v3882_v14 = vadd.f32 %v8302_v7, %v8422_v9  ;;  %v4625_v43 = vld [vmem:[%s8529_s7] ss:$0 sm:$0xff] }
 0x58a   : > { %v3837_v40 = vadd.f32 %v8308_v62, %v3624_v20  ;;  %v3807_v58 = vpop.f32.mrf.mxu1  ;;  %v3994_v20 = vrot.slane %v3993_v22, 2 }
 0x58b   : > { %v3626_v47 = vpop.f32.mrf.mxu0  ;;  %v3954_v58 = vrot.slane %v3953_v12, 1 }
 0x58c   : > { %v3935_v55 = vmax.f32 %v3836_v39, %v3837_v40  ;;  %v8428_v21 = vpop.f32.mrf.mxu1  ;;  %v3932_v40 = vmax.f32 %v3930_v52, %v3931_v63  ;;  %v3995_v15 = vmax.f32 %v3993_v22, %v3994_v20  ;;  %v3983_v52 = vmax.f32 %v3981_v26, %v3982_v16 }
 0x58d   : > { %v3955_v48 = vmax.f32 %v3953_v12, %v3954_v58  ;;  %v4122_v22 = vpack.c.bf16 %v3976_v60, %v3976_v60  ;;  %v3883_v58 = vadd.f32 %v8308_v62, %v8428_v21  ;;  %v4236_v26 = vsel %vm4235_vm10, %v4201_v29, %v8409_v38 }
 0x58e   : > { %v3810_v25 = vpop.f32.mrf.mxu1  ;;  %v3936_v45 = vrot.slane %v3935_v55, 4  ;;  %v3996_v56 = vrot.slane %v3995_v15, 1  ;;  %v4238_v3 = vsel %vm4237_vm11, %v4202_v42, %v4236_v26 }
 0x58f   : > { %v3933_v25 = vrot.slane %v3932_v40, 1  ;;  %v4119_v4 = vpack.c.bf16 %v3955_v48, %v3955_v48  ;;  %v4209_v59 = vunpack.c.l.b16 %v4122_v22 }
 0x590   : > { %v3937_v50 = vmax.f32 %v3935_v55, %v3936_v45  ;;  %v3988_v55 = vmax.f32 %v3986_v61, %v3987_v23  ;;  %v3997_v61 = vmax.f32 %v3995_v15, %v3996_v56 }
 0x591   : > { %v3629_v2 = vpop.f32.mrf.mxu0  ;;  %v3934_v1 = vmax.f32 %v3932_v40, %v3933_v25 }
 0x592   : > { %v3838_v17 = vadd.f32 %v8302_v7, %v3629_v2  ;;  %v3938_v31 = vrot.slane %v3937_v50, 2  ;;  %v3989_v45 = vrot.slane %v3988_v55, 1 }
 0x593   : > { %v3631_v34 = vpop.f32.mrf.mxu0  ;;  %v4116_v28 = vpack.c.bf16 %v3934_v1, %v3934_v1 }
 0x594   : > { %v3939_v47 = vmax.f32 %v3937_v50, %v3938_v31  ;;  %v3990_v50 = vmax.f32 %v3988_v55, %v3989_v45  ;;  %v4208_v31 = vunpack.c.l.b16 %v4121_v13 }
 0x595   : > { %v3632_v37 = vpop.f32.mrf.mxu0  ;;  %v4203_v10 = vunpack.c.l.b16 %v4116_v28 }
 0x596   : > { %v3839_v0 = vadd.f32 %v8308_v62, %v3632_v37  ;;  %v3940_v5 = vrot.slane %v3939_v47, 1  ;;  %v4124_v12 = vpack.c.bf16 %v3990_v50, %v3990_v50 }
 0x597   : > { %v3634_v54 = vpop.f32.mrf.mxu0  ;;  %v4240_v46 = vsel %vm4239_vm12, %v4203_v10, %v4238_v3 }
 0x598   : > { %v3942_v49 = vmax.f32 %v3838_v17, %v3839_v0  ;;  %v3941_v34 = vmax.f32 %v3939_v47, %v3940_v5  ;;  %v4206_v17 = vunpack.c.l.b16 %v4119_v4  ;;  %v4123_v0 = vpack.c.bf16 %v3983_v52, %v3983_v52 }
 0x599   : > { %v4207_v54 = vunpack.c.l.b16 %v4120_v41  ;;  %v4211_v40 = vunpack.c.l.b16 %v4124_v12 }
 0x59a   : > { %v3943_v39 = vrot.slane %v3942_v49, 4  ;;  %v4117_v36 = vpack.c.bf16 %v3941_v34, %v3941_v34  ;;  %v4210_v51 = vunpack.c.l.b16 %v4123_v0 }
 0x59c   : > { %v3944_v11 = vmax.f32 %v3942_v49, %v3943_v39  ;;  %v4125_v49 = vpack.c.bf16 %v3997_v61, %v3997_v61  ;;  %v4204_v39 = vunpack.c.l.b16 %v4117_v36  ;;  %v4634_v36 = vld [vmem:[%s8530_s8] ss:$0 sm:$0xff] }
 0x59e   : > { %v3945_v24 = vrot.slane %v3944_v11, 2  ;;  %v4242_v53 = vsel %vm4241_vm13, %v4204_v39, %v4240_v46 }
 0x5a0   : > { %v3946_v33 = vmax.f32 %v3944_v11, %v3945_v24  ;;  %v4212_v11 = vunpack.c.l.b16 %v4125_v49  ;;  %v4096_v24 = vmax.f32 %v3882_v14, %v3883_v58 }
 0x5a2   : > { %v3947_v2 = vrot.slane %v3946_v33, 1  ;;  %v4097_v19 = vrot.slane %v4096_v24, 4 }
 0x5a4   : > { %v3948_v35 = vmax.f32 %v3946_v33, %v3947_v2  ;;  %v4098_v25 = vmax.f32 %v4096_v24, %v4097_v19 }
 0x5a6   : > { %v4118_v37 = vpack.c.bf16 %v3948_v35, %v3948_v35  ;;  %v4099_v48 = vrot.slane %v4098_v25, 2 }
 0x5a8   : > { %v4205_v63 = vunpack.c.l.b16 %v4118_v37  ;;  %v4100_v33 = vmax.f32 %v4098_v25, %v4099_v48 }
 0x5aa   : > { %v4243_v23 = vsel %vm4229_vm7, %v4206_v17, %v4205_v63  ;;  %v4101_v56 = vrot.slane %v4100_v33, 1 }
 0x5ab   : > { %v4244_v20 = vsel %vm4231_vm8, %v4207_v54, %v4243_v23 }
 0x5ac   : > { %v4245_v57 = vsel %vm4233_vm9, %v4208_v31, %v4244_v20  ;;  %v4102_v60 = vmax.f32 %v4100_v33, %v4101_v56 }
 0x5ad   : > { %v4246_v47 = vsel %vm4235_vm10, %v4209_v59, %v4245_v57 }
 0x5ae   : > { %v4247_v55 = vsel %vm4237_vm11, %v4210_v51, %v4246_v47  ;;  %v4140_v52 = vpack.c.bf16 %v4102_v60, %v4102_v60 }
 0x5af   : > { %v4248_v15 = vsel %vm4239_vm12, %v4211_v40, %v4247_v55 }
 0x5b0   : > { %v4249_v21 = vsel %vm4241_vm13, %v4212_v11, %v4248_v15  ;;  %v4227_v41 = vunpack.c.l.b16 %v4140_v52 }
 0x5b1   : > { %v4264_v38 = vpack.c.b16 %v4249_v21, %v4242_v53 }
 0x5b2   : > { %v4262_v13 = vsel %vm4239_vm12, %v4227_v41, %v8414_v6 }
 0x5b3   : > { %4787 = vmatprep.mubr.bf16.mxu0 %v4264_v38 }
 0x5bd   : > { %v3813_v16 = vpop.f32.mrf.mxu1 }
 0x5be   : > { %v3884_v9 = vadd.f32 %v8302_v7, %v3813_v16 }
 0x5bf   : > { %v3815_v5 = vpop.f32.mrf.mxu1 }
 0x5c1   : > { %v3816_v32 = vpop.f32.mrf.mxu1 }
 0x5c2   : > { %v3885_v45 = vadd.f32 %v8308_v62, %v3816_v32 }
 0x5c3   : > { %v3818_v27 = vpop.f32.mrf.mxu1 }
 0x5c4   : > { %v4103_v30 = vmax.f32 %v3884_v9, %v3885_v45 }
 0x5c6   : > { %v4104_v18 = vrot.slane %v4103_v30, 4 }
 0x5c8   : > { %v4105_v2 = vmax.f32 %v4103_v30, %v4104_v18 }
 0x5ca   : > { %v4106_v1 = vrot.slane %v4105_v2, 2 }
 0x5cc   : > { %v4107_v4 = vmax.f32 %v4105_v2, %v4106_v1 }
 0x5ce   : > { %v4108_v34 = vrot.slane %v4107_v4, 1 }
 0x5d0   : > { %v4109_v35 = vmax.f32 %v4107_v4, %v4108_v34 }
 0x5d2   : > { %v4141_v50 = vpack.c.bf16 %v4109_v35, %v4109_v35 }
 0x5d4   : > { %v4228_v44 = vunpack.c.l.b16 %v4141_v50 }
 0x5d6   : > { %v4263_v7 = vsel %vm4241_vm13, %v4228_v44, %v4262_v13 }
 0x5d7   : > { %v4265_v62 = vpack.c.b16 %v4263_v7, %v8394_v8 }
 0x5d9   : > { %4788 = vmatmul.mubr.bf16.vlgmr.msra.gmra.mxu0 %v4265_v62 }
 0x699   : > { %v4789_v61 = vpop.f32.mrf.mxu0 }
 0x69a   : > { %v4359_v63 = vadd.f32 %v4789_v61, %v4625_v43 }
 0x69b   : > { %v4350_v37 = vpop.f32.mrf.mxu0 }
 0x69c   : > { %v4351_v22 = vadd.f32 %v4625_v43, %v4350_v37  ;;  %v4367_v31 = vmax.f32 %v4359_v63, 0.0 }
 0x69d   : > { %v4790_v28 = vpop.f32.mrf.mxu0 }
 0x69e   : > { %v4365_v17 = vmax.f32 %v4351_v22, 0.0  ;;  %v4362_v0 = vadd.f32 %v4790_v28, %v4625_v43  ;;  %v4378_v23 = vadd.f32 %v4634_v36, %v4367_v31 }
 0x69f   : > { %v4353_v6 = vpop.f32.mrf.mxu0 }
 0x6a0   : > { %v4376_v54 = vadd.f32 %v4634_v36, %v4365_v17  ;;  %v4368_v12 = vmax.f32 %v4362_v0, 0.0  ;;  %v4354_v8 = vadd.f32 %v4625_v43, %v4353_v6 }
 0x6a2   : > { %v4366_v29 = vmax.f32 %v4354_v8, 0.0  ;;  %4380 = vmax.xlane.f32.xlu1 %v4376_v54  ;;  %v4379_v49 = vadd.f32 %v4634_v36, %v4368_v12 }
 0x6a4   : > { %v4377_v42 = vadd.f32 %v4634_v36, %v4366_v29 }
 0x6a6   : > { %4382 = vmax.xlane.f32.xlu0 %v4377_v42  ;;  %4386 = vmax.xlane.f32.xlu1 %v4379_v49 }
 0x6aa   : > { %4384 = vmax.xlane.f32.xlu0 %v4378_v23 }
 0x72b   : > { %v4381_v59 = vpop.xlane.xlu1 %4380 }
 0x72c   : > { %v4388_v10 = vsub.f32 %v4376_v54, %v4381_v59 }
 0x72e   : > { %v4392_v20 = vmul.f32 1.442695, %v4388_v10 }
 0x72f   : > { %v4383_v51 = vpop.xlane.xlu0 %4382  ;;  %v4387_v39 = vpop.xlane.xlu1 %4386 }
 0x730   : > { %5031 = vpow2.f32 %v4392_v20  ;;  %v4389_v57 = vsub.f32 %v4377_v42, %v4383_v51  ;;  %v4391_v40 = vsub.f32 %v4379_v49, %v4387_v39 }
 0x732   : > { %v4394_v58 = vmul.f32 1.442695, %v4389_v57  ;;  %v4398_v26 = vmul.f32 1.442695, %v4391_v40 }
 0x733   : > { %v4385_v47 = vpop.xlane.xlu0 %4384 }
 0x734   : > { %5033 = vpow2.f32 %v4394_v58  ;;  %v4390_v11 = vsub.f32 %v4378_v23, %v4385_v47 }
 0x735   : > { %5035 = vpow2.f32 %v4398_v26 }
 0x736   : > { %v4396_v3 = vmul.f32 1.442695, %v4390_v11 }
 0x738   : > { %5037 = vpow2.f32 %v4396_v3 }
 0x73d   : > { %v5032_v55 = vpop.eup %5031 }
 0x73e   : > { %4400 = vadd.xlane.f32.xlu0 %v5032_v55 }
 0x741   : > { %v5034_v14 = vpop.eup %5033 }
 0x742   : > { %4402 = vadd.xlane.f32.xlu1 %v5034_v14  ;;  %v5036_v46 = vpop.eup %5035 }
 0x745   : > { %v5038_v15 = vpop.eup %5037 }
 0x746   : > { %4404 = vadd.xlane.f32.xlu0 %v5038_v15  ;;  %4406 = vadd.xlane.f32.xlu1 %v5036_v46 }
 0x7c7   : > { %v4401_v53 = vpop.xlane.xlu0 %4400 }
 0x7c8   : > { %5039 = vrcp.f32 %v4401_v53 }
 0x7cb   : > { %v4403_v21 = vpop.xlane.xlu1 %4402 }
 0x7cc   : > { %5041 = vrcp.f32 %v4403_v21 }
 0x7cf   : > { %v4405_v24 = vpop.xlane.xlu0 %4404  ;;  %v4407_v38 = vpop.xlane.xlu1 %4406 }
 0x7d0   : > { %5043 = vrcp.f32 %v4405_v24 }
 0x7d1   : > { %5045 = vrcp.f32 %v4407_v38 }
 0x7d5   : > { %v5040_v19 = vpop.eup %5039 }
 0x7d6   : > { %v4412_v25 = vmul.f32 %v5040_v19, %v5032_v55 }
 0x7d8   : > { %4416 = vst [vmem:[%s326_s17] sm:$0xff] %v4412_v25 }
 0x7d9   : > { %v5042_v48 = vpop.eup %5041 }
 0x7da   : > { %v4413_v16 = vmul.f32 %v5042_v48, %v5034_v14 }
 0x7dc   : > { %4417 = vst [vmem:[%s326_s17 + $0x8] sm:$0xff] %v4413_v16 }
 0x7dd   : > { %v5044_v5 = vpop.eup %5043 }
 0x7de   : > { %v5046_v33 = vpop.eup %5045  ;;  %v4414_v32 = vmul.f32 %v5044_v5, %v5038_v15 }
 0x7df   : > { %v4415_v9 = vmul.f32 %v5046_v33, %v5036_v46 }
 0x7e0   : > { %4418 = vst [vmem:[%s326_s17 + $0x10] sm:$0xff] %v4414_v32 }
 0x7e1   : > { %4419 = vst [vmem:[%s326_s17 + $0x18] sm:$0xff] %v4415_v9 }
 0x7e2   : > { %5066 = shalt.err (!%p5063_p3)
}
 0x7e3   : > { %s5067_s26 = scalar_lea.hbm %s8478_s29, 512  ;;  %s5071_s24 = scalar_lea.hbm %s8531_s9, 1024 }
 0x7e4   : > { %p5068_p4 = scmp.ne.s32.totalorder %s8478_s29, %s5067_s26  ;;  %p5072_p9 = scmp.lt.s32.totalorder %s8478_s29, %s8531_s9 }
 0x7e5   : > { %p5073_p10 = scmp.lt.s32.totalorder %s5071_s24, %s5067_s26 }
 0x7e6   : > { %p5069_p7 = pnand %p5068_p4, %p5211_p5 }
 0x7e7   : > { %p5074_p11 = por %p5073_p10, %p5072_p9 }
 0x7e8   : > { %p5070_p8 = pneg %p5069_p7 }
 0x7ea   : > { %p5075_p12 = pnand %p5074_p11, %p5070_p8 }
 0x7ec   : > { %5078 = shalt.err (!%p5075_p12)
}
 0x7ed   : > { %s5121_s13 = smov 128   ;;  %s5122_s21 = smov 8  }
 0x7ee   : > { %4823 = dma.vmem_to_hbm [thread:$0]  (%p5211_p5), %s8480_s25, 512, %s8478_s29, %s8482_s16, %s5121_s13, %s5121_s13, %s5122_s21  }
 0x7ef PF: > { %p4829_p13 = scmp.ge.s32.totalorder %s5113_s12, 2  ;;  %s4449_s22 = sand.u32 1, %s5101_s30  }
 0x7f0   : > { %s4450_s23 = scalar_lea.sflag [#allocation3], %s4449_s22 }
 0x7f1   : > { %p4826_p0 = pnand %p4829_p13, %p5215_p6 }
 0x7f3   : > { %p4827_p1 = pneg %p4826_p0 }
 0x7f5   : > { %5096 = dma.done.wait (%p4827_p1), %s4450_s23, 512  }
 0x7f6   : > { %5098 = vsyncadd (%p4827_p1), %s4450_s23, 4294966784  ;;  %p19_p2 = scmp.ge.s32.totalorder %s5198_s15, 4   ;;  %s9031_s30 = smov %s5105_s10 }
 0x7f7   : > { %s9032_s10 = smov %s5109_s11  ;;  %s9033_s11 = smov %s5209_s18 }
 0x7f8   : > { %s9034_s12 = smov %s5198_s15  ;;  %21 = sbr.rel (!%p19_p2) target bundleno = 3 (0x3), region = 91 }
 0x7fd   :  { %4455 = vsyncpa [#allocation3], 1 }
 0x7fe   :  { %4457 = vsyncpa [#allocation3 + $0x1], 1 }

</bundles_post_ra>
